<compile_context>
chip_gen: v5e
topology: v5e:2x2
jax: 0.10.0
libtpu: 0.0.40
codegen_flags: <defaults>
</compile_context>

<pallas_src>
import functools

import numpy as np
import jax
import jax.numpy as jnp
from jax import lax
from jax.experimental import pallas as pl
from jax.experimental.pallas import tpu as pltpu


_LOG2 = float(np.log(2.0))


def _shifted_softplus(x):
    # softplus(x) - log(2), numerically stable, f32 VPU/EUP math.
    return jnp.maximum(x, 0.0) + jnp.log1p(jnp.exp(-jnp.abs(x))) - _LOG2


def _round_up(x, m):
    return (x + m - 1) // m * m


# ------------------------------- kernel ------------------------------------

def schnet_kernel(
    # tensor inputs
    h_ref,                                   # [N_pad, H] f32   (const block)
    src_ref,                                 # [TE, 1] int32    (edge tile)
    dst_ref,                                 # [1, TE] int32    (edge tile)
    eattr_ref,                               # [TE, G] compute dtype
    elen_ref,                                # [TE, 1] f32
    w1t_ref, b1_ref, w2t_ref, b2_ref,        # edge MLP   (per-block slice)
    lin1_wt_ref, lin2_wt_ref, lin2_b_ref,    # CFConv lin1 / lin2
    lin_wt_ref, lin_b_ref,                   # InteractionBlock.lin
    # output (carries h across blocks, VMEM-resident for whole grid)
    out_ref,                                 # [N_pad, H] f32
    # scratch
    xf_s,                                    # [N_pad, F] compute dtype
    aggr_s,                                  # [N_pad, F] f32
    *, cutoff, smooth, n_pad, compute_dtype,
):
    b = pl.program_id(0)           # interaction-block index
    e = pl.program_id(1)           # edge-tile index
    last_e = pl.num_programs(1) - 1

    # ---- once at the very start: load h into the resident output block ----
    @pl.when((b == 0) & (e == 0))
    def _init_h():
        out_ref[...] = h_ref[...]

    # ---- start of each interaction block: lin1(h), zero the accumulator ----
    @pl.when(e == 0)
    def _start_block():
        xf = jnp.dot(out_ref[...].astype(compute_dtype), lin1_wt_ref[0],
                     preferred_element_type=jnp.float32)
        xf_s[...] = xf.astype(xf_s.dtype)
        aggr_s[...] = jnp.zeros_like(aggr_s)

    # ---- CFConv cutoff weight C (padded edges have elen > cutoff -> C = 0) --
    elen = elen_ref[...]                                        # [TE, 1] f32
    if smooth:
        C = 0.5 * (jnp.cos(elen * (np.pi / cutoff)) + 1.0)
        C = C * (elen <= cutoff).astype(jnp.float32) \
              * (elen >= 0.0).astype(jnp.float32)
    else:
        C = (elen <= cutoff).astype(jnp.float32)

    # ---- edge MLP filter W for this edge tile (MXU) ----
    t = jnp.dot(eattr_ref[...], w1t_ref[0],
                preferred_element_type=jnp.float32) + b1_ref[0]
    t = _shifted_softplus(t)
    W = jnp.dot(t.astype(compute_dtype), w2t_ref[0],
                preferred_element_type=jnp.float32) + b2_ref[0]
    WC = W * C                                                  # [TE, F] f32

    te = src_ref.shape[0]

    # ---- gather x_j = xf[src] as a one-hot MXU matmul ----
    onehot_src = (lax.broadcasted_iota(jnp.int32, (te, n_pad), 1)
                  == src_ref[...]).astype(compute_dtype)        # [TE, N_pad]
    xj = jnp.dot(onehot_src, xf_s[...],
                 preferred_element_type=jnp.float32)            # [TE, F] f32

    # ---- message (single lane-dense VPU multiply, no scratch round-trip) ----
    msg = (xj * WC).astype(compute_dtype)                       # [TE, F]

    # ---- scatter-add aggr[dst] += msg as a one-hot MXU matmul ----
    onehot_dst = (lax.broadcasted_iota(jnp.int32, (n_pad, te), 0)
                  == dst_ref[...]).astype(compute_dtype)        # [N_pad, TE]
    aggr_s[...] = aggr_s[...] + jnp.dot(onehot_dst, msg,
                                        preferred_element_type=jnp.float32)

    # ---- end of block: lin2 -> act -> lin -> residual into carried h ----
    @pl.when(e == last_e)
    def _finish_block():
        y = jnp.dot(aggr_s[...].astype(compute_dtype), lin2_wt_ref[0],
                    preferred_element_type=jnp.float32) + lin2_b_ref[0]
        y = _shifted_softplus(y)
        y = jnp.dot(y.astype(compute_dtype), lin_wt_ref[0],
                    preferred_element_type=jnp.float32) + lin_b_ref[0]
        out_ref[...] = out_ref[...] + y


# ------------------------------- wrapper ------------------------------------

def schnet_encoder_forward(z, edge_index, edge_length, edge_attr,
                           emb, blocks, cutoff, smooth, *,
                           edges_per_tile=None, compute_dtype=jnp.float32):
    N = int(z.shape[0])
    E = int(edge_index.shape[1])
    H = int(emb.shape[1])
    G = int(edge_attr.shape[1])
    Fh = int(blocks[0]["w1t"].shape[1])      # num_filters
    B = len(blocks)
    cd = jnp.dtype(compute_dtype)

    # Embedding lookup (glue, outside the kernel).
    h = jnp.take(emb, z, axis=0).astype(jnp.float32)

    N_pad = _round_up(N, 8)

    # Edge tile: multiple of 128 (dst row is lane-major), >= 128, default 512,
    # auto-shrunk so the [TE, N_pad] one-hot operands stay ~4 MiB.
    if edges_per_tile is None:
        budget = (4 << 20) // (4 * N_pad)
        edges_per_tile = max(128, min(512, (budget // 128) * 128))
    TE = max(128, _round_up(int(edges_per_tile), 128))
    E_pad = _round_up(max(E, 1), TE)

    # Padding.  Padded edges get length > cutoff so C = 0 -> zero contribution;
    # padded src/dst point at node 0 (valid index, message is zero anyway).
    h_p = jnp.pad(h, ((0, N_pad - N), (0, 0)))
    eattr_p = jnp.pad(edge_attr.astype(jnp.float32),
                      ((0, E_pad - E), (0, 0))).astype(cd)
    elen = edge_length.astype(jnp.float32).reshape(E, 1)
    elen_p = jnp.pad(elen, ((0, E_pad - E), (0, 0)),
                     constant_values=float(cutoff) + 1.0)
    src_col = jnp.pad(edge_index[0].astype(jnp.int32),
                      (0, E_pad - E)).reshape(E_pad, 1)
    dst_row = jnp.pad(edge_index[1].astype(jnp.int32),
                      (0, E_pad - E)).reshape(1, E_pad)

    # Stack per-block parameters along a leading block axis.  Matmul operands
    # use compute_dtype (bf16 halves weight DMA + doubles MXU rate); biases f32.
    weight_keys = ("w1t", "w2t", "lin1_wt", "lin2_wt", "lin_wt")
    stacked = {}
    for k in blocks[0]:
        arr = jnp.stack([p[k] for p in blocks])
        stacked[k] = arr.astype(cd if k in weight_keys else jnp.float32)

    grid = (B, E_pad // TE)

    const_map = lambda b, e: (0, 0)
    edge_map = lambda b, e: (e, 0)
    edge_row_map = lambda b, e: (0, e)
    block_map = lambda b, e: (b, 0, 0)

    in_specs = [
        pl.BlockSpec((N_pad, H), const_map),        # h
        pl.BlockSpec((TE, 1), edge_map),            # src column tile
        pl.BlockSpec((1, TE), edge_row_map),        # dst row tile
        pl.BlockSpec((TE, G), edge_map),            # edge_attr tile
        pl.BlockSpec((TE, 1), edge_map),            # edge_length tile
        pl.BlockSpec((1, G, Fh), block_map),        # w1t
        pl.BlockSpec((1, 1, Fh), block_map),        # b1
        pl.BlockSpec((1, Fh, Fh), block_map),       # w2t
        pl.BlockSpec((1, 1, Fh), block_map),        # b2
        pl.BlockSpec((1, H, Fh), block_map),        # lin1_wt
        pl.BlockSpec((1, Fh, H), block_map),        # lin2_wt
        pl.BlockSpec((1, 1, H), block_map),         # lin2_b
        pl.BlockSpec((1, H, H), block_map),         # lin_wt
        pl.BlockSpec((1, 1, H), block_map),         # lin_b
    ]
    out_spec = pl.BlockSpec((N_pad, H), const_map)

    scratch = [
        pltpu.VMEM((N_pad, Fh), cd),                # xf = lin1(h)
        pltpu.VMEM((N_pad, Fh), jnp.float32),       # aggr accumulator
    ]

    # Explicit VMEM budget (coarse, padded to (8,128) tiles) with headroom,
    # clamped so the value is valid on v5e / v6e / v7x.
    lanes = lambda n: _round_up(n, 128)
    subl = lambda n: _round_up(n, 8)
    isz = cd.itemsize
    vmem_est = 0
    vmem_est += 4 * subl(N_pad) * lanes(H) * 4                        # h + out
    vmem_est += subl(N_pad) * lanes(Fh) * (isz + 4)                   # scratch
    vmem_est += 2 * subl(TE) * (lanes(1) * 8 + lanes(G) * isz)        # edge cols
    vmem_est += 2 * subl(1) * lanes(TE) * 4                           # dst row
    vmem_est += 2 * (subl(G) + subl(Fh) + 2 * subl(H)) * lanes(Fh) * isz
    vmem_est += 2 * subl(H) * lanes(H) * isz
    vmem_est += 2 * 5 * subl(1) * lanes(max(H, Fh)) * 4               # biases
    vmem_est += 4 * subl(TE) * lanes(N_pad) * 4                       # one-hots
    vmem_limit = int(min(max(2 * vmem_est + (8 << 20), 32 << 20), 56 << 20))

    # Advisory cost estimate for XLA scheduling around the kernel.
    flops = B * 2 * (N_pad * H * Fh
                     + E_pad * (G * Fh + Fh * Fh)
                     + 2 * E_pad * N_pad * Fh
                     + N_pad * Fh * H
                     + N_pad * H * H)
    transcendentals = B * (E_pad * Fh + N_pad * H)
    weight_bytes = isz * B * (G * Fh + Fh * Fh + H * Fh + Fh * H + H * H) \
        + 4 * B * (2 * Fh + 3 * H)
    bytes_accessed = (4 * 2 * N_pad * H
                      + B * E_pad * (G * isz + 12)
                      + weight_bytes)

    kernel = functools.partial(schnet_kernel, cutoff=float(cutoff),
                               smooth=bool(smooth), n_pad=N_pad,
                               compute_dtype=cd)

    out = pl.pallas_call(
        kernel,
        out_shape=jax.ShapeDtypeStruct((N_pad, H), jnp.float32),
        grid_spec=pltpu.PrefetchScalarGridSpec(
            num_scalar_prefetch=0,
            grid=grid,
            in_specs=in_specs,
            out_specs=out_spec,
            scratch_shapes=scratch,
        ),
        compiler_params=pltpu.CompilerParams(
            dimension_semantics=("arbitrary", "arbitrary"),
            vmem_limit_bytes=vmem_limit),
        cost_estimate=pl.CostEstimate(flops=int(flops),
                                      transcendentals=int(transcendentals),
                                      bytes_accessed=int(bytes_accessed)),
    )(h_p, src_col, dst_row, eattr_p, elen_p,
      stacked["w1t"], stacked["b1"], stacked["w2t"], stacked["b2"],
      stacked["lin1_wt"], stacked["lin2_wt"], stacked["lin2_b"],
      stacked["lin_wt"], stacked["lin_b"])

    return out[:N]


# ------------------------- parameter construction ---------------------------

def _xavier(key, fan_in, fan_out):
    bound = float(np.sqrt(6.0 / (fan_in + fan_out)))
    return jax.random.uniform(key, (fan_in, fan_out), jnp.float32, -bound, bound)


def init_schnet_params(key, hidden, num_filters, edge_channels, num_interactions):
    keys = jax.random.split(key, 1 + num_interactions)
    # Embedding(100, hidden, max_norm=10.0): renorm rows to norm <= 10.
    emb = jax.random.normal(keys[0], (100, hidden), jnp.float32) * 0.1
    norms = jnp.linalg.norm(emb, axis=-1, keepdims=True)
    emb = emb * jnp.minimum(1.0, 10.0 / jnp.maximum(norms, 1e-12))

    blocks = []
    for i in range(num_interactions):
        ks = jax.random.split(keys[1 + i], 8)
        p = {
            # edge MLP: Linear(G->F), ShiftedSoftplus, Linear(F->F)
            "w1t": _xavier(ks[0], edge_channels, num_filters),
            "b1": jax.random.normal(ks[1], (1, num_filters), jnp.float32) * 0.01,
            "w2t": _xavier(ks[2], num_filters, num_filters),
            "b2": jax.random.normal(ks[3], (1, num_filters), jnp.float32) * 0.01,
            # CFConv lin1 (no bias), lin2 (bias zero per reset_parameters)
            "lin1_wt": _xavier(ks[4], hidden, num_filters),
            "lin2_wt": _xavier(ks[5], num_filters, hidden),
            "lin2_b": jnp.zeros((1, hidden), jnp.float32),
            # InteractionBlock.lin
            "lin_wt": _xavier(ks[6], hidden, hidden),
            "lin_b": jax.random.normal(ks[7], (1, hidden), jnp.float32) * 0.01,
        }
        blocks.append(p)
    return emb, blocks


# ------------------------------ reference ------------------------------------

def _ref_forward(z, edge_index, edge_length, edge_attr, emb, blocks, cutoff, smooth):
    hp = jax.lax.Precision.HIGHEST
    h = jnp.take(emb, z, axis=0)
    el = edge_length.reshape(-1, 1)
    for p in blocks:
        if smooth:
            C = 0.5 * (jnp.cos(el * (np.pi / cutoff)) + 1.0)
            C = C * (el <= cutoff) * (el >= 0.0)
        else:
            C = (el <= cutoff).astype(jnp.float32)
        t = _shifted_softplus(jnp.dot(edge_attr, p["w1t"], precision=hp) + p["b1"])
        W = (jnp.dot(t, p["w2t"], precision=hp) + p["b2"]) * C
        xf = jnp.dot(h, p["lin1_wt"], precision=hp)
        msg = xf[edge_index[0]] * W
        aggr = jax.ops.segment_sum(msg, edge_index[1], num_segments=h.shape[0])
        y = jnp.dot(aggr, p["lin2_wt"], precision=hp) + p["lin2_b"]
        y = _shifted_softplus(y)
        y = jnp.dot(y, p["lin_wt"], precision=hp) + p["lin_b"]
        h = h + y
    return h


if __name__ == "__main__":
    # Module defaults for feature widths (lane-dense 128), small graph.
    hidden_channels = 128
    num_filters = 128
    edge_channels = 16
    num_interactions = 2
    cutoff = 10.0
    smooth = False

    N, E = 8, 16

    key = jax.random.PRNGKey(0)
    k_z, k_ei, k_el, k_ea, k_p = jax.random.split(key, 5)

    z = jax.random.randint(k_z, (N,), 0, 100, dtype=jnp.int32)
    edge_index = jax.random.randint(k_ei, (2, E), 0, N, dtype=jnp.int32)
    edge_length = jax.random.uniform(k_el, (E, 1), jnp.float32, 0.0, 12.0)
    edge_attr = jax.random.normal(k_ea, (E, edge_channels), jnp.float32)

    emb, blocks = init_schnet_params(k_p, hidden_channels, num_filters,
                                     edge_channels, num_interactions)

    # f32 MXU operands (tight check).
    ref = _ref_forward(z, edge_index, edge_length, edge_attr,
                       emb, blocks, cutoff, smooth)
    out = schnet_encoder_forward(z, edge_index, edge_length, edge_attr,
                                 emb, blocks, cutoff, smooth)
    out = jax.block_until_ready(out)
    np.testing.assert_allclose(np.asarray(out), np.asarray(ref),
                               rtol=2e-4, atol=2e-4)

    # smooth-cutoff branch (tight check).
    ref_s = _ref_forward(z, edge_index, edge_length, edge_attr,
                         emb, blocks, cutoff, True)
    out_s = schnet_encoder_forward(z, edge_index, edge_length, edge_attr,
                                   emb, blocks, cutoff, True)
    out_s = jax.block_until_ready(out_s)
    np.testing.assert_allclose(np.asarray(out_s), np.asarray(ref_s),
                               rtol=2e-4, atol=2e-4)

    # bf16 MXU operands, f32 accumulation (loose check).
    out_bf = schnet_encoder_forward(z, edge_index, edge_length, edge_attr,
                                    emb, blocks, cutoff, smooth,
                                    compute_dtype=jnp.bfloat16)
    out_bf = jax.block_until_ready(out_bf)
    np.testing.assert_allclose(np.asarray(out_bf), np.asarray(ref),
                               rtol=8e-2, atol=8e-2)

    print("KERNEL_OK")
</pallas_src>

<mosaic_0001>
module attributes {stable_mosaic.version = 11 : i64} {
  func.func @schnet_kernel(%arg0: i32, %arg1: i32, %arg2: memref<8x128xf32, #tpu.memory_space<vmem>>, %arg3: memref<512x1xi32, #tpu.memory_space<vmem>>, %arg4: memref<1x512xi32, #tpu.memory_space<vmem>>, %arg5: memref<512x16xf32, #tpu.memory_space<vmem>>, %arg6: memref<512x1xf32, #tpu.memory_space<vmem>>, %arg7: memref<1x16x128xf32, #tpu.memory_space<vmem>>, %arg8: memref<1x1x128xf32, #tpu.memory_space<vmem>>, %arg9: memref<1x128x128xf32, #tpu.memory_space<vmem>>, %arg10: memref<1x1x128xf32, #tpu.memory_space<vmem>>, %arg11: memref<1x128x128xf32, #tpu.memory_space<vmem>>, %arg12: memref<1x128x128xf32, #tpu.memory_space<vmem>>, %arg13: memref<1x1x128xf32, #tpu.memory_space<vmem>>, %arg14: memref<1x128x128xf32, #tpu.memory_space<vmem>>, %arg15: memref<1x1x128xf32, #tpu.memory_space<vmem>>, %arg16: memref<8x128xf32, #tpu.memory_space<vmem>>, %arg17: memref<8x128xf32, #tpu.memory_space<vmem>>, %arg18: memref<8x128xf32, #tpu.memory_space<vmem>>) attributes {dimension_semantics = [#tpu.dimension_semantics<arbitrary>, #tpu.dimension_semantics<arbitrary>], iteration_bounds = array<i64: 2, 1>, scalar_prefetch = 0 : i64, scratch_operands = 2 : i64, tpu.core_type = #tpu.core_type<tc>, window_params = [{pipeline_mode = #tpu.pipeline_mode<synchronous>, transform_indices = @transform_0, window_bounds = array<i64: 8, 128>}, {transform_indices = @transform_1, window_bounds = array<i64: 512, 1>}, {transform_indices = @transform_2, window_bounds = array<i64: 1, 512>}, {transform_indices = @transform_3, window_bounds = array<i64: 512, 16>}, {transform_indices = @transform_4, window_bounds = array<i64: 512, 1>}, {transform_indices = @transform_5, window_bounds = array<i64: 1, 16, 128>}, {transform_indices = @transform_6, window_bounds = array<i64: 1, 1, 128>}, {transform_indices = @transform_7, window_bounds = array<i64: 1, 128, 128>}, {transform_indices = @transform_8, window_bounds = array<i64: 1, 1, 128>}, {transform_indices = @transform_9, window_bounds = array<i64: 1, 128, 128>}, {transform_indices = @transform_10, window_bounds = array<i64: 1, 128, 128>}, {transform_indices = @transform_11, window_bounds = array<i64: 1, 1, 128>}, {transform_indices = @transform_12, window_bounds = array<i64: 1, 128, 128>}, {transform_indices = @transform_13, window_bounds = array<i64: 1, 1, 128>}, {pipeline_mode = #tpu.pipeline_mode<synchronous>, transform_indices = @transform_14, window_bounds = array<i64: 8, 128>}]} {
    %c0_i32 = arith.constant 0 : i32
    %0 = arith.cmpi eq, %arg0, %c0_i32 : i32
    %c0_i32_0 = arith.constant 0 : i32
    %1 = arith.cmpi eq, %arg1, %c0_i32_0 : i32
    %2 = arith.andi %0, %1 : i1
    %3 = arith.extui %2 : i1 to i32
    %c0_i32_1 = arith.constant 0 : i32
    %4 = arith.cmpi ne, %3, %c0_i32_1 : i32
    scf.if %4 {
      %c0_38 = arith.constant 0 : index
      %c0_39 = arith.constant 0 : index
      %62 = vector.load %arg2[%c0_38, %c0_39] : memref<8x128xf32, #tpu.memory_space<vmem>>, vector<8x128xf32>
      %c0_40 = arith.constant 0 : index
      %c0_41 = arith.constant 0 : index
      %63 = vector.load %arg16[%c0_40, %c0_41] : memref<8x128xf32, #tpu.memory_space<vmem>>, vector<8x128xf32>
      tpu.vector_store %arg16[%c0_40, %c0_41], %62 {strides = array<i32>} : memref<8x128xf32, #tpu.memory_space<vmem>>, vector<8x128xf32>,
    } else {
    }
    %c0_i32_2 = arith.constant 0 : i32
    %5 = arith.cmpi eq, %arg1, %c0_i32_2 : i32
    %6 = arith.extui %5 : i1 to i32
    %c0_i32_3 = arith.constant 0 : i32
    %7 = arith.cmpi ne, %6, %c0_i32_3 : i32
    scf.if %7 {
      %c0_38 = arith.constant 0 : index
      %c0_39 = arith.constant 0 : index
      %62 = vector.load %arg16[%c0_38, %c0_39] : memref<8x128xf32, #tpu.memory_space<vmem>>, vector<8x128xf32>
      %c0_40 = arith.constant 0 : index
      %c0_41 = arith.constant 0 : index
      %c0_42 = arith.constant 0 : index
      %63 = vector.load %arg11[%c0_40, %c0_41, %c0_42] : memref<1x128x128xf32, #tpu.memory_space<vmem>>, vector<1x128x128xf32>
      %64 = vector.shape_cast %63 : vector<1x128x128xf32> to vector<128x128xf32>
      %cst_43 = arith.constant dense<0.000000e+00> : vector<8x128xf32>
      %65 = tpu.matmul %62, %64, %cst_43 {dimension_numbers = #tpu.dot_dimension_numbers<[1], [0], [0], [1], [0, 0, 1, 1], [], []>} : vector<8x128xf32>, vector<128x128xf32>, vector<8x128xf32> -> vector<8x128xf32>
      %c0_44 = arith.constant 0 : index
      %c0_45 = arith.constant 0 : index
      %66 = vector.load %arg17[%c0_44, %c0_45] : memref<8x128xf32, #tpu.memory_space<vmem>>, vector<8x128xf32>
      tpu.vector_store %arg17[%c0_44, %c0_45], %65 {strides = array<i32>} : memref<8x128xf32, #tpu.memory_space<vmem>>, vector<8x128xf32>,
      %cst_46 = arith.constant 0.000000e+00 : f32
      %67 = vector.broadcast %cst_46 : f32 to vector<8x128xf32>
      %c0_47 = arith.constant 0 : index
      %c0_48 = arith.constant 0 : index
      %68 = vector.load %arg18[%c0_47, %c0_48] : memref<8x128xf32, #tpu.memory_space<vmem>>, vector<8x128xf32>
      tpu.vector_store %arg18[%c0_47, %c0_48], %67 {strides = array<i32>} : memref<8x128xf32, #tpu.memory_space<vmem>>, vector<8x128xf32>,
    } else {
    }
    %c0 = arith.constant 0 : index
    %c0_4 = arith.constant 0 : index
    %8 = vector.load %arg6[%c0, %c0_4] : memref<512x1xf32, #tpu.memory_space<vmem>>, vector<512x1xf32>
    %cst = arith.constant 1.000000e+01 : f32
    %9 = vector.broadcast %cst : f32 to vector<512x1xf32>
    %10 = arith.cmpf ole, %8, %9 : vector<512x1xf32>
    %11 = arith.extui %10 : vector<512x1xi1> to vector<512x1xi32>
    %12 = arith.sitofp %11 : vector<512x1xi32> to vector<512x1xf32>
    %c0_5 = arith.constant 0 : index
    %c0_6 = arith.constant 0 : index
    %13 = vector.load %arg5[%c0_5, %c0_6] : memref<512x16xf32, #tpu.memory_space<vmem>>, vector<512x16xf32>
    %c0_7 = arith.constant 0 : index
    %c0_8 = arith.constant 0 : index
    %c0_9 = arith.constant 0 : index
    %14 = vector.load %arg7[%c0_7, %c0_8, %c0_9] : memref<1x16x128xf32, #tpu.memory_space<vmem>>, vector<1x16x128xf32>
    %15 = vector.shape_cast %14 : vector<1x16x128xf32> to vector<16x128xf32>
    %cst_10 = arith.constant dense<0.000000e+00> : vector<512x128xf32>
    %16 = tpu.matmul %13, %15, %cst_10 {dimension_numbers = #tpu.dot_dimension_numbers<[1], [0], [0], [1], [0, 0, 1, 1], [], []>} : vector<512x16xf32>, vector<16x128xf32>, vector<512x128xf32> -> vector<512x128xf32>
    %c0_11 = arith.constant 0 : index
    %c0_12 = arith.constant 0 : index
    %c0_13 = arith.constant 0 : index
    %17 = vector.load %arg8[%c0_11, %c0_12, %c0_13] : memref<1x1x128xf32, #tpu.memory_space<vmem>>, vector<1x1x128xf32>
    %18 = vector.shape_cast %17 : vector<1x1x128xf32> to vector<1x128xf32>
    %19 = vector.broadcast %18 : vector<1x128xf32> to vector<512x128xf32>
    %20 = arith.addf %16, %19 : vector<512x128xf32>
    %cst_14 = arith.constant 0.000000e+00 : f32
    %21 = vector.broadcast %cst_14 : f32 to vector<512x128xf32>
    %22 = arith.maximumf %20, %21 : vector<512x128xf32>
    %23 = math.absf %20 : vector<512x128xf32>
    %cst_15 = arith.constant 0.000000e+00 : f32
    %24 = vector.broadcast %cst_15 : f32 to vector<512x128xf32>
    %25 = arith.subf %24, %23 : vector<512x128xf32>
    %26 = math.exp %25 : vector<512x128xf32>
    %27 = math.log1p %26 : vector<512x128xf32>
    %28 = arith.addf %22, %27 : vector<512x128xf32>
    %cst_16 = arith.constant 0.693147182 : f32
    %29 = vector.broadcast %cst_16 : f32 to vector<512x128xf32>
    %30 = arith.subf %28, %29 : vector<512x128xf32>
    %c0_17 = arith.constant 0 : index
    %c0_18 = arith.constant 0 : index
    %c0_19 = arith.constant 0 : index
    %31 = vector.load %arg9[%c0_17, %c0_18, %c0_19] : memref<1x128x128xf32, #tpu.memory_space<vmem>>, vector<1x128x128xf32>
    %32 = vector.shape_cast %31 : vector<1x128x128xf32> to vector<128x128xf32>
    %cst_20 = arith.constant dense<0.000000e+00> : vector<512x128xf32>
    %33 = tpu.matmul %30, %32, %cst_20 {dimension_numbers = #tpu.dot_dimension_numbers<[1], [0], [0], [1], [0, 0, 1, 1], [], []>} : vector<512x128xf32>, vector<128x128xf32>, vector<512x128xf32> -> vector<512x128xf32>
    %c0_21 = arith.constant 0 : index
    %c0_22 = arith.constant 0 : index
    %c0_23 = arith.constant 0 : index
    %34 = vector.load %arg10[%c0_21, %c0_22, %c0_23] : memref<1x1x128xf32, #tpu.memory_space<vmem>>, vector<1x1x128xf32>
    %35 = vector.shape_cast %34 : vector<1x1x128xf32> to vector<1x128xf32>
    %36 = vector.broadcast %35 : vector<1x128xf32> to vector<512x128xf32>
    %37 = arith.addf %33, %36 : vector<512x128xf32>
    %38 = vector.broadcast %12 : vector<512x1xf32> to vector<512x128xf32>
    %39 = arith.mulf %37, %38 : vector<512x128xf32>
    %40 = tpu.iota {dimensions = array<i32: 1>} : vector<512x8xi32>
    %c0_24 = arith.constant 0 : index
    %c0_25 = arith.constant 0 : index
    %41 = vector.load %arg3[%c0_24, %c0_25] : memref<512x1xi32, #tpu.memory_space<vmem>>, vector<512x1xi32>
    %42 = vector.broadcast %41 : vector<512x1xi32> to vector<512x8xi32>
    %43 = arith.cmpi eq, %40, %42 : vector<512x8xi32>
    %44 = arith.extui %43 : vector<512x8xi1> to vector<512x8xi32>
    %45 = arith.sitofp %44 : vector<512x8xi32> to vector<512x8xf32>
    %c0_26 = arith.constant 0 : index
    %c0_27 = arith.constant 0 : index
    %46 = vector.load %arg17[%c0_26, %c0_27] : memref<8x128xf32, #tpu.memory_space<vmem>>, vector<8x128xf32>
    %cst_28 = arith.constant dense<0.000000e+00> : vector<512x128xf32>
    %47 = tpu.matmul %45, %46, %cst_28 {dimension_numbers = #tpu.dot_dimension_numbers<[1], [0], [0], [1], [0, 0, 1, 1], [], []>} : vector<512x8xf32>, vector<8x128xf32>, vector<512x128xf32> -> vector<512x128xf32>
    %48 = arith.mulf %47, %39 : vector<512x128xf32>
    %49 = tpu.iota {dimensions = array<i32: 0>} : vector<8x512xi32>
    %c0_29 = arith.constant 0 : index
    %c0_30 = arith.constant 0 : index
    %50 = vector.load %arg4[%c0_29, %c0_30] : memref<1x512xi32, #tpu.memory_space<vmem>>, vector<1x512xi32>
    %51 = vector.broadcast %50 : vector<1x512xi32> to vector<8x512xi32>
    %52 = arith.cmpi eq, %49, %51 : vector<8x512xi32>
    %53 = arith.extui %52 : vector<8x512xi1> to vector<8x512xi32>
    %54 = arith.sitofp %53 : vector<8x512xi32> to vector<8x512xf32>
    %c0_31 = arith.constant 0 : index
    %c0_32 = arith.constant 0 : index
    %55 = vector.load %arg18[%c0_31, %c0_32] : memref<8x128xf32, #tpu.memory_space<vmem>>, vector<8x128xf32>
    %cst_33 = arith.constant dense<0.000000e+00> : vector<8x128xf32>
    %56 = tpu.matmul %54, %48, %cst_33 {dimension_numbers = #tpu.dot_dimension_numbers<[1], [0], [0], [1], [0, 0, 1, 1], [], []>} : vector<8x512xf32>, vector<512x128xf32>, vector<8x128xf32> -> vector<8x128xf32>
    %57 = arith.addf %55, %56 : vector<8x128xf32>
    %c0_34 = arith.constant 0 : index
    %c0_35 = arith.constant 0 : index
    %58 = vector.load %arg18[%c0_34, %c0_35] : memref<8x128xf32, #tpu.memory_space<vmem>>, vector<8x128xf32>
    tpu.vector_store %arg18[%c0_34, %c0_35], %57 {strides = array<i32>} : memref<8x128xf32, #tpu.memory_space<vmem>>, vector<8x128xf32>,
    %c0_i32_36 = arith.constant 0 : i32
    %59 = arith.cmpi eq, %arg1, %c0_i32_36 : i32
    %60 = arith.extui %59 : i1 to i32
    %c0_i32_37 = arith.constant 0 : i32
    %61 = arith.cmpi ne, %60, %c0_i32_37 : i32
    scf.if %61 {
      %c0_38 = arith.constant 0 : index
      %c0_39 = arith.constant 0 : index
      %62 = vector.load %arg18[%c0_38, %c0_39] : memref<8x128xf32, #tpu.memory_space<vmem>>, vector<8x128xf32>
      %c0_40 = arith.constant 0 : index
      %c0_41 = arith.constant 0 : index
      %c0_42 = arith.constant 0 : index
      %63 = vector.load %arg12[%c0_40, %c0_41, %c0_42] : memref<1x128x128xf32, #tpu.memory_space<vmem>>, vector<1x128x128xf32>
      %64 = vector.shape_cast %63 : vector<1x128x128xf32> to vector<128x128xf32>
      %cst_43 = arith.constant dense<0.000000e+00> : vector<8x128xf32>
      %65 = tpu.matmul %62, %64, %cst_43 {dimension_numbers = #tpu.dot_dimension_numbers<[1], [0], [0], [1], [0, 0, 1, 1], [], []>} : vector<8x128xf32>, vector<128x128xf32>, vector<8x128xf32> -> vector<8x128xf32>
      %c0_44 = arith.constant 0 : index
      %c0_45 = arith.constant 0 : index
      %c0_46 = arith.constant 0 : index
      %66 = vector.load %arg13[%c0_44, %c0_45, %c0_46] : memref<1x1x128xf32, #tpu.memory_space<vmem>>, vector<1x1x128xf32>
      %67 = vector.shape_cast %66 : vector<1x1x128xf32> to vector<1x128xf32>
      %68 = vector.broadcast %67 : vector<1x128xf32> to vector<8x128xf32>
      %69 = arith.addf %65, %68 : vector<8x128xf32>
      %cst_47 = arith.constant 0.000000e+00 : f32
      %70 = vector.broadcast %cst_47 : f32 to vector<8x128xf32>
      %71 = arith.maximumf %69, %70 : vector<8x128xf32>
      %72 = math.absf %69 : vector<8x128xf32>
      %cst_48 = arith.constant 0.000000e+00 : f32
      %73 = vector.broadcast %cst_48 : f32 to vector<8x128xf32>
      %74 = arith.subf %73, %72 : vector<8x128xf32>
      %75 = math.exp %74 : vector<8x128xf32>
      %76 = math.log1p %75 : vector<8x128xf32>
      %77 = arith.addf %71, %76 : vector<8x128xf32>
      %cst_49 = arith.constant 0.693147182 : f32
      %78 = vector.broadcast %cst_49 : f32 to vector<8x128xf32>
      %79 = arith.subf %77, %78 : vector<8x128xf32>
      %c0_50 = arith.constant 0 : index
      %c0_51 = arith.constant 0 : index
      %c0_52 = arith.constant 0 : index
      %80 = vector.load %arg14[%c0_50, %c0_51, %c0_52] : memref<1x128x128xf32, #tpu.memory_space<vmem>>, vector<1x128x128xf32>
      %81 = vector.shape_cast %80 : vector<1x128x128xf32> to vector<128x128xf32>
      %cst_53 = arith.constant dense<0.000000e+00> : vector<8x128xf32>
      %82 = tpu.matmul %79, %81, %cst_53 {dimension_numbers = #tpu.dot_dimension_numbers<[1], [0], [0], [1], [0, 0, 1, 1], [], []>} : vector<8x128xf32>, vector<128x128xf32>, vector<8x128xf32> -> vector<8x128xf32>
      %c0_54 = arith.constant 0 : index
      %c0_55 = arith.constant 0 : index
      %c0_56 = arith.constant 0 : index
      %83 = vector.load %arg15[%c0_54, %c0_55, %c0_56] : memref<1x1x128xf32, #tpu.memory_space<vmem>>, vector<1x1x128xf32>
      %84 = vector.shape_cast %83 : vector<1x1x128xf32> to vector<1x128xf32>
      %85 = vector.broadcast %84 : vector<1x128xf32> to vector<8x128xf32>
      %86 = arith.addf %82, %85 : vector<8x128xf32>
      %c0_57 = arith.constant 0 : index
      %c0_58 = arith.constant 0 : index
      %87 = vector.load %arg16[%c0_57, %c0_58] : memref<8x128xf32, #tpu.memory_space<vmem>>, vector<8x128xf32>
      %88 = arith.addf %87, %86 : vector<8x128xf32>
      %c0_59 = arith.constant 0 : index
      %c0_60 = arith.constant 0 : index
      %89 = vector.load %arg16[%c0_59, %c0_60] : memref<8x128xf32, #tpu.memory_space<vmem>>, vector<8x128xf32>
      tpu.vector_store %arg16[%c0_59, %c0_60], %88 {strides = array<i32>} : memref<8x128xf32, #tpu.memory_space<vmem>>, vector<8x128xf32>,
    } else {
    }
    return
  }
  func.func @transform_0(%arg0: i32, %arg1: i32) -> (i32, i32) {
    %c0_i32 = arith.constant 0 : i32
    %c0_i32_0 = arith.constant 0 : i32
    %c0_i32_1 = arith.constant 0 : i32
    return %c0_i32, %c0_i32_0 : i32, i32
  }
  func.func @transform_1(%arg0: i32, %arg1: i32) -> (i32, i32) {
    %c0_i32 = arith.constant 0 : i32
    %c0_i32_0 = arith.constant 0 : i32
    return %arg1, %c0_i32 : i32, i32
  }
  func.func @transform_2(%arg0: i32, %arg1: i32) -> (i32, i32) {
    %c0_i32 = arith.constant 0 : i32
    %c0_i32_0 = arith.constant 0 : i32
    return %c0_i32, %arg1 : i32, i32
  }
  func.func @transform_3(%arg0: i32, %arg1: i32) -> (i32, i32) {
    %c0_i32 = arith.constant 0 : i32
    %c0_i32_0 = arith.constant 0 : i32
    return %arg1, %c0_i32 : i32, i32
  }
  func.func @transform_4(%arg0: i32, %arg1: i32) -> (i32, i32) {
    %c0_i32 = arith.constant 0 : i32
    %c0_i32_0 = arith.constant 0 : i32
    return %arg1, %c0_i32 : i32, i32
  }
  func.func @transform_5(%arg0: i32, %arg1: i32) -> (i32, i32, i32) {
    %c0_i32 = arith.constant 0 : i32
    %c0_i32_0 = arith.constant 0 : i32
    %c0_i32_1 = arith.constant 0 : i32
    return %arg0, %c0_i32, %c0_i32_0 : i32, i32, i32
  }
  func.func @transform_6(%arg0: i32, %arg1: i32) -> (i32, i32, i32) {
    %c0_i32 = arith.constant 0 : i32
    %c0_i32_0 = arith.constant 0 : i32
    %c0_i32_1 = arith.constant 0 : i32
    return %arg0, %c0_i32, %c0_i32_0 : i32, i32, i32
  }
  func.func @transform_7(%arg0: i32, %arg1: i32) -> (i32, i32, i32) {
    %c0_i32 = arith.constant 0 : i32
    %c0_i32_0 = arith.constant 0 : i32
    %c0_i32_1 = arith.constant 0 : i32
    return %arg0, %c0_i32, %c0_i32_0 : i32, i32, i32
  }
  func.func @transform_8(%arg0: i32, %arg1: i32) -> (i32, i32, i32) {
    %c0_i32 = arith.constant 0 : i32
    %c0_i32_0 = arith.constant 0 : i32
    %c0_i32_1 = arith.constant 0 : i32
    return %arg0, %c0_i32, %c0_i32_0 : i32, i32, i32
  }
  func.func @transform_9(%arg0: i32, %arg1: i32) -> (i32, i32, i32) {
    %c0_i32 = arith.constant 0 : i32
    %c0_i32_0 = arith.constant 0 : i32
    %c0_i32_1 = arith.constant 0 : i32
    return %arg0, %c0_i32, %c0_i32_0 : i32, i32, i32
  }
  func.func @transform_10(%arg0: i32, %arg1: i32) -> (i32, i32, i32) {
    %c0_i32 = arith.constant 0 : i32
    %c0_i32_0 = arith.constant 0 : i32
    %c0_i32_1 = arith.constant 0 : i32
    return %arg0, %c0_i32, %c0_i32_0 : i32, i32, i32
  }
  func.func @transform_11(%arg0: i32, %arg1: i32) -> (i32, i32, i32) {
    %c0_i32 = arith.constant 0 : i32
    %c0_i32_0 = arith.constant 0 : i32
    %c0_i32_1 = arith.constant 0 : i32
    return %arg0, %c0_i32, %c0_i32_0 : i32, i32, i32
  }
  func.func @transform_12(%arg0: i32, %arg1: i32) -> (i32, i32, i32) {
    %c0_i32 = arith.constant 0 : i32
    %c0_i32_0 = arith.constant 0 : i32
    %c0_i32_1 = arith.constant 0 : i32
    return %arg0, %c0_i32, %c0_i32_0 : i32, i32, i32
  }
  func.func @transform_13(%arg0: i32, %arg1: i32) -> (i32, i32, i32) {
    %c0_i32 = arith.constant 0 : i32
    %c0_i32_0 = arith.constant 0 : i32
    %c0_i32_1 = arith.constant 0 : i32
    return %arg0, %c0_i32, %c0_i32_0 : i32, i32, i32
  }
  func.func @transform_14(%arg0: i32, %arg1: i32) -> (i32, i32) {
    %c0_i32 = arith.constant 0 : i32
    %c0_i32_0 = arith.constant 0 : i32
    %c0_i32_1 = arith.constant 0 : i32
    return %c0_i32, %c0_i32_0 : i32, i32
  }
}

</mosaic_0001>

<bundles_post_ra>
// kernel: tpu_custom_call.1
= control target key start
LH: loop header
LB: loop body
LE: loop exit
PB: predicated region body
PF: predicated region fallthrough
CT: control target
= control target key end

     0   :  { %s8225_s0 = inlined_call_operand.vmem [shape: f32[8,128], index: 0, kind: input, shape index: {}]   ;;  %s8226_s1 = inlined_call_operand.vmem [shape: s32[512,1], index: 1, kind: input, shape index: {}]   ;;  %s8227_s2 = inlined_call_operand.vmem [shape: s32[1,512], index: 2, kind: input, shape index: {}]   ;;  %s8228_s3 = inlined_call_operand.vmem [shape: f32[512,16], index: 3, kind: input, shape index: {}]   ;;  %s8229_s4 = inlined_call_operand.vmem [shape: f32[512,1], index: 4, kind: input, shape index: {}]   ;;  %s8230_s5 = inlined_call_operand.vmem [shape: f32[2,16,128], index: 5, kind: input, shape index: {}]   ;;  %s8231_s6 = inlined_call_operand.vmem [shape: f32[2,1,128], index: 6, kind: input, shape index: {}]   ;;  %s8232_s7 = inlined_call_operand.vmem [shape: f32[2,128,128], index: 7, kind: input, shape index: {}]   ;;  %s8233_s8 = inlined_call_operand.vmem [shape: f32[2,1,128], index: 8, kind: input, shape index: {}]   ;;  %s8234_s9 = inlined_call_operand.vmem [shape: f32[2,128,128], index: 9, kind: input, shape index: {}]   ;;  %s8235_s10 = inlined_call_operand.vmem [shape: f32[2,128,128], index: 10, kind: input, shape index: {}]   ;;  %s8236_s11 = inlined_call_operand.vmem [shape: f32[2,1,128], index: 11, kind: input, shape index: {}]   ;;  %s8237_s12 = inlined_call_operand.vmem [shape: f32[2,128,128], index: 12, kind: input, shape index: {}]   ;;  %s8238_s13 = inlined_call_operand.vmem [shape: f32[2,1,128], index: 13, kind: input, shape index: {}]   ;;  %s8239_s14 = inlined_call_operand.hbm [shape: f32[8,128], index: 14, kind: output, shape index: {}]  }
   0x1   :  { %8254 = sst [smem:[#allocation50_spill]] %s8230_s5 }
   0x2   :  { %8255 = sst [smem:[#allocation51_spill]] %s8231_s6 }
   0x3   :  { %8256 = sst [smem:[#allocation52_spill]] %s8232_s7 }
   0x4   :  { %8257 = sst [smem:[#allocation53_spill]] %s8233_s8 }
   0x5   :  { %8258 = sst [smem:[#allocation54_spill]] %s8239_s14 }
   0x6   :  { %19 = vsyncpa [#allocation5], 0  ;;  %s5400_s29 = smov 0   ;;  %s5402_s30 = smov 0  }
   0x7   :  { %s5404_s15 = smov 0  }
   0x8 LB: > { %8259 = sst [smem:[#allocation7_spill]] %s5315_s30  ;;  %s37_s17 = sadd.s32 1, %s5315_s30  ;;  %s5319_s15 = sphi %s5404_s15, %s25_s15   ;;  %s5315_s30 = sphi %s5402_s30, %s8434_s30   ;;  %s5311_s29 = sphi %s5400_s29, %s8433_s29  }
   0x9   : > { %8260 = sst [smem:[#allocation8_spill]] %s5319_s15  ;;  %p39_p0 = scmp.ge.s32.totalorder %s37_s17, 2 }
   0xa   : > { %p4429_p1 = scmp.ge.s32.totalorder %s5319_s15, 1  ;;  %p535_p2 = scmp.lt.s32.totalorder %s5319_s15, 3 }
   0xb   : > { %s8436_s17 = smov (%p39_p0, %s37_s17), 0 }
   0xc   : > { %8261 = sst [smem:[#allocation9_spill]] %s8436_s17  ;;  %p536_p3 = pnand %p4429_p1, %p535_p2 }
   0xe   : > { %539 = sbr.rel (%p536_p3) target bundleno = 1261 (0x4ed), region = 76 }
  0x13   : > { %p650_p4 = scmp.lt.s32.totalorder %s5311_s29, 1  ;;  %p687_p5 = scmp.eq.s32.totalorder %s5311_s29, 0 }
  0x14   : > { %s8262_s6 = sld [smem:[#allocation51_spill]]  ;;  %v693_v0 = vld [vmem:[%s8225_s0] sm:$0xff] (%p687_p5) }
  0x15   : > { %s8438_s29 = smov (!%p650_p4, %s5311_s29), 1  ;;  %s8263_s5 = sld [smem:[#allocation50_spill]]  ;;  %694 = vst [vmem:[#allocation4] sm:$0xff] (%p687_p5), %v693_v0 }
  0x16   : > { %s4774_s18 = sshll.u32 %s8438_s29, 4  ;;  %s4775_s25 = sshll.u32 %s8438_s29, 7 }
  0x17   : > { %s8264_s7 = sld [smem:[#allocation52_spill]]  ;;  %s5446_s19 = scalar_lea.vmem %s8234_s9, %s4775_s25 }
  0x18   : > { %s8265_s8 = sld [smem:[#allocation53_spill]]  ;;  %s678_s26 = scalar_lea.vmem %s8236_s11, %s8438_s29 }
  0x19   : > { %s5460_s16 = scalar_lea.vmem %s8237_s12, %s4775_s25  ;;  %s686_s14 = scalar_lea.vmem %s8238_s13, %s8438_s29 }
  0x1a   : > { %s5426_s21 = scalar_lea.vmem %s8262_s6, %s8438_s29  ;;  %692 = sbr.rel (!%p687_p5) target bundleno = 31 (0x1f), region = 80 }
  0x1b   : > { %s654_s24 = scalar_lea.vmem %s8263_s5, %s4774_s18  ;;  %s5451_s18 = scalar_lea.vmem %s8235_s10, %s4775_s25 }
  0x1d   : > { %s5435_s28 = scalar_lea.vmem %s8264_s7, %s4775_s25 }
  0x1e   : > { %s5441_s30 = scalar_lea.vmem %s8265_s8, %s8438_s29 }
  0x1f PF: > { %v714_v1 = vld [vmem:[%s5446_s19 + $0x78] sm:$0xff]  ;;  %v5470_v2 = vld [vmem:[%s654_s24 + $0x8] sm:$0xff]  ;;  %v3116_v3 = vld [vmem:[%s8226_s1 + $0x60] sm:$0xff]  ;;  %v5321_v4 = vmov 0   ;;  %vm1063_vm0 = vcmask 130048   ;;  %vm3553_vm2 = vcmask 64512  }
  0x20   : > { %4835 = vset.pattern.permute.xlu2 %v5321_v4  ;;  %4834 = vset.pattern.permute.xlu1 %v5321_v4  ;;  %v3114_v5 = vld [vmem:[%s8226_s1 + $0x50] sm:$0xff]  ;;  %v3112_v6 = vld [vmem:[%s8226_s1 + $0x40] sm:$0xff]  ;;  %v712_v10 = vld [vmem:[%s5446_s19 + $0x68] sm:$0xff]  ;;  %s8430_s6 = sld [smem:[#allocation54_spill]] }
  0x21   : > { %4833 = vset.pattern.permute.xlu0 %v5321_v4  ;;  %715 = vmatpush.msra.mxu0 %v714_v1  ;;  %v713_v7 = vld [vmem:[%s5446_s19 + $0x70] sm:$0xff]  ;;  %v5482_v8 = vld [vmem:[%s654_s24] sm:$0xff]  ;;  %v710_v12 = vld [vmem:[%s5446_s19 + $0x58] sm:$0xff]  ;;  %s5324_s24 = smov [#allocation4]  }
  0x22   : > { %4780 = vmatpush.msra.mxu1 %v5470_v2  ;;  %3205 = vperm.xlu2 %4835, %v3116_v3   ;;  %v1001_v9 = vld [vmem:[%s8228_s3 + $0x40] sm:$0xff]  ;;  %v3117_v13 = vld [vmem:[%s8226_s1 + $0x68] sm:$0xff]  ;;  %v3115_v14 = vld [vmem:[%s8226_s1 + $0x58] sm:$0xff]  ;;  %s4230_s27 = sshll.u32 %s5324_s24, 4  ;;  %s4231_s27 = int_to_ptr.vmem [resolvable:$true] %s4230_s27 }
  0x23   : > { %3199 = vperm.xlu1 %4834, %v3114_v5   ;;  %3193 = vperm.xlu0 %4833, %v3112_v6   ;;  %v711_v11 = vld [vmem:[%s5446_s19 + $0x60] sm:$0xff]  ;;  %v3113_v15 = vld [vmem:[%s8226_s1 + $0x48] sm:$0xff]  ;;  %v709_v16 = vld [vmem:[%s5446_s19 + $0x50] sm:$0xff] }
  0x24   : > { %716 = vmatpush.msra.mxu0 %v713_v7  ;;  %4781 = vmatpush.msra.mxu1 %v5482_v8  ;;  %v1002_v17 = vld [vmem:[%s8228_s3 + $0x48] sm:$0xff]  ;;  %v707_v19 = vld [vmem:[%s5446_s19 + $0x40] sm:$0xff]  ;;  %v706_v20 = vld [vmem:[%s5446_s19 + $0x38] sm:$0xff] }
  0x25   : > { %4513 = vmatmul.msk.f32.vlgmr.msra.gmra.mxu1 %vm1063_vm0, %v1001_v9  ;;  %v708_v18 = vld [vmem:[%s5446_s19 + $0x48] sm:$0xff]  ;;  %v3120_v21 = vld [vmem:[%s8226_s1 + $0x80] sm:$0xff]  ;;  %v3119_v22 = vld [vmem:[%s8226_s1 + $0x78] sm:$0xff] }
  0x26   : > { %717 = vmatpush.msra.mxu0 %v712_v10  ;;  %v3118_v23 = vld [vmem:[%s8226_s1 + $0x70] sm:$0xff]  ;;  %v704_v26 = vld [vmem:[%s5446_s19 + $0x28] sm:$0xff]  ;;  %v703_v27 = vld [vmem:[%s5446_s19 + $0x20] sm:$0xff]  ;;  %s4232_s5 = sshll.u32 %s8430_s6, 4  ;;  %s4233_s5 = int_to_ptr.hbm [resolvable:$true] %s4232_s5 }
  0x27   : > { %v705_v24 = vld [vmem:[%s5446_s19 + $0x30] sm:$0xff]  ;;  %v702_v28 = vld [vmem:[%s5446_s19 + $0x18] sm:$0xff]  ;;  %v3121_v31 = vld [vmem:[%s8226_s1 + $0x88] sm:$0xff] }
  0x28   : > { %718 = vmatpush.msra.mxu0 %v711_v11  ;;  %v1003_v25 = vld [vmem:[%s8228_s3 + $0x50] sm:$0xff]  ;;  %v3123_v29 = vld [vmem:[%s8226_s1 + $0x98] sm:$0xff]  ;;  %v700_v34 = vld [vmem:[%s5446_s19 + $0x8] sm:$0xff] }
  0x29   : > { %v3122_v30 = vld [vmem:[%s8226_s1 + $0x90] sm:$0xff]  ;;  %v1004_v33 = vld [vmem:[%s8228_s3 + $0x58] sm:$0xff]  ;;  %v699_v35 = vld [vmem:[%s5446_s19] sm:$0xff] }
  0x2a   : > { %719 = vmatpush.msra.mxu0 %v710_v12  ;;  %3208 = vperm.xlu2 %4835, %v3117_v13   ;;  %v701_v32 = vld [vmem:[%s5446_s19 + $0x10] sm:$0xff]  ;;  %v698_v36 = vld [vmem:[#allocation4] sm:$0xff]  ;;  %v3125_v38 = vld [vmem:[%s8226_s1 + $0xa8] sm:$0xff] }
  0x2b   : > { %3202 = vperm.xlu1 %4834, %v3115_v14   ;;  %3196 = vperm.xlu0 %4833, %v3113_v15   ;;  %v3126_v37 = vld [vmem:[%s8226_s1 + $0xb0] sm:$0xff]  ;;  %v3124_v39 = vld [vmem:[%s8226_s1 + $0xa0] sm:$0xff]  ;;  %v3129_v42 = vld [vmem:[%s8226_s1 + $0xc8] sm:$0xff] }
  0x2c   : > { %720 = vmatpush.msra.mxu0 %v709_v16  ;;  %v1005_v40 = vld [vmem:[%s8228_s3 + $0x60] sm:$0xff]  ;;  %v3127_v44 = vld [vmem:[%s8226_s1 + $0xb8] sm:$0xff]  ;;  %v1006_v45 = vld [vmem:[%s8228_s3 + $0x68] sm:$0xff] }
  0x2d   : > { %4514 = vmatmul.msk.f32.gmra.mxu1 %vm1063_vm0, %v1002_v17  ;;  %v993_v41 = vld [vmem:[%s8228_s3] sm:$0xff]  ;;  %v994_v46 = vld [vmem:[%s8228_s3 + $0x8] sm:$0xff]  ;;  %v3131_v48 = vld [vmem:[%s8226_s1 + $0xd8] sm:$0xff] }
  0x2e   : > { %721 = vmatpush.msra.mxu0 %v708_v18  ;;  %v3128_v43 = vld [vmem:[%s8226_s1 + $0xc0] sm:$0xff]  ;;  %v3130_v49 = vld [vmem:[%s8226_s1 + $0xd0] sm:$0xff]  ;;  %v3135_v52 = vld [vmem:[%s8226_s1 + $0xf8] sm:$0xff] }
  0x2f   : > { %v3132_v47 = vld [vmem:[%s8226_s1 + $0xe0] sm:$0xff]  ;;  %v1007_v50 = vld [vmem:[%s8228_s3 + $0x70] sm:$0xff]  ;;  %v3133_v54 = vld [vmem:[%s8226_s1 + $0xe8] sm:$0xff] }
  0x30   : > { %722 = vmatpush.msra.mxu0 %v707_v19  ;;  %v995_v51 = vld [vmem:[%s8228_s3 + $0x10] sm:$0xff]  ;;  %v1008_v55 = vld [vmem:[%s8228_s3 + $0x78] sm:$0xff]  ;;  %v3137_v58 = vld [vmem:[%s8226_s1 + $0x108] sm:$0xff] }
  0x31   : > { %v3134_v53 = vld [vmem:[%s8226_s1 + $0xf0] sm:$0xff]  ;;  %v996_v56 = vld [vmem:[%s8228_s3 + $0x18] sm:$0xff]  ;;  %v3136_v59 = vld [vmem:[%s8226_s1 + $0x100] sm:$0xff] }
  0x32   : > { %723 = vmatpush.msra.mxu0 %v706_v20  ;;  %3217 = vperm.xlu2 %4835, %v3120_v21   ;;  %v3138_v57 = vld [vmem:[%s8226_s1 + $0x110] sm:$0xff]  ;;  %v1009_v60 = vld [vmem:[%s8228_s3 + $0x80] sm:$0xff]  ;;  %v3141_v62 = vld [vmem:[%s8226_s1 + $0x128] sm:$0xff] }
  0x33   : > { %3214 = vperm.xlu1 %4834, %v3119_v22   ;;  %3211 = vperm.xlu0 %4833, %v3118_v23   ;;  %v997_v61 = vld [vmem:[%s8228_s3 + $0x20] sm:$0xff]  ;;  %v3139_v0 = vld [vmem:[%s8226_s1 + $0x118] sm:$0xff]  ;;  %v1010_v1 = vld [vmem:[%s8228_s3 + $0x88] sm:$0xff] }
  0x34   : > { %724 = vmatpush.msra.mxu0 %v705_v24  ;;  %v3140_v63 = vld [vmem:[%s8226_s1 + $0x120] sm:$0xff]  ;;  %v3143_v4 = vld [vmem:[%s8226_s1 + $0x138] sm:$0xff]  ;;  %v3142_v5 = vld [vmem:[%s8226_s1 + $0x130] sm:$0xff] }
  0x35   : > { %4515 = vmatmul.msk.f32.gmra.mxu1 %vm1063_vm0, %v1003_v25  ;;  %v3144_v3 = vld [vmem:[%s8226_s1 + $0x140] sm:$0xff]  ;;  %v1011_v6 = vld [vmem:[%s8228_s3 + $0x90] sm:$0xff]  ;;  %v3145_v10 = vld [vmem:[%s8226_s1 + $0x148] sm:$0xff] }
  0x36   : > { %725 = vmatpush.msra.mxu0 %v704_v26  ;;  %v999_v7 = vld [vmem:[%s8228_s3 + $0x30] sm:$0xff]  ;;  %v1012_v11 = vld [vmem:[%s8228_s3 + $0x98] sm:$0xff]  ;;  %v3149_v14 = vld [vmem:[%s8226_s1 + $0x168] sm:$0xff] }
  0x37   : > { %v3146_v9 = vld [vmem:[%s8226_s1 + $0x150] sm:$0xff]  ;;  %v1000_v12 = vld [vmem:[%s8228_s3 + $0x38] sm:$0xff]  ;;  %v3148_v15 = vld [vmem:[%s8226_s1 + $0x160] sm:$0xff] }
  0x38   : > { %726 = vmatpush.msra.mxu0 %v703_v27  ;;  %v3150_v13 = vld [vmem:[%s8226_s1 + $0x170] sm:$0xff]  ;;  %v1013_v16 = vld [vmem:[%s8228_s3 + $0xa0] sm:$0xff]  ;;  %v2504_v17 = vld [vmem:[%s5435_s28 + $0x78] sm:$0xff] }
  0x39   : > { %4782 = vmatpush.msra.mxu2 %v2504_v17  ;;  %v3153_v18 = vld [vmem:[%s8226_s1 + $0x188] sm:$0xff]  ;;  %v2503_v19 = vld [vmem:[%s5435_s28 + $0x70] sm:$0xff]  ;;  %v3152_v20 = vld [vmem:[%s8226_s1 + $0x180] sm:$0xff] }
  0x3a   : > { %727 = vmatpush.msra.mxu0 %v702_v28  ;;  %3226 = vperm.xlu2 %4835, %v3123_v29   ;;  %v3151_v21 = vld [vmem:[%s8226_s1 + $0x178] sm:$0xff]  ;;  %v2502_v22 = vld [vmem:[%s5435_s28 + $0x68] sm:$0xff]  ;;  %v2501_v24 = vld [vmem:[%s5435_s28 + $0x60] sm:$0xff] }
  0x3b   : > { %3223 = vperm.xlu1 %4834, %v3122_v30   ;;  %3220 = vperm.xlu0 %4833, %v3121_v31   ;;  %v1014_v23 = vld [vmem:[%s8228_s3 + $0xa8] sm:$0xff]  ;;  %v2500_v25 = vld [vmem:[%s5435_s28 + $0x58] sm:$0xff]  ;;  %v3156_v26 = vld [vmem:[%s8226_s1 + $0x1a0] sm:$0xff] }
  0x3c   : > { %728 = vmatpush.msra.mxu0 %v701_v32  ;;  %4783 = vmatpush.msra.mxu2 %v2503_v19  ;;  %v2499_v27 = vld [vmem:[%s5435_s28 + $0x50] sm:$0xff]  ;;  %v3155_v28 = vld [vmem:[%s8226_s1 + $0x198] sm:$0xff]  ;;  %v2498_v30 = vld [vmem:[%s5435_s28 + $0x48] sm:$0xff] }
  0x3d   : > { %4516 = vmatmul.msk.f32.gmra.mxu1 %vm1063_vm0, %v1004_v33  ;;  %v3154_v29 = vld [vmem:[%s8226_s1 + $0x190] sm:$0xff]  ;;  %v2497_v32 = vld [vmem:[%s5435_s28 + $0x40] sm:$0xff]  ;;  %v2496_v33 = vld [vmem:[%s5435_s28 + $0x38] sm:$0xff] }
  0x3e   : > { %729 = vmatpush.msra.mxu0 %v700_v34  ;;  %4784 = vmatpush.msra.mxu2 %v2502_v22  ;;  %v1015_v31 = vld [vmem:[%s8228_s3 + $0xb0] sm:$0xff] }
  0x3f   : > { %v3158_v34 = vld [vmem:[%s8226_s1 + $0x1b0] sm:$0xff] }
  0x40   : > { %730 = vmatpush.msra.mxu0 %v699_v35  ;;  %4785 = vmatpush.msra.mxu2 %v2501_v24  ;;  %v2495_v35 = vld [vmem:[%s5435_s28 + $0x30] sm:$0xff] }
  0x41   : > { %731 = vmatmul.f32.vlgmr.msra.gmra.mxu0 %v698_v36  ;;  %v3104_v36 = vld [vmem:[%s8226_s1] sm:$0xff] }
  0x42   : > { %3235 = vperm.xlu2 %4835, %v3126_v37   ;;  %1270 = vmatpush.msrb.mxu0 %v5470_v2  ;;  %v998_v2 = vld [vmem:[%s8228_s3 + $0x28] sm:$0xff] }
  0x43   : > { %3232 = vperm.xlu1 %4834, %v3125_v38   ;;  %3229 = vperm.xlu0 %4833, %v3124_v39   ;;  %v3157_v37 = vld [vmem:[%s8226_s1 + $0x1a8] sm:$0xff]  ;;  %v1016_v39 = vld [vmem:[%s8228_s3 + $0xb8] sm:$0xff] }
  0x44   : > { %1271 = vmatpush.msrb.mxu0 %v5482_v8  ;;  %v3147_v8 = vld [vmem:[%s8226_s1 + $0x158] sm:$0xff]  ;;  %4786 = vmatpush.msra.mxu2 %v2500_v25  ;;  %v2494_v38 = vld [vmem:[%s5435_s28 + $0x28] sm:$0xff] }
  0x45   : > { %4517 = vmatmul.msk.f32.gmra.mxu1 %vm1063_vm0, %v1005_v40  ;;  %v2493_v40 = vld [vmem:[%s5435_s28 + $0x20] sm:$0xff] }
  0x46   : > { %2509 = vmatpush.msra.mxu0 %v2504_v17  ;;  %4787 = vmatpush.msra.mxu2 %v2499_v27 }
  0x48   : > { %2510 = vmatpush.msra.mxu0 %v2503_v19  ;;  %4788 = vmatpush.msra.mxu2 %v2498_v30  ;;  %v1021_v19 = vld [vmem:[%s8228_s3 + $0xe0] sm:$0xff] }
  0x49   : > { %4505 = vmatmul.msk.f32.vlgmr.msrb.gmra.mxu0 %vm1063_vm0, %v993_v41  ;;  %v2492_v41 = vld [vmem:[%s5435_s28 + $0x18] sm:$0xff] }
  0x4a   : > { %3244 = vperm.xlu2 %4835, %v3129_v42   ;;  %2511 = vmatpush.msra.mxu0 %v2502_v22  ;;  %v3106_v42 = vld [vmem:[%s8226_s1 + $0x10] sm:$0xff] }
  0x4b   : > { %3241 = vperm.xlu1 %4834, %v3128_v43   ;;  %3238 = vperm.xlu0 %4833, %v3127_v44   ;;  %v2491_v43 = vld [vmem:[%s5435_s28 + $0x10] sm:$0xff]  ;;  %v3159_v44 = vld [vmem:[%s8226_s1 + $0x1b8] sm:$0xff] }
  0x4c   : > { %2512 = vmatpush.msra.mxu0 %v2501_v24  ;;  %4789 = vmatpush.msra.mxu2 %v2497_v32 }
  0x4d   : > { %4518 = vmatmul.msk.f32.gmra.mxu1 %vm1063_vm0, %v1006_v45  ;;  %v3105_v45 = vld [vmem:[%s8226_s1 + $0x8] sm:$0xff] }
  0x4e   : > { %2513 = vmatpush.msra.mxu0 %v2500_v25  ;;  %4790 = vmatpush.msra.mxu2 %v2496_v33 }
  0x50   : > { %2514 = vmatpush.msra.mxu0 %v2499_v27  ;;  %4791 = vmatpush.msra.mxu2 %v2495_v35  ;;  %v768_v27 = vld [vmem:[%s8229_s4 + $0xf8] sm:$0xff] }
  0x51   : > { %4506 = vmatmul.msk.f32.gmra.mxu0 %vm1063_vm0, %v994_v46  ;;  %v2490_v46 = vld [vmem:[%s5435_s28 + $0x8] sm:$0xff]  ;;  %vm832_vm10 = vcmp.le.f32.partialorder %v768_v27, 10.0 }
  0x52   : > { %3253 = vperm.xlu2 %4835, %v3132_v47   ;;  %2515 = vmatpush.msra.mxu0 %v2498_v30  ;;  %v767_v30 = vld [vmem:[%s8229_s4 + $0xf0] sm:$0xff] }
  0x53   : > { %3250 = vperm.xlu1 %4834, %v3131_v48   ;;  %3247 = vperm.xlu0 %4833, %v3130_v49   ;;  %v1017_v48 = vld [vmem:[%s8228_s3 + $0xc0] sm:$0xff]  ;;  %vm831_vm12 = vcmp.le.f32.partialorder %v767_v30, 10.0 }
  0x54   : > { %2516 = vmatpush.msra.mxu0 %v2497_v32  ;;  %4792 = vmatpush.msra.mxu2 %v2494_v38  ;;  %v2489_v49 = vld [vmem:[%s5435_s28] sm:$0xff] }
  0x55   : > { %4519 = vmatmul.msk.f32.gmra.mxu1 %vm1063_vm0, %v1007_v50  ;;  %v3161_v50 = vld [vmem:[%s8226_s1 + $0x1c8] sm:$0xff] }
  0x56   : > { %2517 = vmatpush.msra.mxu0 %v2496_v33  ;;  %4793 = vmatpush.msra.mxu2 %v2493_v40 }
  0x58   : > { %2518 = vmatpush.msra.mxu0 %v2495_v35  ;;  %4794 = vmatpush.msra.mxu2 %v2492_v41  ;;  %v766_v35 = vld [vmem:[%s8229_s4 + $0xe8] sm:$0xff] }
  0x59   : > { %4507 = vmatmul.msk.f32.gmra.mxu0 %vm1063_vm0, %v995_v51  ;;  %v3107_v51 = vld [vmem:[%s8226_s1 + $0x18] sm:$0xff]  ;;  %vm830_vm15 = vcmp.le.f32.partialorder %v766_v35, 10.0 }
  0x5a   : > { %3262 = vperm.xlu2 %4835, %v3135_v52   ;;  %2519 = vmatpush.msra.mxu0 %v2494_v38  ;;  %v3160_v52 = vld [vmem:[%s8226_s1 + $0x1c0] sm:$0xff] }
  0x5b   : > { %3259 = vperm.xlu1 %4834, %v3134_v53   ;;  %3256 = vperm.xlu0 %4833, %v3133_v54   ;;  %v1018_v54 = vld [vmem:[%s8228_s3 + $0xc8] sm:$0xff] }
  0x5c   : > { %2520 = vmatpush.msra.mxu0 %v2493_v40  ;;  %4795 = vmatpush.msra.mxu2 %v2491_v43 }
  0x5d   : > { %4520 = vmatmul.msk.f32.gmra.mxu1 %vm1063_vm0, %v1008_v55  ;;  %v3109_v55 = vld [vmem:[%s8226_s1 + $0x28] sm:$0xff] }
  0x5e   : > { %2521 = vmatpush.msra.mxu0 %v2492_v41  ;;  %4796 = vmatpush.msra.mxu2 %v2490_v46 }
  0x60   : > { %2522 = vmatpush.msra.mxu0 %v2491_v43  ;;  %4797 = vmatpush.msra.mxu2 %v2489_v49  ;;  %v3167_v43 = vld [vmem:[%s8226_s1 + $0x1f8] sm:$0xff] }
  0x61   : > { %4508 = vmatmul.msk.f32.gmra.mxu0 %vm1063_vm0, %v996_v56  ;;  %v3162_v56 = vld [vmem:[%s8226_s1 + $0x1d0] sm:$0xff] }
  0x62   : > { %3271 = vperm.xlu2 %4835, %v3138_v57   ;;  %2523 = vmatpush.msra.mxu0 %v2490_v46  ;;  %v3108_v57 = vld [vmem:[%s8226_s1 + $0x20] sm:$0xff] }
  0x63   : > { %3268 = vperm.xlu1 %4834, %v3137_v58   ;;  %3265 = vperm.xlu0 %4833, %v3136_v59   ;;  %v8242_v58 = vlaneseq }
  0x64   : > { %2524 = vmatpush.msra.mxu0 %v2489_v49  ;;  %v1022_v49 = vld [vmem:[%s8228_s3 + $0xe8] sm:$0xff] }
  0x65   : > { %4521 = vmatmul.msk.f32.gmra.mxu1 %vm1063_vm0, %v1009_v60  ;;  %v1019_v60 = vld [vmem:[%s8228_s3 + $0xd0] sm:$0xff] }
  0x69   : > { %4509 = vmatmul.msk.f32.gmra.mxu0 %vm1063_vm0, %v997_v61  ;;  %v5795_v61 = vand.u32 127, %v8242_v58 }
  0x6a   : > { %3280 = vperm.xlu2 %4835, %v3141_v62  }
  0x6b   : > { %3277 = vperm.xlu1 %4834, %v3140_v63   ;;  %3274 = vperm.xlu0 %4833, %v3139_v0   ;;  %v3164_v63 = vld [vmem:[%s8226_s1 + $0x1e0] sm:$0xff]  ;;  %v3110_v0 = vld [vmem:[%s8226_s1 + $0x30] sm:$0xff] }
  0x6d   : > { %4522 = vmatmul.msk.f32.gmra.mxu1 %vm1063_vm0, %v1010_v1  ;;  %v3163_v1 = vld [vmem:[%s8226_s1 + $0x1d8] sm:$0xff] }
  0x71   : > { %4510 = vmatmul.msk.f32.gmra.mxu0 %vm1063_vm0, %v998_v2 }
  0x72   : > { %3289 = vperm.xlu2 %4835, %v3144_v3  }
  0x73   : > { %3286 = vperm.xlu1 %4834, %v3143_v4   ;;  %3283 = vperm.xlu0 %4833, %v3142_v5   ;;  %v1020_v4 = vld [vmem:[%s8228_s3 + $0xd8] sm:$0xff]  ;;  %v751_v5 = vld [vmem:[%s8229_s4 + $0x70] sm:$0xff] }
  0x74   : > { %vm815_vm3 = vcmp.le.f32.partialorder %v751_v5, 10.0  ;;  %v743_v5 = vld [vmem:[%s8229_s4 + $0x30] sm:$0xff] }
  0x75   : > { %4523 = vmatmul.msk.f32.gmra.mxu1 %vm1063_vm0, %v1011_v6  ;;  %v752_v6 = vld [vmem:[%s8229_s4 + $0x78] sm:$0xff] }
  0x76   : > { %vm816_vm4 = vcmp.le.f32.partialorder %v752_v6, 10.0 }
  0x79   : > { %4511 = vmatmul.msk.f32.gmra.mxu0 %vm1063_vm0, %v999_v7 }
  0x7a   : > { %3298 = vperm.xlu2 %4835, %v3147_v8   ;;  %v8243_v8 = vmov 0.0  }
  0x7b   : > { %3295 = vperm.xlu1 %4834, %v3146_v9   ;;  %3292 = vperm.xlu0 %4833, %v3145_v10   ;;  %v749_v10 = vld [vmem:[%s8229_s4 + $0x60] sm:$0xff] }
  0x7c   : > { %v3206_v7 = vpop.permute.xlu2 %3205  ;;  %vm813_vm5 = vcmp.le.f32.partialorder %v749_v10, 10.0  ;;  %v763_v10 = vld [vmem:[%s8229_s4 + $0xd0] sm:$0xff] }
  0x7d   : > { %4524 = vmatmul.msk.f32.gmra.mxu1 %vm1063_vm0, %v1012_v11  ;;  %v750_v11 = vld [vmem:[%s8229_s4 + $0x68] sm:$0xff]  ;;  %v4453_v24 = vsel %vm813_vm5, 1.0, %v8243_v8  ;;  %vm3372_vm8 = vcmp.eq.s32.totalorder %v5795_v61, %v3206_v7 }
  0x7e   : > { %vm814_vm6 = vcmp.le.f32.partialorder %v750_v11, 10.0  ;;  %v5888_v41 = vsel %vm3372_vm8, 1.0, %v8243_v8  ;;  %v742_v11 = vld [vmem:[%s8229_s4 + $0x28] sm:$0xff]  ;;  %vm827_vm8 = vcmp.le.f32.partialorder %v763_v10, 10.0 }
  0x7f   : > { %v4454_v25 = vsel %vm814_vm6, 1.0, %v8243_v8 }
  0x81   : > { %4512 = vmatmul.msk.f32.gmra.mxu0 %vm1063_vm0, %v1000_v12 }
  0x82   : > { %3307 = vperm.xlu2 %4835, %v3150_v13   ;;  %v3166_v13 = vld [vmem:[%s8226_s1 + $0x1f0] sm:$0xff] }
  0x83   : > { %3304 = vperm.xlu1 %4834, %v3149_v14   ;;  %3301 = vperm.xlu0 %4833, %v3148_v15   ;;  %v5832_v14 = vld [vmem:[%s5426_s21] ss:$0 sm:$0xff]  ;;  %v3165_v15 = vld [vmem:[%s8226_s1 + $0x1e8] sm:$0xff] }
  0x84   : > { %v5880_v38 = vpop.permute.xlu2 %3208 }
  0x85   : > { %4525 = vmatmul.msk.f32.gmra.mxu1 %vm1063_vm0, %v1013_v16  ;;  %v3111_v16 = vld [vmem:[%s8226_s1 + $0x38] sm:$0xff] }
  0x8a   : > { %3316 = vperm.xlu2 %4835, %v3153_v18  }
  0x8b   : > { %3313 = vperm.xlu1 %4834, %v3152_v20   ;;  %3310 = vperm.xlu0 %4833, %v3151_v21   ;;  %v4455_v20 = vsel %vm815_vm3, 1.0, %v8243_v8  ;;  %v4456_v21 = vsel %vm816_vm4, 1.0, %v8243_v8 }
  0x8d   : > { %4526 = vmatmul.msk.f32.gmra.mxu1 %vm1063_vm0, %v1014_v23 }
  0x92   : > { %3325 = vperm.xlu2 %4835, %v3156_v26   ;;  %v748_v26 = vld [vmem:[%s8229_s4 + $0x58] sm:$0xff] }
  0x93   : > { %3322 = vperm.xlu1 %4834, %v3155_v28   ;;  %3319 = vperm.xlu0 %4833, %v3154_v29   ;;  %v747_v28 = vld [vmem:[%s8229_s4 + $0x50] sm:$0xff]  ;;  %vm812_vm9 = vcmp.le.f32.partialorder %v748_v26, 10.0 }
  0x94   : > { %vm811_vm11 = vcmp.le.f32.partialorder %v747_v28, 10.0  ;;  %v4452_v46 = vsel %vm812_vm9, 1.0, %v8243_v8  ;;  %vm806_vm9 = vcmp.le.f32.partialorder %v742_v11, 10.0  ;;  %v1023_v28 = vld [vmem:[%s8228_s3 + $0xf0] sm:$0xff] }
  0x95   : > { %4527 = vmatmul.msk.f32.gmra.mxu1 %vm1063_vm0, %v1015_v31  ;;  %v3194_v62 = vpop.permute.xlu0 %3193  ;;  %v5806_v2 = vpop.permute.xlu1 %3199  ;;  %v746_v31 = vld [vmem:[%s8229_s4 + $0x48] sm:$0xff]  ;;  %v5986_v35 = vsel %vm806_vm9, 1.0, %v8243_v8 }
  0x96   : > { %vm3368_vm1 = vcmp.eq.s32.totalorder %v5795_v61, %v3194_v62  ;;  %vm810_vm13 = vcmp.le.f32.partialorder %v746_v31, 10.0  ;;  %vm3370_vm14 = vcmp.eq.s32.totalorder %v5795_v61, %v5806_v2  ;;  %v744_v62 = vld [vmem:[%s8229_s4 + $0x38] sm:$0xff] }
  0x97   : > { %v4641_v9 = vsel %vm3368_vm1, 1.0, %v8243_v8  ;;  %vm808_vm5 = vcmp.le.f32.partialorder %v744_v62, 10.0 }
  0x9a   : > { %3331 = vperm.xlu2 %4835, %v3158_v34   ;;  %v4836_v34 = vpack.i.bf16 %v4455_v20, %v4456_v21  ;;  %v5966_v21 = vpop.permute.xlu2 %3217 }
  0x9b   : > { %3169 = vperm.xlu1 %4834, %v3104_v36   ;;  %3328 = vperm.xlu0 %4833, %v3157_v37   ;;  %v4841_v37 = vpack.i.bf16 %v4453_v24, %v4454_v25  ;;  %v4448_v25 = vsel %vm808_vm5, 1.0, %v8243_v8 }
  0x9d   : > { %4528 = vmatmul.msk.f32.gmra.mxu1 %vm1063_vm0, %v1016_v39  ;;  %v3197_v17 = vpop.permute.xlu0 %3196  ;;  %v3203_v22 = vpop.permute.xlu1 %3202 }
  0x9e   : > { %vm3369_vm7 = vcmp.eq.s32.totalorder %v5795_v61, %v3197_v17  ;;  %vm3371_vm1 = vcmp.eq.s32.totalorder %v5795_v61, %v3203_v22 }
  0x9f   : > { %v4642_v32 = vsel %vm3369_vm7, 1.0, %v8243_v8  ;;  %vm807_vm7 = vcmp.le.f32.partialorder %v743_v5, 10.0 }
  0xa0   : > { %v4447_v31 = vsel %vm807_vm7, 1.0, %v8243_v8 }
  0xa2   : > { %v5757_v47 = vpop.f32.mrf.mxu1  ;;  %3175 = vperm.xlu2 %4835, %v3106_v42  }
  0xa3   : > { %3334 = vperm.xlu1 %4834, %v3159_v44   ;;  %3172 = vperm.xlu0 %4833, %v3105_v45   ;;  %v5863_v29 = vadd.f32 %v5832_v14, %v5757_v47  ;;  %v745_v47 = vld [vmem:[%s8229_s4 + $0x40] sm:$0xff] }
  0xa4   : > { %vm809_vm3 = vcmp.le.f32.partialorder %v745_v47, 10.0 }
  0xa5   : > { %4529 = vmatmul.msk.f32.gmra.mxu1 %vm1063_vm0, %v1017_v48  ;;  %v1537_v42 = vand.u32 2147483647, %v5863_v29  ;;  %v5943_v6 = vpop.permute.xlu1 %3214 }
  0xaa   : > { %v5773_v53 = vpop.f32.mrf.mxu1  ;;  %3340 = vperm.xlu2 %4835, %v3161_v50   ;;  %v4472_v50 = vsel %vm832_vm10, 1.0, %v8243_v8 }
  0xab   : > { %3178 = vperm.xlu1 %4834, %v3107_v51   ;;  %3337 = vperm.xlu0 %4833, %v3160_v52   ;;  %v4451_v51 = vsel %vm811_vm11, 1.0, %v8243_v8  ;;  %v4471_v52 = vsel %vm831_vm12, 1.0, %v8243_v8 }
  0xad   : > { %4530 = vmatmul.msk.f32.gmra.mxu1 %vm1063_vm0, %v1018_v54  ;;  %v4450_v54 = vsel %vm810_vm13, 1.0, %v8243_v8 }
  0xb2   : > { %v5788_v59 = vpop.f32.mrf.mxu1  ;;  %3184 = vperm.xlu2 %4835, %v3109_v55  }
  0xb3   : > { %3343 = vperm.xlu1 %4834, %v3162_v56   ;;  %3181 = vperm.xlu0 %4833, %v3108_v57   ;;  %v4470_v57 = vsel %vm830_vm15, 1.0, %v8243_v8  ;;  %vm3373_vm15 = vcmp.eq.s32.totalorder %v5795_v61, %v5880_v38 }
  0xb5   : > { %4531 = vmatmul.msk.f32.gmra.mxu1 %vm1063_vm0, %v1019_v60  ;;  %v765_v60 = vld [vmem:[%s8229_s4 + $0xe0] sm:$0xff] }
  0xb6   : > { %vm829_vm4 = vcmp.le.f32.partialorder %v765_v60, 10.0 }
  0xb7   : > { %v4469_v24 = vsel %vm829_vm4, 1.0, %v8243_v8 }
  0xba   : > { %v5809_v3 = vpop.f32.mrf.mxu1  ;;  %3349 = vperm.xlu2 %4835, %v3164_v63   ;;  %v4643_v63 = vsel %vm3370_vm14, 1.0, %v8243_v8 }
  0xbb   : > { %3187 = vperm.xlu1 %4834, %v3110_v0   ;;  %3346 = vperm.xlu0 %4833, %v3163_v1   ;;  %v5933_v0 = vsel %vm3371_vm1, 1.0, %v8243_v8  ;;  %v5935_v1 = vsub.f32 0.0, %v1537_v42 }
  0xbd   : > { %4532 = vmatmul.msk.f32.gmra.mxu1 %vm1063_vm0, %v1020_v4  ;;  %v764_v4 = vld [vmem:[%s8229_s4 + $0xd8] sm:$0xff] }
  0xbe   : > { %v732_v12 = vpop.f32.mrf.mxu0  ;;  %vm828_vm6 = vcmp.le.f32.partialorder %v764_v4, 10.0 }
  0xbf   : > { %4798 = vmatpush.msra.mxu3 %v732_v12  ;;  %3761 = vmatpush.msrb.mxu0 %v732_v12  ;;  %v4468_v30 = vsel %vm828_vm6, 1.0, %v8243_v8 }
  0xc0   : > { %4705 = vmatmul.msk.f32.vlgmr.msra.gmra.mxu3 %vm3553_vm2, %v4641_v9  ;;  %v4846_v9 = vpack.i.bf16 %v4472_v50, %v4452_v46  ;;  %v760_v50 = vld [vmem:[%s8229_s4 + $0xb8] sm:$0xff] }
  0xc1   : > { %vm824_vm14 = vcmp.le.f32.partialorder %v760_v50, 10.0 }
  0xc2   : > { %v1309_v18 = vpop.f32.mrf.mxu1  ;;  %3355 = vperm.xlu2 %4835, %v3166_v13   ;;  %v4851_v13 = vpack.i.bf16 %v4471_v52, %v4451_v51 }
  0xc3   : > { %v5848_v23 = vadd.f32 %v5832_v14, %v1309_v18  ;;  %3352 = vperm.xlu1 %4834, %v3165_v15   ;;  %3190 = vperm.xlu0 %4833, %v3111_v16   ;;  %v4856_v15 = vpack.i.bf16 %v4470_v57, %v4450_v54  ;;  %v762_v16 = vld [vmem:[%s8229_s4 + $0xc8] sm:$0xff] }
  0xc4   : > { %vm826_vm10 = vcmp.le.f32.partialorder %v762_v16, 10.0  ;;  %v6035_v16 = vpop.permute.xlu2 %3226 }
  0xc5   : > { %v1541_v33 = vand.u32 2147483647, %v5848_v23  ;;  %4533 = vmatmul.msk.f32.gmra.mxu1 %vm1063_vm0, %v1021_v19  ;;  %v5962_v19 = vsel %vm809_vm3, 1.0, %v8243_v8  ;;  %v5994_v42 = vsel %vm826_vm10, 1.0, %v8243_v8 }
  0xc6   : > { %v1273_v36 = vpop.f32.mrf.mxu0  ;;  %v4861_v47 = vpack.i.bf16 %v4469_v24, %v5962_v19  ;;  %v4876_v60 = vpack.i.bf16 %v5994_v42, %v5986_v35  ;;  %v4464_v19 = vsel %vm824_vm14, 1.0, %v8243_v8  ;;  %v759_v24 = vld [vmem:[%s8229_s4 + $0xb0] sm:$0xff]  ;;  %vm3379_vm14 = vcmp.eq.s32.totalorder %v5795_v61, %v6035_v16 }
  0xc7   : > { %v1605_v39 = vsub.f32 0.0, %v1541_v33  ;;  %v5883_v40 = vadd.f32 %v5832_v14, %v1273_v36  ;;  %v741_v36 = vld [vmem:[%s8229_s4 + $0x20] sm:$0xff]  ;;  %vm823_vm5 = vcmp.le.f32.partialorder %v759_v24, 10.0 }
  0xc8   : > { %4706 = vmatmul.msk.f32.gmra.mxu3 %vm3553_vm2, %v4642_v32  ;;  %vm805_vm11 = vcmp.le.f32.partialorder %v741_v36, 10.0 }
  0xc9   : > { %v1681_v44 = vmul.f32 1.442695, %v1605_v39  ;;  %v1529_v45 = vand.u32 2147483647, %v5883_v40  ;;  %v1465_v10 = vmax.f32 %v5883_v40, 0.0 }
  0xca   : > { %v1312_v48 = vpop.f32.mrf.mxu1  ;;  %4842 = vperm.xlu2 %4835, %v4841_v37  }
  0xcb   : > { %5000 = vpow2.f32 %v1681_v44  ;;  %v1593_v55 = vsub.f32 0.0, %v1529_v45  ;;  %v5916_v56 = vadd.f32 %v5832_v14, %v1312_v48  ;;  %3358 = vperm.xlu0 %4833, %v3167_v43   ;;  %4837 = vperm.xlu1 %4834, %v4836_v34   ;;  %v4467_v34 = vsel %vm827_vm8, 1.0, %v8243_v8  ;;  %v761_v43 = vld [vmem:[%s8229_s4 + $0xc0] sm:$0xff] }
  0xcc   : > { %v6001_v45 = vadd.f32 %v5832_v14, %v5773_v53  ;;  %v4866_v48 = vpack.i.bf16 %v4468_v30, %v4448_v25  ;;  %v4871_v54 = vpack.i.bf16 %v4467_v34, %v4447_v31  ;;  %v6012_v53 = vpop.permute.xlu1 %3223  ;;  %vm825_vm12 = vcmp.le.f32.partialorder %v761_v43, 10.0  ;;  %v758_v34 = vld [vmem:[%s8229_s4 + $0xa8] sm:$0xff]  ;;  %v737_v43 = vld [vmem:[%s8229_s4] sm:$0xff]  ;;  %v6108_v35 = vpop.permute.xlu2 %3235 }
  0xcd   : > { %v1657_v2 = vmul.f32 1.442695, %v1593_v55  ;;  %v1542_v7 = vand.u32 2147483647, %v5916_v56  ;;  %4534 = vmatmul.msk.f32.gmra.mxu1 %vm1063_vm0, %v1022_v49  ;;  %v740_v49 = vld [vmem:[%s8229_s4 + $0x18] sm:$0xff]  ;;  %v1477_v55 = vmax.f32 %v5848_v23, 0.0 }
  0xce   : > { %v1276_v12 = vpop.f32.mrf.mxu0  ;;  %vm804_vm13 = vcmp.le.f32.partialorder %v740_v49, 10.0  ;;  %v4445_v23 = vsel %vm805_vm11, 1.0, %v8243_v8  ;;  %vm822_vm7 = vcmp.le.f32.partialorder %v758_v34, 10.0  ;;  %vm801_vm8 = vcmp.le.f32.partialorder %v737_v43, 10.0 }
  0xcf   : > { %5002 = vpow2.f32 %v1657_v2  ;;  %v1606_v17 = vsub.f32 0.0, %v1542_v7  ;;  %v5957_v18 = vadd.f32 %v5832_v14, %v1276_v12  ;;  %v739_v7 = vld [vmem:[%s8229_s4 + $0x10] sm:$0xff]  ;;  %v1024_v12 = vld [vmem:[%s8228_s3 + $0xf8] sm:$0xff]  ;;  %v4444_v40 = vsel %vm804_vm13, 1.0, %v8243_v8 }
  0xd0   : > { %4707 = vmatmul.msk.f32.gmra.mxu3 %vm3553_vm2, %v4643_v63  ;;  %vm803_vm1 = vcmp.le.f32.partialorder %v739_v7, 10.0  ;;  %vm3375_vm11 = vcmp.eq.s32.totalorder %v5795_v61, %v5943_v6  ;;  %vm3376_vm13 = vcmp.eq.s32.totalorder %v5795_v61, %v5966_v21 }
  0xd1   : > { %v5964_v20 = vpop.eup %5000  ;;  %v1683_v22 = vmul.f32 1.442695, %v1606_v17  ;;  %v1530_v26 = vand.u32 2147483647, %v5957_v18 }
  0xd2   : > { %v1315_v27 = vpop.f32.mrf.mxu1  ;;  %4857 = vperm.xlu2 %4835, %v4856_v15   ;;  %v1893_v32 = vadd.f32 1.0, %v5964_v20  ;;  %v1896_v39 = vmul.f32 -0.5, %v5964_v20  ;;  %v1899_v2 = vand.u32 2147483647, %v5964_v20 }
  0xd3   : > { %5004 = vpow2.f32 %v1683_v22  ;;  %v5980_v33 = vadd.f32 %v5832_v14, %v1315_v27  ;;  %4847 = vperm.xlu0 %4833, %v4846_v9   ;;  %4852 = vperm.xlu1 %4834, %v4851_v13   ;;  %v1594_v37 = vsub.f32 0.0, %v1530_v26  ;;  %v4465_v13 = vsel %vm825_vm12, 1.0, %v8243_v8  ;;  %v738_v27 = vld [vmem:[%s8229_s4 + $0x8] sm:$0xff] }
  0xd4   : > { %5006 = vlog2.f32 %v1893_v32  ;;  %v1897_v62 = vadd.f32 1.0, %v1896_v39  ;;  %vm6050_vm3 = vcmp.lt.f32.partialorder %v1899_v2, 0.0004427343  ;;  %v4881_v32 = vpack.i.bf16 %v4465_v13, %v4445_v23  ;;  %v1025_v23 = vld [vmem:[%s8228_s3 + $0x100] sm:$0xff] }
  0xd5   : > { %v5003_v44 = vpop.eup %5002  ;;  %v1543_v46 = vand.u32 2147483647, %v5980_v33  ;;  %4535 = vmatmul.msk.f32.gmra.mxu1 %vm1063_vm0, %v1023_v28  ;;  %v1659_v57 = vmul.f32 1.442695, %v1594_v37  ;;  %v4886_v39 = vpack.i.bf16 %v4464_v19, %v4444_v40  ;;  %vm802_vm6 = vcmp.le.f32.partialorder %v738_v27, 10.0 }
  0xd6   : > { %v1785_v51 = vadd.f32 1.0, %v5003_v44  ;;  %v1788_v52 = vmul.f32 -0.5, %v5003_v44  ;;  %v1791_v11 = vand.u32 2147483647, %v5003_v44  ;;  %v1279_v17 = vpop.f32.mrf.mxu0  ;;  %v1898_v26 = vmul.f32 %v5964_v20, %v1897_v62 }
  0xd7   : > { %v1607_v5 = vsub.f32 0.0, %v1543_v46  ;;  %v6074_v49 = vadd.f32 %v5832_v14, %v1279_v17  ;;  %v4463_v62 = vsel %vm823_vm5, 1.0, %v8243_v8  ;;  %v4646_v40 = vsel %vm3373_vm15, 1.0, %v8243_v8 }
  0xd8   : > { %5008 = vlog2.f32 %v1785_v51  ;;  %4708 = vmatmul.msk.f32.gmra.mxu3 %vm3553_vm2, %v5933_v0  ;;  %v1789_v4 = vadd.f32 1.0, %v1788_v52  ;;  %vm6057_vm4 = vcmp.lt.f32.partialorder %v1791_v11, 0.0004427343  ;;  %v4462_v11 = vsel %vm822_vm7, 1.0, %v8243_v8 }
  0xd9   : > { %v6019_v63 = vpop.eup %5004  ;;  %5010 = vpow2.f32 %v1659_v57  ;;  %v1685_v30 = vmul.f32 1.442695, %v1607_v5  ;;  %v1478_v19 = vmax.f32 %v5916_v56, 0.0  ;;  %v1538_v27 = vand.u32 2147483647, %v6001_v45 }
  0xda   : > { %v5007_v9 = vpop.eup %5006  ;;  %v1318_v0 = vpop.f32.mrf.mxu1  ;;  %4872 = vperm.xlu2 %4835, %v4871_v54   ;;  %v1902_v15 = vadd.f32 1.0, %v6019_v63  ;;  %v1905_v22 = vmul.f32 -0.5, %v6019_v63  ;;  %v1790_v28 = vmul.f32 %v5003_v44, %v1789_v4  ;;  %v1908_v51 = vand.u32 2147483647, %v6019_v63 }
  0xdb   : > { %4862 = vperm.xlu0 %4833, %v4861_v47   ;;  %4867 = vperm.xlu1 %4834, %v4866_v48   ;;  %v1895_v25 = vmul.f32 0.6931472, %v5007_v9  ;;  %v6068_v47 = vsel %vm803_vm1, 1.0, %v8243_v8  ;;  %v757_v48 = vld [vmem:[%s8229_s4 + $0xa0] sm:$0xff]  ;;  %v6081_v54 = vpop.permute.xlu1 %3232  ;;  %v1479_v13 = vmax.f32 %v5980_v33, 0.0 }
  0xdc   : > { %5012 = vlog2.f32 %v1902_v15  ;;  %v1906_v46 = vadd.f32 1.0, %v1905_v22  ;;  %vm821_vm9 = vcmp.le.f32.partialorder %v757_v48, 10.0  ;;  %vm6104_vm10 = vcmp.lt.f32.partialorder %v1908_v51, 0.0004427343 }
  0xdd   : > { %4536 = vmatmul.msk.f32.gmra.mxu1 %vm1063_vm0, %v1024_v12  ;;  %v1901_v37 = vsel %vm6050_vm3, %v1898_v26, %v1895_v25  ;;  %5014 = vpow2.f32 %v1685_v30  ;;  %v1531_v12 = vand.u32 2147483647, %v6074_v49  ;;  %v4461_v15 = vsel %vm821_vm9, 1.0, %v8243_v8  ;;  %v3212_v26 = vpop.permute.xlu0 %3211 }
  0xde   : > { %v5009_v20 = vpop.eup %5008  ;;  %v2373_v50 = vadd.f32 %v1901_v37, %v1477_v55  ;;  %v1907_v9 = vmul.f32 %v6019_v63, %v1906_v46  ;;  %v1282_v42 = vpop.f32.mrf.mxu0  ;;  %v4441_v63 = vsel %vm801_vm8, 1.0, %v8243_v8  ;;  %v1673_v25 = vmul.f32 1.442695, %v5935_v1  ;;  %v1026_v37 = vld [vmem:[%s8228_s3 + $0x108] sm:$0xff] }
  0xdf   : > { %v1787_v44 = vmul.f32 0.6931472, %v5009_v20  ;;  %v6079_v52 = vpop.eup %5010  ;;  %v1595_v31 = vsub.f32 0.0, %v1531_v12  ;;  %vm3374_vm12 = vcmp.eq.s32.totalorder %v5795_v61, %v3212_v26  ;;  %v6135_v1 = vadd.f32 %v5832_v14, %v1282_v42  ;;  %v1027_v26 = vld [vmem:[%s8228_s3 + $0x110] sm:$0xff] }
  0xe0   : > { %4709 = vmatmul.msk.f32.gmra.mxu3 %vm3553_vm2, %v5888_v41  ;;  %v6088_v41 = vadd.f32 %v5832_v14, %v1318_v0  ;;  %v4581_v2 = vadd.f32 -0.6931472, %v2373_v50  ;;  %v1794_v17 = vadd.f32 1.0, %v6079_v52  ;;  %v1797_v56 = vmul.f32 -0.5, %v6079_v52 }
  0xe1   : > { %v1793_v57 = vsel %vm6057_vm4, %v1790_v28, %v1787_v44  ;;  %v4891_v28 = vpack.i.bf16 %v4463_v62, %v6068_v47  ;;  %v1602_v44 = vsub.f32 0.0, %v1538_v27  ;;  %v1800_v47 = vand.u32 2147483647, %v6079_v52 }
  0xe2   : > { %v5013_v4 = vpop.eup %5012  ;;  %v2361_v5 = vadd.f32 %v1793_v57, %v1465_v10  ;;  %v6090_v55 = vpop.f32.mrf.mxu1  ;;  %4887 = vperm.xlu2 %4835, %v4886_v39   ;;  %v4442_v10 = vsel %vm802_vm6, 1.0, %v8243_v8  ;;  %2561 = vmatmul.f32.vlgmr.msra.gmra.mxu2 %v4581_v2  ;;  %v1544_v22 = vand.u32 2147483647, %v6088_v41  ;;  %5016 = vlog2.f32 %v1794_v17  ;;  %v756_v2 = vld [vmem:[%s8229_s4 + $0x98] sm:$0xff] }
  0xe3   : > { %4877 = vperm.xlu0 %4833, %v4876_v60   ;;  %4882 = vperm.xlu1 %4834, %v4881_v32   ;;  %v1904_v7 = vmul.f32 0.6931472, %v5013_v4  ;;  %v6124_v24 = vpop.eup %5014  ;;  %v4896_v30 = vpack.i.bf16 %v4462_v11, %v4442_v10  ;;  %v4901_v32 = vpack.i.bf16 %v4461_v15, %v4441_v63  ;;  %v1798_v39 = vadd.f32 1.0, %v1797_v56  ;;  %v6143_v46 = vpop.permute.xlu1 %3241 }
  0xe4   : > { %v4569_v0 = vadd.f32 -0.6931472, %v2361_v5  ;;  %v1608_v34 = vsub.f32 0.0, %v1544_v22  ;;  %v1911_v43 = vadd.f32 1.0, %v6124_v24  ;;  %5018 = vpow2.f32 %v1673_v25 }
  0xe5   : > { %4537 = vmatmul.msk.f32.gmra.mxu1 %vm1063_vm0, %v1025_v23  ;;  %v1910_v60 = vsel %vm6104_vm10, %v1907_v9, %v1904_v7  ;;  %v1914_v48 = vmul.f32 -0.5, %v6124_v24  ;;  %v1661_v50 = vmul.f32 1.442695, %v1595_v31  ;;  %v6151_v51 = vsel %vm3375_vm11, 1.0, %v8243_v8  ;;  %v784_v23 = vld [vmem:[%s8229_s4 + $0x178] sm:$0xff]  ;;  %v755_v7 = vld [vmem:[%s8229_s4 + $0x90] sm:$0xff]  ;;  %v6190_v15 = vpop.permute.xlu0 %3220 }
  0xe6   : > { %2525 = vmatmul.f32.vlgmr.msra.gmra.mxu0 %v4569_v0  ;;  %v2374_v38 = vadd.f32 %v1910_v60, %v1478_v19  ;;  %5020 = vlog2.f32 %v1911_v43  ;;  %v1532_v57 = vand.u32 2147483647, %v6135_v1  ;;  %v4647_v62 = vsel %vm3374_vm12, 1.0, %v8243_v8  ;;  %v1285_v11 = vpop.f32.mrf.mxu0 }
  0xe7   : > { %v1687_v4 = vmul.f32 1.442695, %v1608_v34  ;;  %v6162_v5 = vadd.f32 %v5832_v14, %v6090_v55  ;;  %v1799_v6 = vmul.f32 %v6079_v52, %v1798_v39  ;;  %v6176_v55 = vpop.permute.xlu2 %3244  ;;  %v6178_v10 = vmul.f32 1.442695, %v1602_v44  ;;  %v782_v34 = vld [vmem:[%s8229_s4 + $0x168] sm:$0xff] }
  0xe8   : > { %4710 = vmatmul.msk.f32.gmra.mxu3 %vm3553_vm2, %v4646_v40  ;;  %v4582_v36 = vadd.f32 -0.6931472, %v2374_v38  ;;  %v5017_v9 = vpop.eup %5016  ;;  %v1466_v52 = vmax.f32 %v5957_v18, 0.0  ;;  %vm6181_vm15 = vcmp.lt.f32.partialorder %v1800_v47, 0.0004427343  ;;  %v1915_v12 = vadd.f32 1.0, %v1914_v48 }
  0xe9   : > { %5022 = vpow2.f32 %v1661_v50  ;;  %v1796_v42 = vmul.f32 0.6931472, %v5017_v9  ;;  %v1917_v60 = vand.u32 2147483647, %v6124_v24  ;;  %v1596_v17 = vsub.f32 0.0, %v1532_v57  ;;  %v783_v18 = vld [vmem:[%s8229_s4 + $0x170] sm:$0xff] }
  0xea   : > { %v6137_v20 = vpop.f32.mrf.mxu1  ;;  %4902 = vperm.xlu2 %4835, %v4901_v32   ;;  %2564 = vmatmul.f32.gmra.mxu2 %v4582_v36  ;;  %v6188_v63 = vpop.eup %5018  ;;  %vm820_vm1 = vcmp.le.f32.partialorder %v756_v2, 10.0  ;;  %vm848_vm3 = vcmp.le.f32.partialorder %v784_v23, 10.0  ;;  %vm819_vm4 = vcmp.le.f32.partialorder %v755_v7, 10.0  ;;  %5024 = vpow2.f32 %v1687_v4  ;;  %v754_v38 = vld [vmem:[%s8229_s4 + $0x88] sm:$0xff] }
  0xeb   : > { %4892 = vperm.xlu0 %4833, %v4891_v28   ;;  %4897 = vperm.xlu1 %4834, %v4896_v30   ;;  %v1545_v33 = vand.u32 2147483647, %v6162_v5  ;;  %v6197_v19 = vadd.f32 %v5832_v14, %v1285_v11  ;;  %v1802_v22 = vsel %vm6181_vm15, %v1799_v6, %v1796_v42  ;;  %v1916_v30 = vmul.f32 %v6124_v24, %v1915_v12  ;;  %v6218_v36 = vpop.permute.xlu1 %3250  ;;  %v1028_v12 = vld [vmem:[%s8228_s3 + $0x118] sm:$0xff] }
  0xec   : > { %v5021_v40 = vpop.eup %5020  ;;  %v2362_v27 = vadd.f32 %v1802_v22, %v1466_v52  ;;  %v4460_v31 = vsel %vm820_vm1, 1.0, %v8243_v8  ;;  %vm1918_vm5 = vcmp.lt.f32.partialorder %v1917_v60, 0.0004427343  ;;  %v4488_v32 = vsel %vm848_vm3, 1.0, %v8243_v8 }
  0xed   : > { %4538 = vmatmul.msk.f32.gmra.mxu1 %vm1063_vm0, %v1026_v37  ;;  %v1913_v28 = vmul.f32 0.6931472, %v5021_v40  ;;  %vm847_vm6 = vcmp.le.f32.partialorder %v783_v18, 10.0  ;;  %v4459_v56 = vsel %vm819_vm4, 1.0, %v8243_v8  ;;  %v1663_v24 = vmul.f32 1.442695, %v1596_v17  ;;  %v6262_v16 = vpop.permute.xlu0 %3229 }
  0xee   : > { %v4570_v37 = vadd.f32 -0.6931472, %v2362_v27  ;;  %v1857_v43 = vadd.f32 1.0, %v6188_v63  ;;  %v1609_v47 = vsub.f32 0.0, %v1545_v33  ;;  %v4906_v50 = vpack.i.bf16 %v4488_v32, %v4460_v31 }
  0xef   : > { %v1919_v39 = vsel %vm1918_vm5, %v1916_v30, %v1913_v28  ;;  %v6222_v44 = vpop.eup %5022  ;;  %v4487_v57 = vsel %vm847_vm6, 1.0, %v8243_v8  ;;  %vm818_vm7 = vcmp.le.f32.partialorder %v754_v38, 10.0  ;;  %vm846_vm8 = vcmp.le.f32.partialorder %v782_v34, 10.0  ;;  %v6242_v11 = vpop.permute.xlu2 %3253  ;;  %v779_v34 = vld [vmem:[%s8229_s4 + $0x150] sm:$0xff] }
  0xf0   : > { %4711 = vmatmul.msk.f32.gmra.mxu3 %vm3553_vm2, %v4647_v62  ;;  %v2375_v48 = vadd.f32 %v1919_v39, %v1479_v13  ;;  %v1533_v62 = vand.u32 2147483647, %v6197_v19  ;;  %2528 = vmatmul.f32.gmra.mxu0 %v4570_v37  ;;  %v4911_v4 = vpack.i.bf16 %v4487_v57, %v4459_v56  ;;  %v6226_v6 = vpop.eup %5024  ;;  %v6230_v2 = vadd.f32 %v5832_v14, %v6137_v20  ;;  %v780_v56 = vld [vmem:[%s8229_s4 + $0x158] sm:$0xff] }
  0xf1   : > { %v4458_v7 = vsel %vm818_vm7, 1.0, %v8243_v8  ;;  %v4486_v9 = vsel %vm846_vm8, 1.0, %v8243_v8  ;;  %v4649_v52 = vsel %vm3376_vm13, 1.0, %v8243_v8  ;;  %vm3382_vm9 = vcmp.eq.s32.totalorder %v5795_v61, %v6108_v35  ;;  %v781_v35 = vld [vmem:[%s8229_s4 + $0x160] sm:$0xff] }
  0xf2   : > { %v6201_v25 = vpop.f32.mrf.mxu1  ;;  %v4583_v23 = vadd.f32 -0.6931472, %v2375_v48  ;;  %v4916_v20 = vpack.i.bf16 %v4486_v9, %v4458_v7  ;;  %v6248_v0 = vsel %vm3379_vm14, 1.0, %v8243_v8  ;;  %5026 = vpow2.f32 %v6178_v10  ;;  %v778_v48 = vld [vmem:[%s8229_s4 + $0x148] sm:$0xff] }
  0xf3   : > { %4907 = vperm.xlu0 %4833, %v4906_v50   ;;  %4912 = vperm.xlu1 %4834, %v4911_v4   ;;  %vm3377_vm10 = vcmp.eq.s32.totalorder %v5795_v61, %v6190_v15  ;;  %v1689_v21 = vmul.f32 1.442695, %v1609_v47  ;;  %v6260_v13 = vadd.f32 %v5832_v14, %v5788_v59  ;;  %v1803_v10 = vadd.f32 1.0, %v6222_v44  ;;  %v1288_v59 = vpop.f32.mrf.mxu0  ;;  %v6293_v38 = vpop.permute.xlu1 %3259  ;;  %v800_v15 = vld [vmem:[%s8229_s4 + $0x1f8] sm:$0xff] }
  0xf4   : > { %2567 = vmatmul.f32.gmra.mxu2 %v4583_v23  ;;  %4917 = vperm.xlu2 %4835, %v4916_v20   ;;  %v1806_v42 = vmul.f32 -0.5, %v6222_v44  ;;  %5028 = vlog2.f32 %v1857_v43  ;;  %v6270_v60 = vsel %vm3382_vm9, 1.0, %v8243_v8  ;;  %v1597_v17 = vsub.f32 0.0, %v1533_v62 }
  0xf5   : > { %4539 = vmatmul.msk.f32.gmra.mxu1 %vm1063_vm0, %v1027_v26  ;;  %5030 = vpow2.f32 %v1663_v24  ;;  %v1546_v18 = vand.u32 2147483647, %v6230_v2  ;;  %v1809_v33 = vand.u32 2147483647, %v6222_v44  ;;  %v1920_v22 = vadd.f32 1.0, %v6226_v6  ;;  %v753_v26 = vld [vmem:[%s8229_s4 + $0x80] sm:$0xff] }
  0xf6   : > { %5032 = vlog2.f32 %v1803_v10  ;;  %v1807_v40 = vadd.f32 1.0, %v1806_v42  ;;  %v6287_v28 = vsel %vm3377_vm10, 1.0, %v8243_v8  ;;  %v1923_v30 = vmul.f32 -0.5, %v6226_v6 }
  0xf7   : > { %5034 = vpow2.f32 %v1689_v21  ;;  %vm3378_vm11 = vcmp.eq.s32.totalorder %v5795_v61, %v6012_v53  ;;  %v1539_v31 = vand.u32 2147483647, %v6260_v13  ;;  %v1467_v32 = vmax.f32 %v6074_v49, 0.0  ;;  %v799_v49 = vld [vmem:[%s8229_s4 + $0x1f0] sm:$0xff]  ;;  %v6330_v20 = vpop.permute.xlu2 %3262 }
  0xf8   : > { %4712 = vmatmul.msk.f32.gmra.mxu3 %vm3553_vm2, %v6151_v51  ;;  %5036 = vlog2.f32 %v1920_v22  ;;  %v6305_v24 = vpop.eup %5026  ;;  %v1665_v37 = vmul.f32 1.442695, %v1597_v17  ;;  %v1610_v39 = vsub.f32 0.0, %v1546_v18  ;;  %vm817_vm12 = vcmp.le.f32.partialorder %v753_v26, 10.0 }
  0xf9   : > { %vm845_vm13 = vcmp.le.f32.partialorder %v781_v35, 10.0  ;;  %vm3381_vm14 = vcmp.eq.s32.totalorder %v5795_v61, %v6081_v54  ;;  %v1808_v47 = vmul.f32 %v6222_v44, %v1807_v40  ;;  %vm6316_vm15 = vcmp.lt.f32.partialorder %v1809_v33, 0.0004427343  ;;  %v1029_v44 = vld [vmem:[%s8228_s3 + $0x120] sm:$0xff]  ;;  %v6340_v33 = vpop.permute.xlu0 %3238 }
  0xfa   : > { %v6253_v51 = vpop.f32.mrf.mxu1  ;;  %v6311_v43 = vpop.eup %5028  ;;  %v4457_v50 = vsel %vm817_vm12, 1.0, %v8243_v8  ;;  %v4485_v57 = vsel %vm845_vm13, 1.0, %v8243_v8  ;;  %v1924_v4 = vadd.f32 1.0, %v1923_v30  ;;  %v1926_v23 = vand.u32 2147483647, %v6226_v6 }
  0xfb   : > { %v6322_v62 = vpop.eup %5030  ;;  %v4921_v7 = vpack.i.bf16 %v4485_v57, %v4457_v50  ;;  %vm844_vm1 = vcmp.le.f32.partialorder %v780_v56, 10.0  ;;  %vm864_vm3 = vcmp.le.f32.partialorder %v800_v15, 10.0  ;;  %vm843_vm4 = vcmp.le.f32.partialorder %v779_v34, 10.0 }
  0xfc   : > { %v4484_v21 = vsel %vm844_vm1, 1.0, %v8243_v8  ;;  %vm863_vm5 = vcmp.le.f32.partialorder %v799_v49, 10.0  ;;  %v6336_v10 = vadd.f32 %v5832_v14, %v1288_v59  ;;  %v4504_v17 = vsel %vm864_vm3, 1.0, %v8243_v8  ;;  %v1291_v59 = vpop.f32.mrf.mxu0 }
  0xfd   : > { %4540 = vmatmul.msk.f32.gmra.mxu1 %vm1063_vm0, %v1028_v12  ;;  %4922 = vperm.xlu0 %4833, %v4921_v7   ;;  %v4483_v18 = vsel %vm843_vm4, 1.0, %v8243_v8  ;;  %v1480_v22 = vmax.f32 %v6088_v41, 0.0  ;;  %v6345_v26 = vadd.f32 %v5832_v14, %v6201_v25  ;;  %v4926_v35 = vpack.i.bf16 %v4504_v17, %v4484_v21  ;;  %v777_v21 = vld [vmem:[%s8229_s4 + $0x140] sm:$0xff] }
  0xfe   : > { %v4503_v30 = vsel %vm863_vm5, 1.0, %v8243_v8  ;;  %v1925_v34 = vmul.f32 %v6226_v6, %v1924_v4  ;;  %5038 = vpow2.f32 %v1665_v37  ;;  %v1691_v50 = vmul.f32 1.442695, %v1610_v39 }
  0xff   : > { %v4931_v49 = vpack.i.bf16 %v4503_v30, %v4483_v18  ;;  %vm1927_vm6 = vcmp.lt.f32.partialorder %v1926_v23, 0.0004427343  ;;  %4927 = vperm.xlu1 %4834, %v4926_v35   ;;  %v1534_v25 = vand.u32 2147483647, %v6336_v10  ;;  %v1812_v7 = vadd.f32 1.0, %v6322_v62 }
 0x100   : > { %4713 = vmatmul.msk.f32.gmra.mxu3 %vm3553_vm2, %v4649_v52  ;;  %v5033_v52 = vpop.eup %5032  ;;  %v1547_v6 = vand.u32 2147483647, %v6345_v26  ;;  %v6361_v37 = vadd.f32 %v5832_v14, %v1291_v59  ;;  %v4651_v4 = vsel %vm3378_vm11, 1.0, %v8243_v8  ;;  %v1818_v17 = vand.u32 2147483647, %v6322_v62 }
 0x101   : > { %v6333_v12 = vpop.eup %5034  ;;  %v1805_v42 = vmul.f32 0.6931472, %v5033_v52  ;;  %4932 = vperm.xlu2 %4835, %v4931_v49   ;;  %5040 = vlog2.f32 %v1812_v7  ;;  %v798_v52 = vld [vmem:[%s8229_s4 + $0x1e8] sm:$0xff]  ;;  %vm3380_vm7 = vcmp.eq.s32.totalorder %v5795_v61, %v6262_v16  ;;  %v1481_v35 = vmax.f32 %v6162_v5, 0.0  ;;  %v797_v49 = vld [vmem:[%s8229_s4 + $0x1e0] sm:$0xff] }
 0x102   : > { %v6325_v9 = vpop.f32.mrf.mxu1  ;;  %v5037_v40 = vpop.eup %5036  ;;  %v1932_v18 = vmul.f32 -0.5, %v6333_v12  ;;  %5042 = vpow2.f32 %v1691_v50  ;;  %v1535_v54 = vand.u32 2147483647, %v6361_v37  ;;  %vm842_vm8 = vcmp.le.f32.partialorder %v778_v48, 10.0  ;;  %v776_v50 = vld [vmem:[%s8229_s4 + $0x138] sm:$0xff]  ;;  %v774_v5 = vld [vmem:[%s8229_s4 + $0x128] sm:$0xff] }
 0x103   : > { %v1811_v56 = vsel %vm6316_vm15, %v1808_v47, %v1805_v42  ;;  %v1922_v15 = vmul.f32 0.6931472, %v5037_v40  ;;  %v6357_v47 = vpop.permute.xlu1 %3268  ;;  %v1030_v42 = vld [vmem:[%s8228_s3 + $0x128] sm:$0xff]  ;;  %v6390_v40 = vsel %vm3381_vm14, 1.0, %v8243_v8  ;;  %vm862_vm9 = vcmp.le.f32.partialorder %v798_v52, 10.0 }
 0x104   : > { %v2363_v41 = vadd.f32 %v1811_v56, %v1467_v32  ;;  %v6398_v59 = vpop.eup %5038  ;;  %v6400_v56 = vpop.permute.xlu2 %3271  ;;  %vm841_vm10 = vcmp.le.f32.partialorder %v777_v21, 10.0  ;;  %vm6417_vm11 = vcmp.lt.f32.partialorder %v1818_v17, 0.0004427343  ;;  %v1933_v7 = vadd.f32 1.0, %v1932_v18 }
 0x105   : > { %4541 = vmatmul.msk.f32.gmra.mxu1 %vm1063_vm0, %v1029_v44  ;;  %v1928_v57 = vsel %vm1927_vm6, %v1925_v34, %v1922_v15  ;;  %v1815_v44 = vmul.f32 -0.5, %v6322_v62  ;;  %v1598_v15 = vsub.f32 0.0, %v1534_v25  ;;  %v1611_v34 = vsub.f32 0.0, %v1547_v6 }
 0x106   : > { %v4571_v32 = vadd.f32 -0.6931472, %v2363_v41  ;;  %v2376_v39 = vadd.f32 %v1928_v57, %v1480_v22  ;;  %v1468_v22 = vmax.f32 %v6135_v1, 0.0  ;;  %v6409_v1 = vadd.f32 %v5832_v14, %v6253_v51  ;;  %v6414_v41 = vpop.permute.xlu0 %3247  ;;  %v796_v14 = vld [vmem:[%s8229_s4 + $0x1d8] sm:$0xff] }
 0x107   : > { %v1816_v23 = vadd.f32 1.0, %v1815_v44  ;;  %v4482_v44 = vsel %vm842_vm8, 1.0, %v8243_v8  ;;  %v5041_v51 = vpop.eup %5040  ;;  %v1935_v6 = vand.u32 2147483647, %v6333_v12  ;;  %vm861_vm12 = vcmp.le.f32.partialorder %v797_v49, 10.0 }
 0x108   : > { %4714 = vmatmul.msk.f32.gmra.mxu3 %vm3553_vm2, %v6287_v28  ;;  %v6372_v28 = vsub.f32 0.0, %v1539_v31  ;;  %2531 = vmatmul.f32.gmra.mxu0 %v4571_v32  ;;  %v4584_v53 = vadd.f32 -0.6931472, %v2376_v39  ;;  %v1929_v31 = vadd.f32 1.0, %v6333_v12  ;;  %v4502_v32 = vsel %vm862_vm9, 1.0, %v8243_v8  ;;  %v6430_v52 = vpop.eup %5042 }
 0x109   : > { %v1817_v25 = vmul.f32 %v6322_v62, %v1816_v23  ;;  %v4481_v39 = vsel %vm841_vm10, 1.0, %v8243_v8  ;;  %v1814_v62 = vmul.f32 0.6931472, %v5041_v51  ;;  %v4936_v48 = vpack.i.bf16 %v4502_v32, %v4482_v44 }
 0x10a   : > { %v6396_v30 = vpop.f32.mrf.mxu1  ;;  %2570 = vmatmul.f32.gmra.mxu2 %v4584_v53  ;;  %5044 = vlog2.f32 %v1929_v31  ;;  %v4501_v23 = vsel %vm861_vm12, 1.0, %v8243_v8  ;;  %vm840_vm13 = vcmp.le.f32.partialorder %v776_v50, 10.0  ;;  %v1667_v21 = vmul.f32 1.442695, %v1598_v15  ;;  %v1031_v50 = vld [vmem:[%s8228_s3 + $0x130] sm:$0xff] }
 0x10b   : > { %vm860_vm14 = vcmp.le.f32.partialorder %v796_v14, 10.0  ;;  %v4480_v53 = vsel %vm840_vm13, 1.0, %v8243_v8  ;;  %v6433_v31 = vpop.permute.xlu1 %3277  ;;  %v1693_v18 = vmul.f32 1.442695, %v1611_v34  ;;  %v1599_v49 = vsub.f32 0.0, %v1535_v54  ;;  %4937 = vperm.xlu0 %4833, %v4936_v48  }
 0x10c   : > { %v4500_v44 = vsel %vm860_vm14, 1.0, %v8243_v8  ;;  %v1934_v14 = vmul.f32 %v6333_v12, %v1933_v7  ;;  %vm1936_vm15 = vcmp.lt.f32.partialorder %v1935_v6, 0.0004427343  ;;  %v1821_v34 = vadd.f32 1.0, %v6398_v59  ;;  %v6453_v7 = vpop.permute.xlu2 %3280 }
 0x10d   : > { %4542 = vmatmul.msk.f32.gmra.mxu1 %vm1063_vm0, %v1030_v42  ;;  %v4941_v42 = vpack.i.bf16 %v4501_v23, %v4481_v39  ;;  %v4946_v32 = vpack.i.bf16 %v4500_v44, %v4480_v53  ;;  %v1548_v39 = vand.u32 2147483647, %v6409_v1  ;;  %v1824_v54 = vmul.f32 -0.5, %v6398_v59 }
 0x10e   : > { %5046 = vpow2.f32 %v1667_v21  ;;  %v4653_v12 = vsel %vm3380_vm7, 1.0, %v8243_v8  ;;  %v1469_v6 = vmax.f32 %v6197_v19, 0.0  ;;  %v775_v21 = vld [vmem:[%s8229_s4 + $0x130] sm:$0xff]  ;;  %v1938_v16 = vadd.f32 1.0, %v6430_v52  ;;  %v6470_v19 = vpop.permute.xlu0 %3256 }
 0x10f   : > { %4942 = vperm.xlu1 %4834, %v4941_v42   ;;  %4947 = vperm.xlu2 %4835, %v4946_v32   ;;  %5048 = vlog2.f32 %v1821_v34  ;;  %v1669_v42 = vmul.f32 1.442695, %v1599_v49  ;;  %v1825_v53 = vadd.f32 1.0, %v1824_v54  ;;  %v1941_v44 = vmul.f32 -0.5, %v6430_v52 }
 0x110   : > { %4715 = vmatmul.msk.f32.gmra.mxu3 %vm3553_vm2, %v4651_v4  ;;  %v5045_v17 = vpop.eup %5044  ;;  %v1820_v4 = vsel %vm6417_vm11, %v1817_v25, %v1814_v62  ;;  %v1294_v25 = vpop.f32.mrf.mxu0  ;;  %5050 = vpow2.f32 %v1693_v18  ;;  %v6473_v18 = vld [vmem:[%s5426_s21] ss:$0 sm:$0xff]  ;;  %vm839_vm3 = vcmp.le.f32.partialorder %v775_v21, 10.0  ;;  %vm838_vm5 = vcmp.le.f32.partialorder %v774_v5, 10.0 }
 0x111   : > { %v2364_v15 = vadd.f32 %v1820_v4, %v1468_v22  ;;  %v1931_v51 = vmul.f32 0.6931472, %v5045_v17  ;;  %v1827_v22 = vand.u32 2147483647, %v6398_v59  ;;  %v795_v17 = vld [vmem:[%s8229_s4 + $0x1d0] sm:$0xff]  ;;  %v6476_v49 = vadd.f32 %v6473_v18, %v1294_v25 }
 0x112   : > { %v6447_v48 = vpop.f32.mrf.mxu1  ;;  %5052 = vlog2.f32 %v1938_v16  ;;  %vm859_vm4 = vcmp.le.f32.partialorder %v795_v17, 10.0  ;;  %v4479_v32 = vsel %vm839_vm3, 1.0, %v8243_v8  ;;  %v1826_v34 = vmul.f32 %v6398_v59, %v1825_v53 }
 0x113   : > { %v4572_v57 = vadd.f32 -0.6931472, %v2364_v15  ;;  %v1937_v62 = vsel %vm1936_vm15, %v1934_v14, %v1931_v51  ;;  %v6484_v15 = vadd.f32 %v6473_v18, %v6325_v9  ;;  %vm6486_vm1 = vcmp.lt.f32.partialorder %v1827_v22, 0.0004427343  ;;  %v773_v51 = vld [vmem:[%s8229_s4 + $0x120] sm:$0xff] }
 0x114   : > { %v2377_v23 = vadd.f32 %v1937_v62, %v1481_v35  ;;  %v1612_v35 = vsub.f32 0.0, %v1548_v39  ;;  %v1944_v14 = vand.u32 2147483647, %v6430_v52  ;;  %v793_v9 = vld [vmem:[%s8229_s4 + $0x1c0] sm:$0xff]  ;;  %v6498_v39 = vpop.eup %5046  ;;  %v4499_v54 = vsel %vm859_vm4, 1.0, %v8243_v8  ;;  %v6503_v62 = vpop.permute.xlu1 %3286 }
 0x115   : > { %4543 = vmatmul.msk.f32.gmra.mxu1 %vm1063_vm0, %v1031_v50  ;;  %2534 = vmatmul.f32.gmra.mxu0 %v4572_v57  ;;  %v794_v50 = vld [vmem:[%s8229_s4 + $0x1c8] sm:$0xff]  ;;  %v4478_v25 = vsel %vm838_vm5, 1.0, %v8243_v8  ;;  %v5049_v57 = vpop.eup %5048  ;;  %8280 = vst [vmem:[#allocation10_spill] sm:$0xff] %v6503_v62  ;;  %v1942_v22 = vadd.f32 1.0, %v1941_v44  ;;  %vm837_vm7 = vcmp.le.f32.partialorder %v773_v51, 10.0  ;;  %vm857_vm8 = vcmp.le.f32.partialorder %v793_v9, 10.0 }
 0x116   : > { %v4585_v4 = vadd.f32 -0.6931472, %v2377_v23  ;;  %vm858_vm6 = vcmp.le.f32.partialorder %v794_v50, 10.0  ;;  %v4951_v23 = vpack.i.bf16 %v4499_v54, %v4479_v32  ;;  %v6506_v16 = vpop.eup %5050  ;;  %v1823_v17 = vmul.f32 0.6931472, %v5049_v57 }
 0x117   : > { %v4498_v21 = vsel %vm858_vm6, 1.0, %v8243_v8  ;;  %v4477_v59 = vsel %vm837_vm7, 1.0, %v8243_v8  ;;  %v1482_v53 = vmax.f32 %v6230_v2, 0.0  ;;  %5054 = vpow2.f32 %v1669_v42  ;;  %v1032_v2 = vld [vmem:[%s8228_s3 + $0x138] sm:$0xff]  ;;  %v6521_v42 = vpop.permute.xlu2 %3289 }
 0x118   : > { %4716 = vmatmul.msk.f32.gmra.mxu3 %vm3553_vm2, %v6248_v0  ;;  %2573 = vmatmul.f32.gmra.mxu2 %v4585_v4  ;;  %v4956_v5 = vpack.i.bf16 %v4498_v21, %v4478_v25  ;;  %v4497_v50 = vsel %vm857_vm8, 1.0, %v8243_v8  ;;  %v5053_v44 = vpop.eup %5052  ;;  %v1695_v32 = vmul.f32 1.442695, %v1612_v35  ;;  %v1536_v54 = vand.u32 2147483647, %v6476_v49  ;;  %8281 = vst [vmem:[#allocation11_spill] sm:$0xff] %v6521_v42 }
 0x119   : > { %4952 = vperm.xlu0 %4833, %v4951_v23   ;;  %v1829_v51 = vsel %vm6486_vm1, %v1826_v34, %v1823_v17  ;;  %v4961_v25 = vpack.i.bf16 %v4497_v50, %v4477_v59  ;;  %v1940_v23 = vmul.f32 0.6931472, %v5053_v44  ;;  %v1943_v35 = vmul.f32 %v6430_v52, %v1942_v22  ;;  %v6532_v17 = vpop.permute.xlu0 %3265  ;;  %v772_v22 = vld [vmem:[%s8229_s4 + $0x118] sm:$0xff] }
 0x11a   : > { %4957 = vperm.xlu1 %4834, %v4956_v5   ;;  %v6515_v9 = vpop.f32.mrf.mxu1  ;;  %v2365_v57 = vadd.f32 %v1829_v51, %v1469_v6  ;;  %v1830_v21 = vadd.f32 1.0, %v6498_v39  ;;  %v1549_v0 = vand.u32 2147483647, %v6484_v15  ;;  %v6529_v34 = vadd.f32 %v6473_v18, %v6396_v30  ;;  %v792_v30 = vld [vmem:[%s8229_s4 + $0x1b8] sm:$0xff] }
 0x11b   : > { %vm1945_vm9 = vcmp.lt.f32.partialorder %v1944_v14, 0.0004427343  ;;  %4962 = vperm.xlu2 %4835, %v4961_v25   ;;  %v1947_v52 = vadd.f32 1.0, %v6506_v16  ;;  %v1600_v14 = vsub.f32 0.0, %v1536_v54  ;;  %v1836_v51 = vand.u32 2147483647, %v6498_v39 }
 0x11c   : > { %v4573_v6 = vadd.f32 -0.6931472, %v2365_v57  ;;  %v1946_v5 = vsel %vm1945_vm9, %v1943_v35, %v1940_v23  ;;  %5056 = vlog2.f32 %v1830_v21  ;;  %v1950_v25 = vmul.f32 -0.5, %v6506_v16  ;;  %v791_v57 = vld [vmem:[%s8229_s4 + $0x1b0] sm:$0xff]  ;;  %v6556_v23 = vpop.permute.xlu1 %3295 }
 0x11d   : > { %4544 = vmatmul.msk.f32.gmra.mxu1 %vm1063_vm0, %v1032_v2  ;;  %5058 = vpow2.f32 %v1695_v32  ;;  %v2378_v59 = vadd.f32 %v1946_v5, %v1482_v53  ;;  %v6541_v44 = vpop.eup %5054  ;;  %v771_v2 = vld [vmem:[%s8229_s4 + $0x110] sm:$0xff]  ;;  %v770_v53 = vld [vmem:[%s8229_s4 + $0x108] sm:$0xff]  ;;  %vm3383_vm10 = vcmp.eq.s32.totalorder %v5795_v61, %v6340_v33  ;;  %v1613_v32 = vsub.f32 0.0, %v1549_v0  ;;  %8282 = vst [vmem:[#allocation12_spill] sm:$0xff] %v6556_v23  ;;  %v788_v33 = vld [vmem:[%s8229_s4 + $0x198] sm:$0xff] }
 0x11e   : > { %2537 = vmatmul.f32.gmra.mxu0 %v4573_v6  ;;  %5060 = vlog2.f32 %v1947_v52  ;;  %vm836_vm11 = vcmp.le.f32.partialorder %v772_v22, 10.0  ;;  %vm856_vm12 = vcmp.le.f32.partialorder %v792_v30, 10.0  ;;  %v1550_v35 = vand.u32 2147483647, %v6529_v34  ;;  %v790_v5 = vld [vmem:[%s8229_s4 + $0x1a8] sm:$0xff] }
 0x11f   : > { %v4586_v54 = vadd.f32 -0.6931472, %v2378_v59  ;;  %v4476_v6 = vsel %vm836_vm11, 1.0, %v8243_v8  ;;  %v4496_v52 = vsel %vm856_vm12, 1.0, %v8243_v8  ;;  %vm835_vm13 = vcmp.le.f32.partialorder %v771_v2, 10.0 }
 0x120   : > { %4717 = vmatmul.msk.f32.gmra.mxu3 %vm3553_vm2, %v4653_v12  ;;  %v1833_v12 = vmul.f32 -0.5, %v6498_v39  ;;  %vm855_vm14 = vcmp.le.f32.partialorder %v791_v57, 10.0  ;;  %vm834_vm15 = vcmp.le.f32.partialorder %v770_v53, 10.0  ;;  %vm6567_vm1 = vcmp.lt.f32.partialorder %v1836_v51, 0.0004427343  ;;  %v6579_v51 = vpop.permute.xlu2 %3298 }
 0x121   : > { %2576 = vmatmul.f32.gmra.mxu2 %v4586_v54  ;;  %v4966_v30 = vpack.i.bf16 %v4496_v52, %v4476_v6  ;;  %v4475_v59 = vsel %vm835_vm13, 1.0, %v8243_v8  ;;  %v4495_v2 = vsel %vm855_vm14, 1.0, %v8243_v8  ;;  %vm854_vm3 = vcmp.le.f32.partialorder %v790_v5, 10.0  ;;  %8285 = vst [vmem:[#allocation13_spill] sm:$0xff] %v6579_v51  ;;  %v6586_v23 = vpop.permute.xlu0 %3274 }
 0x122   : > { %v1834_v50 = vadd.f32 1.0, %v1833_v12  ;;  %v1951_v12 = vadd.f32 1.0, %v1950_v25  ;;  %v5057_v0 = vpop.eup %5056  ;;  %v4474_v57 = vsel %vm834_vm15, 1.0, %v8243_v8  ;;  %v6577_v53 = vpop.f32.mrf.mxu1  ;;  %v1483_v54 = vmax.f32 %v6345_v26, 0.0 }
 0x123   : > { %v1832_v25 = vmul.f32 0.6931472, %v5057_v0  ;;  %v1671_v58 = vmul.f32 1.442695, %v1600_v14  ;;  %4967 = vperm.xlu0 %4833, %v4966_v30   ;;  %v4971_v6 = vpack.i.bf16 %v4495_v2, %v4475_v59  ;;  %v4494_v52 = vsel %vm854_vm3, 1.0, %v8243_v8  ;;  %v1033_v14 = vld [vmem:[%s8228_s3 + $0x140] sm:$0xff] }
 0x124   : > { %v1835_v21 = vmul.f32 %v6498_v39, %v1834_v50  ;;  %v1953_v39 = vand.u32 2147483647, %v6506_v16  ;;  %v6573_v50 = vpop.eup %5058  ;;  %v1952_v5 = vmul.f32 %v6506_v16, %v1951_v12  ;;  %v4976_v4 = vpack.i.bf16 %v4494_v52, %v4474_v57 }
 0x125   : > { %v1697_v42 = vmul.f32 1.442695, %v1613_v32  ;;  %v8286_v62 = vmax.f32 %v6336_v10, 0.0  ;;  %4972 = vperm.xlu1 %4834, %v4971_v6   ;;  %v1839_v26 = vadd.f32 1.0, %v6541_v44  ;;  %v1614_v22 = vsub.f32 0.0, %v1550_v35  ;;  %4545 = vmatmul.msk.f32.gmra.mxu1 %vm1063_vm0, %v1033_v14 }
 0x126   : > { %v1838_v0 = vsel %vm6567_vm1, %v1835_v21, %v1832_v25  ;;  %vm1954_vm4 = vcmp.lt.f32.partialorder %v1953_v39, 0.0004427343  ;;  %v6596_v21 = vadd.f32 %v6473_v18, %v6447_v48  ;;  %4977 = vperm.xlu2 %4835, %v4976_v4   ;;  %v1842_v32 = vmul.f32 -0.5, %v6541_v44  ;;  %v789_v4 = vld [vmem:[%s8229_s4 + $0x1a0] sm:$0xff]  ;;  %v787_v25 = vld [vmem:[%s8229_s4 + $0x190] sm:$0xff] }
 0x127   : > { %v2366_v51 = vadd.f32 %v1838_v0, %v8286_v62  ;;  %5062 = vlog2.f32 %v1839_v26  ;;  %v1845_v12 = vand.u32 2147483647, %v6541_v44  ;;  %v6603_v39 = vadd.f32 %v6473_v18, %v5809_v3 }
 0x128   : > { %4718 = vmatmul.msk.f32.gmra.mxu3 %vm3553_vm2, %v6390_v40  ;;  %v5061_v40 = vpop.eup %5060  ;;  %5064 = vpow2.f32 %v1671_v58  ;;  %v1843_v35 = vadd.f32 1.0, %v1842_v32  ;;  %v1956_v48 = vadd.f32 1.0, %v6573_v50  ;;  %v4656_v3 = vsel %vm3383_vm10, 1.0, %v8243_v8  ;;  %v6618_v58 = vpop.permute.xlu1 %3304 }
 0x129   : > { %v1949_v27 = vmul.f32 0.6931472, %v5061_v40  ;;  %v4574_v10 = vadd.f32 -0.6931472, %v2366_v51  ;;  %5066 = vpow2.f32 %v1697_v42  ;;  %v1959_v59 = vmul.f32 -0.5, %v6573_v50 }
 0x12a   : > { %v1471_v2 = vmax.f32 %v6361_v37, 0.0  ;;  %v1699_v57 = vmul.f32 1.442695, %v1614_v22  ;;  %5068 = vlog2.f32 %v1956_v48  ;;  %v6629_v40 = vpop.f32.mrf.mxu1  ;;  %vm6631_vm5 = vcmp.lt.f32.partialorder %v1845_v12, 0.0004427343  ;;  %v785_v37 = vld [vmem:[%s8229_s4 + $0x180] sm:$0xff] }
 0x12b   : > { %v1955_v16 = vsel %vm1954_vm4, %v1952_v5, %v1949_v27  ;;  %v769_v27 = vld [vmem:[%s8229_s4 + $0x100] sm:$0xff]  ;;  %2540 = vmatmul.f32.gmra.mxu0 %v4574_v10  ;;  %v6637_v51 = vadd.f32 %v6473_v18, %v6515_v9  ;;  %vm853_vm7 = vcmp.le.f32.partialorder %v789_v4, 10.0  ;;  %vm3385_vm8 = vcmp.eq.s32.totalorder %v5795_v61, %v6176_v55  ;;  %v786_v9 = vld [vmem:[%s8229_s4 + $0x188] sm:$0xff]  ;;  %v6650_v5 = vpop.permute.xlu2 %3307 }
 0x12c   : > { %v2379_v62 = vadd.f32 %v1955_v16, %v1483_v54  ;;  %vm833_vm6 = vcmp.le.f32.partialorder %v769_v27, 10.0  ;;  %v1844_v54 = vmul.f32 %v6541_v44, %v1843_v35  ;;  %v4493_v52 = vsel %vm853_vm7, 1.0, %v8243_v8  ;;  %v1034_v44 = vld [vmem:[%s8228_s3 + $0x148] sm:$0xff]  ;;  %v6663_v35 = vpop.permute.xlu0 %3283 }
 0x12d   : > { %v4473_v6 = vsel %vm833_vm6, 1.0, %v8243_v8  ;;  %vm851_vm9 = vcmp.le.f32.partialorder %v787_v25, 10.0  ;;  %v5063_v0 = vpop.eup %5062  ;;  %v1960_v26 = vadd.f32 1.0, %v1959_v59  ;;  %vm852_vm10 = vcmp.le.f32.partialorder %v788_v33, 10.0  ;;  %4546 = vmatmul.msk.f32.gmra.mxu1 %vm1063_vm0, %v1034_v44 }
 0x12e   : > { %v4587_v30 = vadd.f32 -0.6931472, %v2379_v62  ;;  %v4981_v14 = vpack.i.bf16 %v4493_v52, %v4473_v6  ;;  %v4491_v22 = vsel %vm851_vm9, 1.0, %v8243_v8  ;;  %v6656_v16 = vpop.eup %5064  ;;  %v1841_v32 = vmul.f32 0.6931472, %v5063_v0 }
 0x12f   : > { %v1962_v10 = vand.u32 2147483647, %v6573_v50  ;;  %v4492_v62 = vsel %vm852_vm10, 1.0, %v8243_v8  ;;  %vm849_vm11 = vcmp.le.f32.partialorder %v785_v37, 10.0  ;;  %v6661_v12 = vpop.eup %5066  ;;  %v1484_v48 = vmax.f32 %v6409_v1, 0.0 }
 0x130   : > { %4719 = vmatmul.msk.f32.gmra.mxu3 %vm3553_vm2, %v6270_v60  ;;  %v1551_v60 = vand.u32 2147483647, %v6596_v21  ;;  %2579 = vmatmul.f32.gmra.mxu2 %v4587_v30  ;;  %v4986_v27 = vpack.i.bf16 %v4491_v22, %v4492_v62  ;;  %vm850_vm12 = vcmp.le.f32.partialorder %v786_v9, 10.0  ;;  %v4489_v4 = vsel %vm849_vm11, 1.0, %v8243_v8  ;;  %v5069_v30 = vpop.eup %5068 }
 0x131   : > { %4982 = vperm.xlu0 %4833, %v4981_v14   ;;  %5070 = vpow2.f32 %v1699_v57  ;;  %v1847_v25 = vsel %vm6631_vm5, %v1844_v54, %v1841_v32  ;;  %v4490_v33 = vsel %vm850_vm12, 1.0, %v8243_v8  ;;  %v1958_v6 = vmul.f32 0.6931472, %v5069_v30  ;;  %v6678_v54 = vpop.permute.xlu1 %3313 }
 0x132   : > { %v1615_v59 = vsub.f32 0.0, %v1551_v60  ;;  %v2367_v37 = vadd.f32 %v1847_v25, %v1471_v2  ;;  %v1961_v52 = vmul.f32 %v6573_v50, %v1960_v26  ;;  %4987 = vperm.xlu1 %4834, %v4986_v27   ;;  %v4991_v1 = vpack.i.bf16 %v4489_v4, %v4490_v33  ;;  %v6675_v60 = vpop.f32.mrf.mxu1 }
 0x133   : > { %v1552_v9 = vand.u32 2147483647, %v6637_v51  ;;  %vm1963_vm13 = vcmp.lt.f32.partialorder %v1962_v10, 0.0004427343  ;;  %v1848_v0 = vadd.f32 1.0, %v6656_v16  ;;  %v1851_v57 = vmul.f32 -0.5, %v6656_v16  ;;  %v6705_v25 = vpop.permute.xlu2 %3316 }
 0x134   : > { %v1677_v42 = vmul.f32 1.442695, %v6372_v28  ;;  %v1964_v2 = vsel %vm1963_vm13, %v1961_v52, %v1958_v6  ;;  %4992 = vperm.xlu2 %4835, %v4991_v1   ;;  %v1860_v50 = vmul.f32 -0.5, %v6188_v63  ;;  %v1540_v26 = vand.u32 2147483647, %v6603_v39  ;;  %v1035_v10 = vld [vmem:[%s8228_s3 + $0x150] sm:$0xff]  ;;  %v6710_v55 = vpop.permute.xlu0 %3292 }
 0x135   : > { %vm3384_vm14 = vcmp.eq.s32.totalorder %v5795_v61, %v6143_v46  ;;  %v2380_v14 = vadd.f32 %v1964_v2, %v1484_v48  ;;  %5072 = vlog2.f32 %v1848_v0  ;;  %v1701_v22 = vmul.f32 1.442695, %v1615_v59  ;;  %4547 = vmatmul.msk.f32.gmra.mxu1 %vm1063_vm0, %v1035_v10 }
 0x136   : > { %v1852_v44 = vadd.f32 1.0, %v1851_v57  ;;  %v6686_v28 = vadd.f32 %v6473_v18, %v6577_v53  ;;  %v1965_v32 = vadd.f32 1.0, %v6661_v12  ;;  %v1616_v27 = vsub.f32 0.0, %v1552_v9 }
 0x137   : > { %v6692_v62 = vpop.eup %5070  ;;  %v4588_v4 = vadd.f32 -0.6931472, %v2380_v14  ;;  %v1854_v48 = vand.u32 2147483647, %v6656_v16  ;;  %v1968_v30 = vmul.f32 -0.5, %v6661_v12  ;;  %v4658_v53 = vsel %vm3385_vm8, 1.0, %v8243_v8 }
 0x138   : > { %4720 = vmatmul.msk.f32.gmra.mxu3 %vm3553_vm2, %v4656_v3  ;;  %v4575_v3 = vadd.f32 -0.6931472, %v2367_v37  ;;  %v4657_v59 = vsel %vm3384_vm14, 1.0, %v8243_v8  ;;  %5074 = vlog2.f32 %v1965_v32  ;;  %v1861_v33 = vadd.f32 1.0, %v1860_v50 }
 0x139   : > { %5076 = vpow2.f32 %v1677_v42  ;;  %v1604_v37 = vsub.f32 0.0, %v1540_v26  ;;  %2582 = vmatmul.f32.gmra.mxu2 %v4588_v4  ;;  %v1859_v6 = vmul.f32 0.6931472, %v6311_v43  ;;  %v1863_v52 = vand.u32 2147483647, %v6188_v63  ;;  %v6732_v10 = vpop.permute.xlu1 %3322 }
 0x13a   : > { %2543 = vmatmul.f32.gmra.mxu0 %v4575_v3  ;;  %v1472_v1 = vmax.f32 %v6476_v49, 0.0  ;;  %5078 = vpow2.f32 %v1701_v22  ;;  %v1853_v46 = vmul.f32 %v6656_v16, %v1852_v44  ;;  %v1553_v9 = vand.u32 2147483647, %v6686_v28  ;;  %v6720_v2 = vpop.f32.mrf.mxu1 }
 0x13b   : > { %v5073_v0 = vpop.eup %5072  ;;  %v1703_v57 = vmul.f32 1.442695, %v1616_v27  ;;  %vm6715_vm15 = vcmp.lt.f32.partialorder %v1854_v48, 0.0004427343  ;;  %v1969_v43 = vadd.f32 1.0, %v1968_v30  ;;  %v1974_v3 = vadd.f32 1.0, %v6692_v62 }
 0x13c   : > { %v1850_v50 = vmul.f32 0.6931472, %v5073_v0  ;;  %v1971_v26 = vand.u32 2147483647, %v6661_v12  ;;  %v1862_v49 = vmul.f32 %v6188_v63, %v1861_v33  ;;  %v1977_v16 = vmul.f32 -0.5, %v6692_v62  ;;  %v1036_v48 = vld [vmem:[%s8228_s3 + $0x158] sm:$0xff] }
 0x13d   : > { %v1679_v14 = vmul.f32 1.442695, %v1604_v37  ;;  %vm3386_vm1 = vcmp.eq.s32.totalorder %v5795_v61, %v6414_v41  ;;  %vm6727_vm3 = vcmp.lt.f32.partialorder %v1863_v52, 0.0004427343  ;;  %5080 = vlog2.f32 %v1974_v3  ;;  %4548 = vmatmul.msk.f32.gmra.mxu1 %vm1063_vm0, %v1036_v48 }
 0x13e   : > { %v5075_v44 = vpop.eup %5074  ;;  %v1485_v32 = vmax.f32 %v6484_v15, 0.0  ;;  %v1856_v27 = vsel %vm6715_vm15, %v1853_v46, %v1850_v50  ;;  %v1617_v63 = vsub.f32 0.0, %v1553_v9  ;;  %v1865_v4 = vsel %vm6727_vm3, %v1862_v49, %v1859_v6 }
 0x13f   : > { %v6741_v30 = vpop.eup %5076  ;;  %v1967_v33 = vmul.f32 0.6931472, %v5075_v44  ;;  %v1970_v37 = vmul.f32 %v6661_v12, %v1969_v43  ;;  %v6746_v15 = vadd.f32 %v6473_v18, %v6629_v40  ;;  %5082 = vpow2.f32 %v1703_v57  ;;  %v6755_v12 = vpop.permute.xlu2 %3325 }
 0x140   : > { %4721 = vmatmul.msk.f32.gmra.mxu3 %vm3553_vm2, %v4657_v59  ;;  %v2368_v59 = vadd.f32 %v1856_v27, %v1472_v1  ;;  %v6749_v52 = vpop.eup %5078  ;;  %vm1972_vm4 = vcmp.lt.f32.partialorder %v1971_v26, 0.0004427343  ;;  %v1978_v6 = vadd.f32 1.0, %v1977_v16  ;;  %v1866_v46 = vadd.f32 1.0, %v6305_v24  ;;  %8293 = vst [vmem:[#allocation14_spill] sm:$0xff] %v6755_v12  ;;  %v6768_v44 = vpop.permute.xlu0 %3301 }
 0x141   : > { %v1973_v0 = vsel %vm1972_vm4, %v1970_v37, %v1967_v33  ;;  %v1980_v1 = vand.u32 2147483647, %v6692_v62  ;;  %v1869_v42 = vmul.f32 -0.5, %v6305_v24  ;;  %v1486_v40 = vmax.f32 %v6529_v34, 0.0 }
 0x142   : > { %v4576_v9 = vadd.f32 -0.6931472, %v2368_v59  ;;  %v1705_v43 = vmul.f32 1.442695, %v1617_v63  ;;  %v2381_v3 = vadd.f32 %v1973_v0, %v1485_v32  ;;  %5084 = vlog2.f32 %v1866_v46  ;;  %v6766_v22 = vpop.f32.mrf.mxu1 }
 0x143   : > { %v5081_v57 = vpop.eup %5080  ;;  %v8294_v50 = vmax.f32 %v5863_v29, 0.0  ;;  %v1554_v49 = vand.u32 2147483647, %v6746_v15  ;;  %v6763_v16 = vadd.f32 %v6473_v18, %v6675_v60  ;;  %v1979_v27 = vmul.f32 %v6692_v62, %v1978_v6  ;;  %v6776_v33 = vpop.f32.mrf.mxu3  ;;  %v1037_v62 = vld [vmem:[%s8228_s3 + $0x160] sm:$0xff] }
 0x144   : > { %2546 = vmatmul.f32.gmra.mxu0 %v4576_v9  ;;  %v4589_v34 = vadd.f32 -0.6931472, %v2381_v3  ;;  %v1976_v32 = vmul.f32 0.6931472, %v5081_v57  ;;  %v1986_v63 = vmul.f32 -0.5, %v6749_v52  ;;  %v1870_v29 = vadd.f32 1.0, %v1869_v42 }
 0x145   : > { %v2369_v26 = vadd.f32 %v1865_v4, %v8294_v50  ;;  %vm1981_vm5 = vcmp.lt.f32.partialorder %v1980_v1, 0.0004427343  ;;  %v1872_v4 = vand.u32 2147483647, %v6305_v24  ;;  %v6773_v48 = vpop.eup %5082  ;;  %v1474_v60 = vmax.f32 %v6001_v45, 0.0  ;;  %4549 = vmatmul.msk.f32.gmra.mxu1 %vm1063_vm0, %v1037_v62 }
 0x146   : > { %2585 = vmatmul.f32.gmra.mxu2 %v4589_v34  ;;  %v1982_v59 = vsel %vm1981_vm5, %v1979_v27, %v1976_v32  ;;  %vm3387_vm6 = vcmp.eq.s32.totalorder %v5795_v61, %v6218_v36  ;;  %v1618_v37 = vsub.f32 0.0, %v1554_v49  ;;  %v1555_v46 = vand.u32 2147483647, %v6763_v16 }
 0x147   : > { %v2382_v6 = vadd.f32 %v1982_v59, %v1486_v40  ;;  %v4659_v45 = vsel %vm3386_vm1, 1.0, %v8243_v8  ;;  %v1987_v0 = vadd.f32 1.0, %v1986_v63  ;;  %v1989_v1 = vand.u32 2147483647, %v6749_v52 }
 0x148   : > { %4722 = vmatmul.msk.f32.gmra.mxu3 %vm3553_vm2, %v4658_v53  ;;  %v1983_v53 = vadd.f32 1.0, %v6749_v52  ;;  %v5085_v9 = vpop.eup %5084  ;;  %v4577_v42 = vadd.f32 -0.6931472, %v2369_v26  ;;  %v1871_v40 = vmul.f32 %v6305_v24, %v1870_v29  ;;  %vm6793_vm7 = vcmp.lt.f32.partialorder %v1872_v4, 0.0004427343  ;;  %v6808_v29 = vpop.permute.xlu2 %3331 }
 0x149   : > { %v1868_v3 = vmul.f32 0.6931472, %v5085_v9  ;;  %v4590_v50 = vadd.f32 -0.6931472, %v2382_v6  ;;  %v1875_v41 = vadd.f32 1.0, %v6741_v30  ;;  %v1878_v49 = vmul.f32 -0.5, %v6741_v30  ;;  %v6822_v9 = vpop.permute.xlu0 %3310 }
 0x14a   : > { %5086 = vlog2.f32 %v1983_v53  ;;  %v1487_v34 = vmax.f32 %v6596_v21, 0.0  ;;  %v1707_v26 = vmul.f32 1.442695, %v1618_v37  ;;  %v1619_v32 = vsub.f32 0.0, %v1555_v46  ;;  %v6804_v27 = vpop.f32.mrf.mxu1  ;;  %8297 = vst [vmem:[#allocation15_spill] sm:$0xff] %v6808_v29 }
 0x14b   : > { %5088 = vpow2.f32 %v1679_v14  ;;  %v6789_v14 = vpop.permute.xlu1 %3169  ;;  %v1874_v24 = vsel %vm6793_vm7, %v1871_v40, %v1868_v3  ;;  %v1988_v59 = vmul.f32 %v6749_v52, %v1987_v0  ;;  %vm6811_vm8 = vcmp.lt.f32.partialorder %v1989_v1, 0.0004427343  ;;  %v6827_v1 = vpop.f32.mrf.mxu3 }
 0x14c   : > { %5090 = vpow2.f32 %v1705_v43  ;;  %v1992_v43 = vadd.f32 1.0, %v6773_v48  ;;  %2549 = vmatmul.f32.gmra.mxu0 %v4577_v42  ;;  %v2370_v21 = vadd.f32 %v1874_v24, %v1474_v60  ;;  %v6817_v37 = vadd.f32 %v6473_v18, %v6720_v2  ;;  %v1038_v2 = vld [vmem:[%s8228_s3 + $0x168] sm:$0xff] }
 0x14d   : > { %5092 = vlog2.f32 %v1875_v41  ;;  %v1995_v6 = vmul.f32 -0.5, %v6773_v48  ;;  %v1881_v0 = vand.u32 2147483647, %v6741_v30  ;;  %vm3388_vm9 = vcmp.eq.s32.totalorder %v5795_v61, %v6242_v11  ;;  %4550 = vmatmul.msk.f32.gmra.mxu1 %vm1063_vm0, %v1038_v2 }
 0x14e   : > { %5094 = vlog2.f32 %v1992_v43  ;;  %2588 = vmatmul.f32.gmra.mxu2 %v4590_v50  ;;  %v1475_v60 = vmax.f32 %v6260_v13, 0.0  ;;  %v4660_v3 = vsel %vm3387_vm6, 1.0, %v8243_v8  ;;  %v1488_v40 = vmax.f32 %v6637_v51, 0.0 }
 0x14f   : > { %v1709_v57 = vmul.f32 1.442695, %v1619_v32  ;;  %v1996_v50 = vadd.f32 1.0, %v1995_v6  ;;  %5096 = vpow2.f32 %v1707_v26  ;;  %v4578_v41 = vadd.f32 -0.6931472, %v2370_v21 }
 0x150   : > { %4723 = vmatmul.msk.f32.gmra.mxu3 %vm3553_vm2, %v4659_v45  ;;  %v5087_v53 = vpop.eup %5086  ;;  %v1879_v45 = vadd.f32 1.0, %v1878_v49  ;;  %v1556_v49 = vand.u32 2147483647, %v6817_v37  ;;  %v1998_v43 = vand.u32 2147483647, %v6773_v48  ;;  %v6864_v2 = vpop.permute.xlu2 %3175  ;;  %vm3389_vm12 = vcmp.eq.s32.totalorder %v5795_v61, %v6470_v19 }
 0x151   : > { %v6806_v63 = vpop.eup %5088  ;;  %v1985_v4 = vmul.f32 0.6931472, %v5087_v53  ;;  %vm6847_vm10 = vcmp.lt.f32.partialorder %v1881_v0, 0.0004427343  ;;  %v1997_v6 = vmul.f32 %v6773_v48, %v1996_v50  ;;  %v1039_v48 = vld [vmem:[%s8228_s3 + $0x170] sm:$0xff]  ;;  %vm3390_vm1 = vcmp.eq.s32.totalorder %v5795_v61, %v6293_v38 }
 0x152   : > { %v6820_v46 = vpop.eup %5090  ;;  %v1880_v24 = vmul.f32 %v6741_v30, %v1879_v45  ;;  %v1884_v51 = vadd.f32 1.0, %v6806_v63  ;;  %v6858_v21 = vpop.f32.mrf.mxu1  ;;  %v1620_v0 = vsub.f32 0.0, %v1556_v49  ;;  %vm1999_vm11 = vcmp.lt.f32.partialorder %v1998_v43, 0.0004427343 }
 0x153   : > { %v1991_v52 = vsel %vm6811_vm8, %v1988_v59, %v1985_v4  ;;  %v5093_v13 = vpop.eup %5092  ;;  %v6844_v53 = vpop.permute.xlu1 %3334  ;;  %v1887_v4 = vmul.f32 -0.5, %v6806_v63  ;;  %v6855_v59 = vadd.f32 %v6473_v18, %v6766_v22  ;;  %v2001_v62 = vadd.f32 1.0, %v6820_v46 }
 0x154   : > { %v2383_v42 = vadd.f32 %v1991_v52, %v1487_v34  ;;  %8300 = vst [vmem:[#allocation16_spill] sm:$0xff] %v6844_v53  ;;  %v5095_v26 = vpop.eup %5094  ;;  %2552 = vmatmul.f32.gmra.mxu0 %v4578_v41  ;;  %v1877_v32 = vmul.f32 0.6931472, %v5093_v13  ;;  %5098 = vlog2.f32 %v1884_v51  ;;  %v2004_v52 = vmul.f32 -0.5, %v6820_v46  ;;  %v6867_v41 = vpop.f32.mrf.mxu3 }
 0x155   : > { %v1994_v30 = vmul.f32 0.6931472, %v5095_v26  ;;  %5100 = vlog2.f32 %v2001_v62  ;;  %v6872_v50 = vpop.eup %5096  ;;  %v4661_v49 = vsel %vm3388_vm9, 1.0, %v8243_v8  ;;  %v1888_v13 = vadd.f32 1.0, %v1887_v4  ;;  %4551 = vmatmul.msk.f32.gmra.mxu1 %vm1063_vm0, %v1039_v48 }
 0x156   : > { %v4591_v34 = vadd.f32 -0.6931472, %v2383_v42  ;;  %v1883_v45 = vsel %vm6847_vm10, %v1880_v24, %v1877_v32  ;;  %5102 = vpow2.f32 %v1709_v57  ;;  %v1890_v24 = vand.u32 2147483647, %v6806_v63 }
 0x157   : > { %v2371_v22 = vadd.f32 %v1883_v45, %v1475_v60  ;;  %v2000_v42 = vsel %vm1999_vm11, %v1997_v6, %v1994_v30  ;;  %v1476_v60 = vmax.f32 %v6603_v39, 0.0  ;;  %v2005_v36 = vadd.f32 1.0, %v2004_v52 }
 0x158   : > { %4724 = vmatmul.msk.f32.gmra.mxu3 %vm3553_vm2, %v4660_v3  ;;  %2591 = vmatmul.f32.gmra.mxu2 %v4591_v34  ;;  %v1557_v3 = vand.u32 2147483647, %v6855_v59  ;;  %v2384_v43 = vadd.f32 %v2000_v42, %v1488_v40  ;;  %v6880_v34 = vpop.permute.xlu0 %3319  ;;  %v1711_v26 = vmul.f32 1.442695, %v1620_v0  ;;  %v2007_v11 = vand.u32 2147483647, %v6820_v46 }
 0x159   : > { %v4579_v51 = vadd.f32 -0.6931472, %v2371_v22  ;;  %v6889_v39 = vadd.f32 %v6473_v18, %v6804_v27  ;;  %v2010_v57 = vadd.f32 1.0, %v6872_v50  ;;  %v1489_v30 = vmax.f32 %v6686_v28, 0.0 }
 0x15a   : > { %v5099_v40 = vpop.eup %5098  ;;  %v4592_v32 = vadd.f32 -0.6931472, %v2384_v43  ;;  %v1621_v4 = vsub.f32 0.0, %v1557_v3  ;;  %v1889_v52 = vmul.f32 %v6806_v63, %v1888_v13  ;;  %v2013_v45 = vmul.f32 -0.5, %v6872_v50  ;;  %v1366_v0 = vpop.f32.mrf.mxu1 }
 0x15b   : > { %v5101_v62 = vpop.eup %5100  ;;  %v1886_v6 = vmul.f32 0.6931472, %v5099_v40  ;;  %v6895_v22 = vpop.permute.xlu1 %3178  ;;  %vm1891_vm13 = vcmp.lt.f32.partialorder %v1890_v24, 0.0004427343  ;;  %v2006_v3 = vmul.f32 %v6820_v46, %v2005_v36  ;;  %5104 = vlog2.f32 %v2010_v57  ;;  %v1040_v24 = vld [vmem:[%s8228_s3 + $0x178] sm:$0xff] }
 0x15c   : > { %2555 = vmatmul.f32.gmra.mxu0 %v4579_v51  ;;  %v2003_v42 = vmul.f32 0.6931472, %v5101_v62  ;;  %5106 = vpow2.f32 %v1711_v26  ;;  %vm2008_vm14 = vcmp.lt.f32.partialorder %v2007_v11, 0.0004427343  ;;  %v1558_v48 = vand.u32 2147483647, %v6889_v39  ;;  %v5103_v28 = vpop.eup %5102  ;;  %v6899_v13 = vpop.f32.mrf.mxu3 }
 0x15d   : > { %v1892_v27 = vsel %vm1891_vm13, %v1889_v52, %v1886_v6  ;;  %v1713_v43 = vmul.f32 1.442695, %v1621_v4  ;;  %v2014_v40 = vadd.f32 1.0, %v2013_v45  ;;  %4552 = vmatmul.msk.f32.gmra.mxu1 %vm1063_vm0, %v1040_v24  ;;  %v4662_v46 = vsel %vm3389_vm12, 1.0, %v8243_v8  ;;  %v6909_v36 = vpop.permute.xlu2 %3340 }
 0x15e   : > { %v2009_v63 = vsel %vm2008_vm14, %v2006_v3, %v2003_v42  ;;  %8303 = vst [vmem:[#allocation17_spill] sm:$0xff] %v6909_v36  ;;  %v1622_v11 = vsub.f32 0.0, %v1558_v48  ;;  %v2019_v4 = vadd.f32 1.0, %v5103_v28  ;;  %v2022_v19 = vmul.f32 -0.5, %v5103_v28 }
 0x15f   : > { %v2385_v51 = vadd.f32 %v2009_v63, %v1489_v30  ;;  %5108 = vpow2.f32 %v1713_v43  ;;  %v2015_v45 = vmul.f32 %v6872_v50, %v2014_v40  ;;  %vm3360_vm3 = vcmp.eq.s32.totalorder %v5795_v61, %v6789_v14 }
 0x160   : > { %4725 = vmatmul.msk.f32.gmra.mxu3 %vm3553_vm2, %v4661_v49  ;;  %2594 = vmatmul.f32.gmra.mxu2 %v4592_v32  ;;  %v2372_v49 = vadd.f32 %v1892_v27, %v1476_v60  ;;  %v2016_v60 = vand.u32 2147483647, %v6872_v50  ;;  %v6914_v32 = vadd.f32 %v6473_v18, %v6858_v21  ;;  %v6917_v62 = vpop.permute.xlu0 %3328  ;;  %5110 = vlog2.f32 %v2019_v4 }
 0x161   : > { %v5105_v57 = vpop.eup %5104  ;;  %8304 = vst [vmem:[#allocation18_spill] sm:$0xff] %v6917_v62  ;;  %v4593_v30 = vadd.f32 -0.6931472, %v2385_v51  ;;  %v1490_v21 = vmax.f32 %v6746_v15, 0.0  ;;  %v1715_v3 = vmul.f32 1.442695, %v1622_v11  ;;  %vm3391_vm5 = vcmp.eq.s32.totalorder %v5795_v61, %v6330_v20 }
 0x162   : > { %v4580_v26 = vadd.f32 -0.6931472, %v2372_v49  ;;  %v6919_v6 = vpop.eup %5106  ;;  %v2012_v52 = vmul.f32 0.6931472, %v5105_v57  ;;  %v1369_v42 = vpop.f32.mrf.mxu1  ;;  %vm2017_vm15 = vcmp.lt.f32.partialorder %v2016_v60, 0.0004427343  ;;  %vm3392_vm8 = vcmp.eq.s32.totalorder %v5795_v61, %v6532_v17 }
 0x163   : > { %v1559_v48 = vand.u32 2147483647, %v6914_v32  ;;  %v6926_v49 = vpop.permute.xlu1 %3343  ;;  %v2023_v63 = vadd.f32 1.0, %v2022_v19  ;;  %v2028_v24 = vadd.f32 1.0, %v6919_v6  ;;  %v1041_v15 = vld [vmem:[%s8228_s3 + $0x180] sm:$0xff]  ;;  %v4663_v40 = vsel %vm3390_vm1, 1.0, %v8243_v8 }
 0x164   : > { %2558 = vmatmul.f32.gmra.mxu0 %v4580_v26  ;;  %v2018_v27 = vsel %vm2017_vm15, %v2015_v45, %v2012_v52  ;;  %8305 = vst [vmem:[#allocation19_spill] sm:$0xff] %v6926_v49  ;;  %v6929_v50 = vpop.f32.mrf.mxu3  ;;  %v2025_v38 = vand.u32 2147483647, %v5103_v28  ;;  %v6941_v26 = vadd.f32 %v6473_v18, %v1366_v0  ;;  %v2031_v11 = vmul.f32 -0.5, %v6919_v6 }
 0x165   : > { %v2386_v43 = vadd.f32 %v2018_v27, %v1490_v21  ;;  %4553 = vmatmul.msk.f32.gmra.mxu1 %vm1063_vm0, %v1041_v15  ;;  %v6937_v51 = vpop.eup %5108  ;;  %5112 = vlog2.f32 %v2028_v24  ;;  %v1623_v60 = vsub.f32 0.0, %v1559_v48  ;;  %v6945_v4 = vpop.permute.xlu2 %3184  ;;  %v4633_v14 = vsel %vm3360_vm3, 1.0, %v8243_v8 }
 0x166   : > { %5114 = vpow2.f32 %v1715_v3  ;;  %v2024_v19 = vmul.f32 %v5103_v28, %v2023_v63  ;;  %vm2026_vm4 = vcmp.lt.f32.partialorder %v2025_v38, 0.0004427343  ;;  %v6949_v52 = vpop.f32.mrf.mxu2  ;;  %v1491_v0 = vmax.f32 %v6763_v16, 0.0  ;;  %v1042_v16 = vld [vmem:[%s8228_s3 + $0x188] sm:$0xff] }
 0x167   : > { %v4594_v57 = vadd.f32 -0.6931472, %v2386_v43  ;;  %v2037_v27 = vadd.f32 1.0, %v6937_v51  ;;  %v1717_v48 = vmul.f32 1.442695, %v1623_v60  ;;  %v2032_v24 = vadd.f32 1.0, %v2031_v11 }
 0x168   : > { %4726 = vmatmul.msk.f32.gmra.mxu3 %vm3553_vm2, %v4662_v46  ;;  %2597 = vmatmul.f32.gmra.mxu2 %v4593_v30  ;;  %v5111_v46 = vpop.eup %5110  ;;  %v3173_v21 = vpop.permute.xlu0 %3172  ;;  %v1560_v43 = vand.u32 2147483647, %v6941_v26  ;;  %v2034_v15 = vand.u32 2147483647, %v6919_v6  ;;  %v6970_v11 = vadd.f32 %v6473_v18, %v1369_v42  ;;  %v1492_v42 = vmax.f32 %v6817_v37, 0.0  ;;  %v1043_v37 = vld [vmem:[%s8228_s3 + $0x190] sm:$0xff] }
 0x169   : > { %v2021_v30 = vmul.f32 0.6931472, %v5111_v46  ;;  %vm3361_vm6 = vcmp.eq.s32.totalorder %v5795_v61, %v3173_v21  ;;  %5116 = vlog2.f32 %v2037_v27  ;;  %v4664_v46 = vsel %vm3391_vm5, 1.0, %v8243_v8 }
 0x16a   : > { %v1372_v45 = vpop.f32.mrf.mxu1  ;;  %5118 = vpow2.f32 %v1717_v48  ;;  %vm2035_vm7 = vcmp.lt.f32.partialorder %v2034_v15, 0.0004427343  ;;  %v2043_v15 = vand.u32 2147483647, %v6937_v51  ;;  %vm3362_vm9 = vcmp.eq.s32.totalorder %v5795_v61, %v6864_v2 }
 0x16b   : > { %v2027_v3 = vsel %vm2026_vm4, %v2024_v19, %v2021_v30  ;;  %v5113_v28 = vpop.eup %5112  ;;  %v6967_v60 = vpop.permute.xlu1 %3187  ;;  %v2040_v30 = vmul.f32 -0.5, %v6937_v51  ;;  %v4634_v19 = vsel %vm3361_vm6, 1.0, %v8243_v8  ;;  %v4635_v2 = vsel %vm3362_vm9, 1.0, %v8243_v8 }
 0x16c   : > { %4697 = vmatmul.msk.f32.vlgmr.msrb.gmra.mxu0 %vm3553_vm2, %v4633_v14  ;;  %v2387_v63 = vadd.f32 %v2027_v3, %v1491_v0  ;;  %v6957_v38 = vpop.f32.mrf.mxu3  ;;  %v2030_v20 = vmul.f32 0.6931472, %v5113_v28  ;;  %v1624_v14 = vsub.f32 0.0, %v1560_v43  ;;  %vm2044_vm10 = vcmp.lt.f32.partialorder %v2043_v15, 0.0004427343 }
 0x16d   : > { %4554 = vmatmul.msk.f32.gmra.mxu1 %vm1063_vm0, %v1042_v16  ;;  %v6978_v18 = vpop.permute.xlu2 %3349  ;;  %vm3393_vm11 = vcmp.eq.s32.totalorder %v5795_v61, %v6357_v47  ;;  %vm3363_vm12 = vcmp.eq.s32.totalorder %v5795_v61, %v6895_v22  ;;  %vm3394_vm14 = vcmp.eq.s32.totalorder %v5795_v61, %v6400_v56  ;;  %vm3395_vm1 = vcmp.eq.s32.totalorder %v5795_v61, %v6586_v23 }
 0x16e   : > { %v4595_v21 = vadd.f32 -0.6931472, %v2387_v63  ;;  %8306 = vst [vmem:[#allocation20_spill] sm:$0xff] %v6978_v18  ;;  %v1719_v43 = vmul.f32 1.442695, %v1624_v14  ;;  %v6984_v28 = vpop.f32.mrf.mxu2  ;;  %v4665_v14 = vsel %vm3392_vm8, 1.0, %v8243_v8  ;;  %vm3365_vm4 = vcmp.eq.s32.totalorder %v5795_v61, %v6945_v4 }
 0x16f   : > { %v7062_v18 = vld [vmem:[%s5441_s30] ss:$0 sm:$0xff]  ;;  %vm3396_vm6 = vcmp.eq.s32.totalorder %v5795_v61, %v6433_v31  ;;  %vm3397_vm9 = vcmp.eq.s32.totalorder %v5795_v61, %v6453_v7 }
 0x170   : > { %4727 = vmatmul.msk.f32.gmra.mxu3 %vm3553_vm2, %v4663_v40  ;;  %2600 = vmatmul.f32.gmra.mxu2 %v4594_v57  ;;  %v6962_v40 = vpop.eup %5114  ;;  %v2033_v57 = vmul.f32 %v6919_v6, %v2032_v24  ;;  %v1561_v6 = vand.u32 2147483647, %v6970_v11  ;;  %v2041_v24 = vadd.f32 1.0, %v2040_v30  ;;  %v6996_v17 = vpop.permute.xlu0 %3337 }
 0x171   : > { %v2046_v0 = vadd.f32 1.0, %v6962_v40  ;;  %v5117_v48 = vpop.eup %5116  ;;  %8307 = vst [vmem:[#allocation21_spill] sm:$0xff] %v6996_v17 }
 0x172   : > { %v2036_v3 = vsel %vm2035_vm7, %v2033_v57, %v2030_v20  ;;  %v1375_v27 = vpop.f32.mrf.mxu1  ;;  %v6992_v20 = vpop.eup %5118  ;;  %v1625_v57 = vsub.f32 0.0, %v1561_v6  ;;  %v2042_v30 = vmul.f32 %v6937_v51, %v2041_v24  ;;  %v1493_v24 = vmax.f32 %v6855_v59, 0.0  ;;  %v1044_v59 = vld [vmem:[%s8228_s3 + $0x198] sm:$0xff] }
 0x173   : > { %v2388_v63 = vadd.f32 %v2036_v3, %v1492_v42  ;;  %5120 = vlog2.f32 %v2046_v0  ;;  %v2049_v0 = vmul.f32 -0.5, %v6962_v40  ;;  %v7010_v3 = vpop.permute.xlu1 %3352  ;;  %v2055_v6 = vadd.f32 1.0, %v6992_v20 }
 0x174   : > { %4698 = vmatmul.msk.f32.gmra.mxu0 %vm3553_vm2, %v4634_v19  ;;  %v6987_v16 = vpop.f32.mrf.mxu3  ;;  %5122 = vpow2.f32 %v1719_v43  ;;  %v7002_v19 = vld [vmem:[%s5426_s21] ss:$0 sm:$0xff]  ;;  %8308 = vst [vmem:[#allocation22_spill] sm:$0xff] %v7010_v3  ;;  %v2052_v3 = vand.u32 2147483647, %v6962_v40  ;;  %vm3366_vm7 = vcmp.eq.s32.totalorder %v5795_v61, %v6967_v60 }
 0x175   : > { %4555 = vmatmul.msk.f32.gmra.mxu1 %vm1063_vm0, %v1043_v37  ;;  %v4596_v42 = vadd.f32 -0.6931472, %v2388_v63  ;;  %v1721_v37 = vmul.f32 1.442695, %v1625_v57  ;;  %v2050_v8 = vadd.f32 1.0, %v2049_v0  ;;  %v7020_v63 = vpop.permute.xlu2 %3355  ;;  %5124 = vlog2.f32 %v2055_v6 }
 0x176   : > { %8310 = vst [vmem:[#allocation24_spill] sm:$0xff] %v7020_v63  ;;  %v2058_v63 = vmul.f32 -0.5, %v6992_v20  ;;  %vm7041_vm13 = vcmp.lt.f32.partialorder %v2052_v3, 0.0004427343 }
 0x177   : > { %v2568_v57 = vpop.f32.mrf.mxu2  ;;  %5126 = vpow2.f32 %v1721_v37 }
 0x178   : > { %4728 = vmatmul.msk.f32.gmra.mxu3 %vm3553_vm2, %v4664_v46  ;;  %2603 = vmatmul.f32.gmra.mxu2 %v4595_v21  ;;  %v2039_v46 = vmul.f32 0.6931472, %v5117_v48  ;;  %v7005_v21 = vadd.f32 %v7002_v19, %v1372_v45  ;;  %v7012_v48 = vpop.f32.mrf.mxu0  ;;  %v2059_v49 = vadd.f32 1.0, %v2058_v63 }
 0x179   : > { %8309 = vst [vmem:[#allocation23_spill] sm:$0xff] %v7012_v48  ;;  %v5121_v45 = vpop.eup %5120 }
 0x17a   : > { %v2045_v51 = vsel %vm2044_vm10, %v2042_v30, %v2039_v46  ;;  %v1378_v43 = vpop.f32.mrf.mxu1  ;;  %v7028_v46 = vpop.eup %5122  ;;  %v2048_v47 = vmul.f32 0.6931472, %v5121_v45  ;;  %v8311_v30 = vmov 0.0   ;;  %v2060_v53 = vmul.f32 %v6992_v20, %v2059_v49 }
 0x17b   : > { %v2389_v15 = vadd.f32 %v2045_v51, %v1493_v24  ;;  %v4666_v0 = vsel %vm3393_vm11, 1.0, %v8311_v30  ;;  %v2051_v51 = vmul.f32 %v6962_v40, %v2050_v8  ;;  %v7036_v24 = vadd.f32 %v7002_v19, %v1375_v27  ;;  %v5125_v27 = vpop.eup %5124  ;;  %v4838_v3 = vpop.permute.xlu1 %4837 }
 0x17c   : > { %4699 = vmatmul.msk.f32.gmra.mxu0 %vm3553_vm2, %v4635_v2  ;;  %v7023_v2 = vpop.f32.mrf.mxu3  ;;  %v4636_v22 = vsel %vm3363_vm12, 1.0, %v8311_v30  ;;  %v2064_v37 = vadd.f32 1.0, %v7028_v46  ;;  %v1495_v49 = vmax.f32 %v6914_v32, 0.0  ;;  %v4639_v60 = vsel %vm3366_vm7, 1.0, %v8311_v30 }
 0x17d   : > { %4556 = vmatmul.msk.f32.gmra.mxu1 %vm1063_vm0, %v1044_v59  ;;  %v4597_v45 = vadd.f32 -0.6931472, %v2389_v15  ;;  %v2054_v8 = vsel %vm7041_vm13, %v2051_v51, %v2048_v47  ;;  %v7058_v56 = vpop.eup %5126  ;;  %v2061_v51 = vand.u32 2147483647, %v6992_v20  ;;  %vm3398_vm12 = vcmp.eq.s32.totalorder %v5795_v61, %v6663_v35 }
 0x17e   : > { %5128 = vlog2.f32 %v2064_v37  ;;  %v2566_v37 = vadd.f32 %v7062_v18, %v6984_v28 }
 0x17f   : > { %vm7085_vm3 = vcmp.lt.f32.partialorder %v2061_v51, 0.0004427343 }
 0x180   : > { %4729 = vmatmul.msk.f32.gmra.mxu3 %vm3553_vm2, %v4665_v14  ;;  %v1562_v14 = vand.u32 2147483647, %v7005_v21  ;;  %2606 = vmatmul.f32.gmra.mxu2 %v4596_v42  ;;  %v3182_v42 = vpop.permute.xlu0 %3181  ;;  %v7055_v15 = vpop.f32.mrf.mxu0 }
 0x181   : > { %vm3364_vm15 = vcmp.eq.s32.totalorder %v5795_v61, %v3182_v42  ;;  %8314 = vst [vmem:[#allocation25_spill] sm:$0xff] %v7055_v15  ;;  %v7080_v15 = vadd.f32 %v7002_v19, %v1378_v43  ;;  %v2067_v42 = vmul.f32 -0.5, %v7028_v46 }
 0x182   : > { %v1626_v6 = vsub.f32 0.0, %v1562_v14  ;;  %v7051_v40 = vpop.f32.mrf.mxu1  ;;  %v1494_v14 = vmax.f32 %v6889_v39, 0.0  ;;  %v1045_v39 = vld [vmem:[%s8228_s3 + $0x1a0] sm:$0xff]  ;;  %v4637_v63 = vsel %vm3364_vm15, 1.0, %v8311_v30 }
 0x183   : > { %v2068_v12 = vadd.f32 1.0, %v2067_v42  ;;  %v7126_v23 = vadd.f32 %v7002_v19, %v7051_v40 }
 0x184   : > { %4700 = vmatmul.msk.f32.gmra.mxu0 %vm3553_vm2, %v4636_v22  ;;  %v1723_v59 = vmul.f32 1.442695, %v1626_v6  ;;  %v4667_v22 = vsel %vm3394_vm14, 1.0, %v8311_v30  ;;  %v2390_v47 = vadd.f32 %v2054_v8, %v1494_v14  ;;  %v7065_v17 = vpop.f32.mrf.mxu3  ;;  %v4840_v6 = vunpack.i.h.bf16 %v4838_v3  ;;  %v4843_v8 = vpop.permute.xlu2 %4842 }
 0x185   : > { %8315 = vst [vmem:[#allocation26_spill] sm:$0xff] %v7065_v17  ;;  %4557 = vmatmul.msk.f32.gmra.mxu1 %vm1063_vm0, %v1045_v39  ;;  %v4839_v14 = vunpack.i.l.bf16 %v4838_v3  ;;  %v2569_v17 = vadd.f32 %v7062_v18, %v2568_v57  ;;  %v2073_v57 = vadd.f32 1.0, %v7058_v56  ;;  %v4844_v43 = vunpack.i.l.bf16 %v4843_v8 }
 0x186   : > { %5130 = vpow2.f32 %v1723_v59  ;;  %v4845_v39 = vunpack.i.h.bf16 %v4843_v8  ;;  %v2076_v3 = vmul.f32 -0.5, %v7058_v56 }
 0x187   : > { %v3051_v36 = vmul.f32 %v4844_v43, %v2566_v37  ;;  %5132 = vlog2.f32 %v2073_v57  ;;  %v1496_v43 = vmax.f32 %v6941_v26, 0.0  ;;  %v1047_v26 = vld [vmem:[%s8228_s3 + $0x1b0] sm:$0xff] }
 0x188   : > { %4730 = vmatmul.msk.f32.gmra.mxu3 %vm3553_vm2, %v4666_v0  ;;  %v1563_v0 = vand.u32 2147483647, %v7036_v24  ;;  %2609 = vmatmul.f32.gmra.mxu2 %v4597_v45  ;;  %v2057_v45 = vmul.f32 0.6931472, %v5125_v27  ;;  %v4598_v27 = vadd.f32 -0.6931472, %v2390_v47 }
 0x189   : > { %v1564_v47 = vand.u32 2147483647, %v7080_v15 }
 0x18a   : > { %v1627_v48 = vsub.f32 0.0, %v1563_v0  ;;  %v2063_v20 = vsel %vm7085_vm3, %v2060_v53, %v2057_v45  ;;  %v7097_v59 = vpop.f32.mrf.mxu1  ;;  %v5129_v0 = vpop.eup %5128  ;;  %v2070_v53 = vand.u32 2147483647, %v7028_v46 }
 0x18b   : > { %v2391_v32 = vadd.f32 %v2063_v20, %v1495_v49  ;;  %v1628_v37 = vsub.f32 0.0, %v1564_v47  ;;  %v4669_v47 = vsel %vm3396_vm6, 1.0, %v8311_v30 }
 0x18c   : > { %4701 = vmatmul.msk.f32.gmra.mxu0 %vm3553_vm2, %v4637_v63  ;;  %v1725_v29 = vmul.f32 1.442695, %v1627_v48  ;;  %v7102_v63 = vpop.f32.mrf.mxu0  ;;  %v4668_v48 = vsel %vm3395_vm1, 1.0, %v8311_v30  ;;  %v7115_v8 = vpop.f32.mrf.mxu3  ;;  %vm7132_vm5 = vcmp.lt.f32.partialorder %v2070_v53, 0.0004427343  ;;  %v7163_v53 = vadd.f32 %v7002_v19, %v7097_v59 }
 0x18d   : > { %v2571_v62 = vpop.f32.mrf.mxu2  ;;  %8318 = vst [vmem:[#allocation27_spill] sm:$0xff] %v7115_v8  ;;  %v4599_v4 = vadd.f32 -0.6931472, %v2391_v32  ;;  %v1727_v49 = vmul.f32 1.442695, %v1628_v37  ;;  %v1497_v37 = vmax.f32 %v6970_v11, 0.0 }
 0x18e   : > { %v2572_v28 = vadd.f32 %v7062_v18, %v2571_v62  ;;  %v3052_v62 = vmul.f32 %v4840_v6, %v2569_v17  ;;  %v7109_v17 = vpop.eup %5130  ;;  %v2066_v6 = vmul.f32 0.6931472, %v5129_v0  ;;  %5134 = vpow2.f32 %v1725_v29 }
 0x18f   : > { %v3968_v29 = vmul.f32 %v6957_v38, %v3051_v36  ;;  %v5133_v40 = vpop.eup %5132  ;;  %v1565_v36 = vand.u32 2147483647, %v7126_v23  ;;  %v2077_v38 = vadd.f32 1.0, %v2076_v3  ;;  %v2088_v57 = vand.u32 2147483647, %v7109_v17 }
 0x190   : > { %4731 = vmatmul.msk.f32.gmra.mxu3 %vm3553_vm2, %v4667_v22  ;;  %v2563_v22 = vadd.f32 %v7062_v18, %v6949_v52  ;;  %v3053_v51 = vmul.f32 %v4839_v14, %v2572_v28  ;;  %2612 = vmatmul.f32.gmra.mxu2 %v4598_v27  ;;  %v1046_v52 = vld [vmem:[%s8228_s3 + $0x1a8] sm:$0xff]  ;;  %v3969_v42 = vmul.f32 %v6987_v16, %v3052_v62  ;;  %v7130_v28 = vpop.permute.xlu0 %3346 }
 0x191   : > { %4558 = vmatmul.msk.f32.gmra.mxu1 %vm1063_vm0, %v1046_v52  ;;  %v2069_v27 = vmul.f32 %v7028_v46, %v2068_v12  ;;  %8319 = vst [vmem:[#allocation28_spill] sm:$0xff] %v7130_v28  ;;  %v2082_v12 = vadd.f32 1.0, %v7109_v17  ;;  %v2078_v32 = vmul.f32 %v7058_v56, %v2077_v38  ;;  %vm2089_vm11 = vcmp.lt.f32.partialorder %v2088_v57, 0.0004427343 }
 0x192   : > { %v3970_v45 = vmul.f32 %v7023_v2, %v3053_v51  ;;  %v4638_v2 = vsel %vm3365_vm4, 1.0, %v8311_v30  ;;  %v3050_v14 = vmul.f32 %v4845_v39, %v2563_v22  ;;  %v1387_v46 = vpop.f32.mrf.mxu1  ;;  %v2079_v22 = vand.u32 2147483647, %v7058_v56 }
 0x193   : > { %v2072_v16 = vsel %vm7132_vm5, %v2069_v27, %v2066_v6  ;;  %5136 = vlog2.f32 %v2082_v12  ;;  %v1629_v39 = vsub.f32 0.0, %v1565_v36  ;;  %v4670_v12 = vsel %vm3397_vm9, 1.0, %v8311_v30 }
 0x194   : > { %4039 = vmatpush.msra.mxu0 %v3970_v45  ;;  %v3967_v20 = vmul.f32 %v6929_v50, %v3050_v14  ;;  %v2392_v0 = vadd.f32 %v2072_v16, %v1496_v43  ;;  %v7150_v62 = vpop.eup %5134  ;;  %v2075_v50 = vmul.f32 0.6931472, %v5133_v40  ;;  %v7154_v31 = vpop.f32.mrf.mxu3  ;;  %5138 = vpow2.f32 %v1727_v49 }
 0x195   : > { %4702 = vmatmul.msk.f32.gmra.mxu0 %vm3553_vm2, %v4638_v2  ;;  %8322 = vst [vmem:[#allocation29_spill] sm:$0xff] %v7154_v31  ;;  %v7158_v51 = vpop.f32.mrf.mxu0  ;;  %v2085_v45 = vmul.f32 -0.5, %v7109_v17  ;;  %vm2080_vm8 = vcmp.lt.f32.partialorder %v2079_v22, 0.0004427343  ;;  %v1729_v59 = vmul.f32 1.442695, %v1629_v39  ;;  %v7180_v11 = vadd.f32 %v7002_v19, %v1387_v46 }
 0x196   : > { %4040 = vmatpush.msra.mxu0 %v3969_v42  ;;  %v4600_v52 = vadd.f32 -0.6931472, %v2392_v0  ;;  %v2081_v6 = vsel %vm2080_vm8, %v2078_v32, %v2075_v50  ;;  %v1566_v42 = vand.u32 2147483647, %v7163_v53  ;;  %v2094_v43 = vmul.f32 -0.5, %v7150_v62 }
 0x197   : > { %v2086_v27 = vadd.f32 1.0, %v2085_v45  ;;  %v1567_v50 = vand.u32 2147483647, %v7180_v11  ;;  %vm3401_vm4 = vcmp.eq.s32.totalorder %v5795_v61, %v6710_v55 }
 0x198   : > { %4732 = vmatmul.msk.f32.gmra.mxu3 %vm3553_vm2, %v4668_v48  ;;  %4041 = vmatpush.msra.mxu0 %v3968_v29  ;;  %v2091_v48 = vadd.f32 1.0, %v7150_v62  ;;  %v3191_v56 = vpop.permute.xlu0 %3190  ;;  %v1630_v16 = vsub.f32 0.0, %v1566_v42  ;;  %v2095_v39 = vadd.f32 1.0, %v2094_v43 }
 0x199   : > { %2615 = vmatmul.f32.gmra.mxu2 %v4599_v4  ;;  %4559 = vmatmul.msk.f32.gmra.mxu1 %vm1063_vm0, %v1047_v26  ;;  %v5137_v14 = vpop.eup %5136  ;;  %v2393_v4 = vadd.f32 %v2081_v6, %v1497_v37  ;;  %vm3367_vm10 = vcmp.eq.s32.totalorder %v5795_v61, %v3191_v56  ;;  %v2087_v40 = vmul.f32 %v7109_v17, %v2086_v27  ;;  %v1498_v26 = vmax.f32 %v7005_v21, 0.0 }
 0x19a   : > { %4042 = vmatpush.msra.mxu0 %v3967_v20  ;;  %v1390_v2 = vpop.f32.mrf.mxu1  ;;  %v7174_v3 = vpop.eup %5138  ;;  %5140 = vlog2.f32 %v2091_v48  ;;  %v2084_v29 = vmul.f32 0.6931472, %v5137_v14  ;;  %v1048_v20 = vld [vmem:[%s8228_s3 + $0x1b8] sm:$0xff]  ;;  %v4640_v36 = vsel %vm3367_vm10, 1.0, %v8311_v30  ;;  %v4671_v6 = vsel %vm3398_vm12, 1.0, %v8311_v30 }
 0x19b   : > { %5142 = vpow2.f32 %v1729_v59  ;;  %v7182_v7 = vpop.f32.mrf.mxu2  ;;  %v4601_v46 = vadd.f32 -0.6931472, %v2393_v4  ;;  %v2100_v0 = vadd.f32 1.0, %v7174_v3  ;;  %v1631_v14 = vsub.f32 0.0, %v1567_v50 }
 0x19c   : > { %8323 = vst [vmem:[#allocation30_spill] sm:$0xff] %v7182_v7  ;;  %v7186_v49 = vpop.f32.mrf.mxu3  ;;  %v2090_v17 = vsel %vm2089_vm11, %v2087_v40, %v2084_v29  ;;  %v2096_v21 = vmul.f32 %v7150_v62, %v2095_v39  ;;  %v7208_v56 = vadd.f32 %v7002_v19, %v1390_v2  ;;  %v2103_v35 = vmul.f32 -0.5, %v7174_v3  ;;  %v1049_v2 = vld [vmem:[%s8228_s3 + $0x1c0] sm:$0xff]  ;;  %v8329_v40 = vld [vmem:[#allocation10_spill] sm:$0xff] }
 0x19d   : > { %4703 = vmatmul.msk.f32.gmra.mxu0 %vm3553_vm2, %v4639_v60  ;;  %8324 = vst [vmem:[#allocation31_spill] sm:$0xff] %v7186_v49  ;;  %v7193_v38 = vpop.f32.mrf.mxu0  ;;  %v2394_v45 = vadd.f32 %v2090_v17, %v1498_v26  ;;  %v2097_v60 = vand.u32 2147483647, %v7150_v62  ;;  %5144 = vlog2.f32 %v2100_v0  ;;  %v1499_v29 = vmax.f32 %v7036_v24, 0.0 }
 0x19e   : > { %vm3399_vm14 = vcmp.eq.s32.totalorder %v5795_v61, %v8329_v40  ;;  %v1568_v43 = vand.u32 2147483647, %v7208_v56  ;;  %v2106_v0 = vand.u32 2147483647, %v7174_v3  ;;  %vm3404_vm10 = vcmp.eq.s32.totalorder %v5795_v61, %v6768_v44 }
 0x19f   : > { %v4602_v37 = vadd.f32 -0.6931472, %v2394_v45  ;;  %vm7212_vm13 = vcmp.lt.f32.partialorder %v2097_v60, 0.0004427343  ;;  %v1501_v60 = vmax.f32 %v7126_v23, 0.0  ;;  %vm3405_vm12 = vcmp.eq.s32.totalorder %v5795_v61, %v6618_v58 }
 0x1a0   : > { %4733 = vmatmul.msk.f32.gmra.mxu3 %vm3553_vm2, %v4669_v47  ;;  %v5141_v22 = vpop.eup %5140  ;;  %v1731_v47 = vmul.f32 1.442695, %v1630_v16  ;;  %v1733_v16 = vmul.f32 1.442695, %v1631_v14  ;;  %v1632_v26 = vsub.f32 0.0, %v1568_v43  ;;  %v4678_v58 = vsel %vm3405_vm12, 1.0, %v8311_v30 }
 0x1a1   : > { %2618 = vmatmul.f32.gmra.mxu2 %v4600_v52  ;;  %4560 = vmatmul.msk.f32.gmra.mxu1 %vm1063_vm0, %v1048_v20  ;;  %v7203_v52 = vpop.eup %5142  ;;  %v2093_v48 = vmul.f32 0.6931472, %v5141_v22  ;;  %v2104_v20 = vadd.f32 1.0, %v2103_v35  ;;  %v4672_v22 = vsel %vm3399_vm14, 1.0, %v8311_v30  ;;  %vm7243_vm15 = vcmp.lt.f32.partialorder %v2106_v0, 0.0004427343 }
 0x1a2   : > { %v1393_v32 = vpop.f32.mrf.mxu1  ;;  %5146 = vpow2.f32 %v1731_v47  ;;  %v2109_v42 = vadd.f32 1.0, %v7203_v52  ;;  %v2112_v39 = vmul.f32 -0.5, %v7203_v52  ;;  %v8333_v35 = vld [vmem:[#allocation11_spill] sm:$0xff]  ;;  %v1735_v59 = vmul.f32 1.442695, %v1632_v26 }
 0x1a3   : > { %v2099_v4 = vsel %vm7212_vm13, %v2096_v21, %v2093_v48  ;;  %v5145_v57 = vpop.eup %5144  ;;  %v2105_v50 = vmul.f32 %v7174_v3, %v2104_v20  ;;  %v7239_v47 = vadd.f32 %v7002_v19, %v1393_v32  ;;  %v1050_v3 = vld [vmem:[%s8228_s3 + $0x1c8] sm:$0xff]  ;;  %v1500_v21 = vmax.f32 %v7080_v15, 0.0 }
 0x1a4   : > { %v7217_v27 = vpop.f32.mrf.mxu2  ;;  %v7221_v62 = vpop.f32.mrf.mxu3  ;;  %5148 = vlog2.f32 %v2109_v42  ;;  %v2102_v24 = vmul.f32 0.6931472, %v5145_v57  ;;  %vm3400_vm1 = vcmp.eq.s32.totalorder %v5795_v61, %v8333_v35  ;;  %v2115_v15 = vand.u32 2147483647, %v7203_v52 }
 0x1a5   : > { %4704 = vmatmul.msk.f32.gmra.mxu0 %vm3553_vm2, %v4640_v36  ;;  %8327 = vst [vmem:[#allocation32_spill] sm:$0xff] %v7217_v27  ;;  %5150 = vpow2.f32 %v1733_v16  ;;  %v1569_v42 = vand.u32 2147483647, %v7239_v47  ;;  %v4673_v43 = vsel %vm3400_vm1, 1.0, %v8311_v30  ;;  %vm3406_vm14 = vcmp.eq.s32.totalorder %v5795_v61, %v6650_v5 }
 0x1a6   : > { %8328 = vst [vmem:[#allocation33_spill] sm:$0xff] %v7221_v62  ;;  %vm2116_vm3 = vcmp.lt.f32.partialorder %v2115_v15, 0.0004427343  ;;  %v7393_v62 = vpop.permute.xlu2 %4857 }
 0x1a8   : > { %4734 = vmatmul.msk.f32.gmra.mxu3 %vm3553_vm2, %v4670_v12  ;;  %v7227_v12 = vpop.f32.mrf.mxu0  ;;  %v7234_v17 = vpop.eup %5146 }
 0x1a9   : > { %2621 = vmatmul.f32.gmra.mxu2 %v4601_v46  ;;  %4561 = vmatmul.msk.f32.gmra.mxu1 %vm1063_vm0, %v1049_v2  ;;  %v2395_v46 = vadd.f32 %v2099_v4, %v1499_v29  ;;  %v2118_v48 = vadd.f32 1.0, %v7234_v17  ;;  %v2113_v4 = vadd.f32 1.0, %v2112_v39 }
 0x1aa   : > { %v1396_v36 = vpop.f32.mrf.mxu1  ;;  %v5149_v32 = vpop.eup %5148 }
 0x1ab   : > { %v4603_v45 = vadd.f32 -0.6931472, %v2395_v46  ;;  %v7262_v57 = vpop.eup %5150  ;;  %5152 = vlog2.f32 %v2118_v48  ;;  %v2111_v40 = vmul.f32 0.6931472, %v5149_v32  ;;  %v7269_v20 = vadd.f32 %v7002_v19, %v1396_v36  ;;  %v1051_v36 = vld [vmem:[%s8228_s3 + $0x1d0] sm:$0xff] }
 0x1ac   : > { %v7250_v14 = vpop.f32.mrf.mxu3  ;;  %5154 = vpow2.f32 %v1735_v59  ;;  %v1633_v46 = vsub.f32 0.0, %v1569_v42  ;;  %v2114_v0 = vmul.f32 %v7203_v52, %v2113_v4  ;;  %v2127_v26 = vadd.f32 1.0, %v7262_v57 }
 0x1ad   : > { %8332 = vst [vmem:[#allocation10_spill] sm:$0xff] %v7250_v14  ;;  %v1570_v52 = vand.u32 2147483647, %v7269_v20  ;;  %v4674_v42 = vsel %vm3401_vm4, 1.0, %v8311_v30 }
 0x1ae   : > { %v1737_v48 = vmul.f32 1.442695, %v1633_v46  ;;  %5156 = vlog2.f32 %v2127_v26 }
 0x1b0   : > { %4735 = vmatmul.msk.f32.gmra.mxu3 %vm3553_vm2, %v4671_v6  ;;  %v2108_v6 = vsel %vm7243_vm15, %v2105_v50, %v2102_v24  ;;  %v2121_v24 = vmul.f32 -0.5, %v7234_v17  ;;  %v2117_v50 = vsel %vm2116_vm3, %v2114_v0, %v2111_v40  ;;  %5158 = vpow2.f32 %v1737_v48 }
 0x1b1   : > { %2624 = vmatmul.f32.gmra.mxu2 %v4602_v37  ;;  %4562 = vmatmul.msk.f32.gmra.mxu1 %vm1063_vm0, %v1050_v3  ;;  %v2396_v16 = vadd.f32 %v2108_v6, %v1500_v21  ;;  %v2397_v32 = vadd.f32 %v2117_v50, %v1501_v60  ;;  %v2124_v21 = vand.u32 2147483647, %v7234_v17  ;;  %v2130_v40 = vmul.f32 -0.5, %v7262_v57  ;;  %v8338_v50 = vld [vmem:[#allocation12_spill] sm:$0xff] }
 0x1b2   : > { %v1399_v2 = vpop.f32.mrf.mxu1  ;;  %v2122_v6 = vadd.f32 1.0, %v2121_v24  ;;  %vm3402_vm6 = vcmp.eq.s32.totalorder %v5795_v61, %v8338_v50  ;;  %v2133_v48 = vand.u32 2147483647, %v7262_v57  ;;  %vm3407_vm15 = vcmp.eq.s32.totalorder %v5795_v61, %v6822_v9 }
 0x1b3   : > { %v7259_v37 = vpop.f32.mrf.mxu2  ;;  %v7295_v15 = vadd.f32 %v7002_v19, %v1399_v2  ;;  %vm2125_vm5 = vcmp.lt.f32.partialorder %v2124_v21, 0.0004427343  ;;  %vm3408_vm3 = vcmp.eq.s32.totalorder %v5795_v61, %v6678_v54 }
 0x1b4   : > { %8334 = vst [vmem:[#allocation11_spill] sm:$0xff] %v7259_v37  ;;  %v7275_v39 = vpop.f32.mrf.mxu3  ;;  %v2123_v55 = vmul.f32 %v7234_v17, %v2122_v6  ;;  %v1502_v17 = vmax.f32 %v7163_v53, 0.0  ;;  %v4675_v53 = vsel %vm3402_vm6, 1.0, %v8311_v30  ;;  %vm2134_vm7 = vcmp.lt.f32.partialorder %v2133_v48, 0.0004427343  ;;  %v7337_v48 = vpop.permute.xlu0 %3358 }
 0x1b5   : > { %8335 = vst [vmem:[#allocation34_spill] sm:$0xff] %v7275_v39 }
 0x1b7   : > { %v7264_v29 = vpop.f32.mrf.mxu0 }
 0x1b8   : > { %4736 = vmatmul.msk.f32.gmra.mxu3 %vm3553_vm2, %v4672_v22  ;;  %v4604_v22 = vadd.f32 -0.6931472, %v2396_v16  ;;  %v1634_v16 = vsub.f32 0.0, %v1570_v52 }
 0x1b9   : > { %2627 = vmatmul.f32.gmra.mxu2 %v4603_v45  ;;  %v5153_v45 = vpop.eup %5152  ;;  %4563 = vmatmul.msk.f32.gmra.mxu1 %vm1063_vm0, %v1051_v36  ;;  %v1571_v36 = vand.u32 2147483647, %v7295_v15 }
 0x1ba   : > { %v1402_v3 = vpop.f32.mrf.mxu1  ;;  %v7286_v35 = vpop.eup %5154  ;;  %v2120_v23 = vmul.f32 0.6931472, %v5153_v45  ;;  %v1739_v2 = vmul.f32 1.442695, %v1634_v16  ;;  %v2131_v45 = vadd.f32 1.0, %v2130_v40 }
 0x1bb   : > { %v2136_v46 = vadd.f32 1.0, %v7286_v35  ;;  %v5157_v26 = vpop.eup %5156  ;;  %v2139_v40 = vmul.f32 -0.5, %v7286_v35 }
 0x1bc   : > { %v7288_v59 = vpop.f32.mrf.mxu2  ;;  %v2126_v0 = vsel %vm2125_vm5, %v2123_v55, %v2120_v23  ;;  %v7300_v24 = vpop.f32.mrf.mxu3  ;;  %v2132_v16 = vmul.f32 %v7262_v57, %v2131_v45  ;;  %v7320_v55 = vadd.f32 %v7002_v19, %v1402_v3  ;;  %v1503_v57 = vmax.f32 %v7180_v11, 0.0  ;;  %v8341_v3 = vld [vmem:[#allocation13_spill] sm:$0xff] }
 0x1bd   : > { %8336 = vst [vmem:[#allocation35_spill] sm:$0xff] %v7288_v59  ;;  %v2398_v52 = vadd.f32 %v2126_v0, %v1502_v17  ;;  %5160 = vlog2.f32 %v2136_v46  ;;  %v7311_v6 = vpop.eup %5158  ;;  %vm3403_vm8 = vcmp.eq.s32.totalorder %v5795_v61, %v8341_v3  ;;  %v7366_v8 = vpop.permute.xlu0 %4847  ;;  %vm3409_vm5 = vcmp.eq.s32.totalorder %v5795_v61, %v6705_v25 }
 0x1be   : > { %8337 = vst [vmem:[#allocation36_spill] sm:$0xff] %v7300_v24  ;;  %5162 = vpow2.f32 %v1739_v2  ;;  %v2145_v0 = vadd.f32 1.0, %v7311_v6  ;;  %v1572_v50 = vand.u32 2147483647, %v7320_v55 }
 0x1bf   : > { %v4606_v46 = vadd.f32 -0.6931472, %v2398_v52  ;;  %8342 = vst [vmem:[#allocation13_spill] sm:$0xff] %v7337_v48 }
 0x1c0   : > { %4737 = vmatmul.msk.f32.gmra.mxu3 %vm3553_vm2, %v4673_v43  ;;  %v4605_v43 = vadd.f32 -0.6931472, %v2397_v32  ;;  %v2129_v32 = vmul.f32 0.6931472, %v5157_v26  ;;  %5164 = vlog2.f32 %v2145_v0  ;;  %v1054_v0 = vld [vmem:[%s8228_s3 + $0x1e8] sm:$0xff] }
 0x1c1   : > { %2630 = vmatmul.f32.gmra.mxu2 %v4604_v22  ;;  %v7291_v4 = vpop.f32.mrf.mxu0  ;;  %v1052_v22 = vld [vmem:[%s8228_s3 + $0x1d8] sm:$0xff] }
 0x1c2   : > { %4564 = vmatmul.msk.f32.gmra.mxu1 %vm1063_vm0, %v1052_v22  ;;  %v1405_v60 = vpop.f32.mrf.mxu1  ;;  %v2135_v22 = vsel %vm2134_vm7, %v2132_v16, %v2129_v32  ;;  %v4676_v16 = vsel %vm3403_vm8, 1.0, %v8311_v30  ;;  %vm3410_vm7 = vcmp.eq.s32.totalorder %v5795_v61, %v6880_v34 }
 0x1c3   : > { %v5161_v17 = vpop.eup %5160  ;;  %v2399_v32 = vadd.f32 %v2135_v22, %v1503_v57 }
 0x1c4   : > { %v7328_v26 = vpop.f32.mrf.mxu3  ;;  %v7335_v52 = vpop.eup %5162  ;;  %v2138_v11 = vmul.f32 0.6931472, %v5161_v17 }
 0x1c5   : > { %8340 = vst [vmem:[#allocation37_spill] sm:$0xff] %v7328_v26  ;;  %v4607_v22 = vadd.f32 -0.6931472, %v2399_v32  ;;  %v2154_v17 = vadd.f32 1.0, %v7335_v52 }
 0x1c6   : > { %v5165_v48 = vpop.eup %5164 }
 0x1c8   : > { %4738 = vmatmul.msk.f32.gmra.mxu3 %vm3553_vm2, %v4674_v42  ;;  %v1635_v42 = vsub.f32 0.0, %v1571_v36  ;;  %v2140_v36 = vadd.f32 1.0, %v2139_v40  ;;  %v1636_v40 = vsub.f32 0.0, %v1572_v50 }
 0x1c9   : > { %2633 = vmatmul.f32.gmra.mxu2 %v4605_v43  ;;  %v7314_v21 = vpop.f32.mrf.mxu0  ;;  %v7316_v23 = vpop.f32.mrf.mxu2  ;;  %v1053_v43 = vld [vmem:[%s8228_s3 + $0x1e0] sm:$0xff] }
 0x1ca   : > { %8339 = vst [vmem:[#allocation12_spill] sm:$0xff] %v7316_v23  ;;  %4565 = vmatmul.msk.f32.gmra.mxu1 %vm1063_vm0, %v1053_v43  ;;  %v1741_v2 = vmul.f32 1.442695, %v1635_v42  ;;  %v1408_v45 = vpop.f32.mrf.mxu1  ;;  %v7344_v42 = vadd.f32 %v7002_v19, %v1405_v60  ;;  %v2141_v28 = vmul.f32 %v7286_v35, %v2140_v36  ;;  %v1743_v50 = vmul.f32 1.442695, %v1636_v40 }
 0x1cb   : > { %v7372_v40 = vadd.f32 %v7002_v19, %v1408_v45 }
 0x1cc   : > { %5166 = vpow2.f32 %v1741_v2  ;;  %v7355_v57 = vpop.f32.mrf.mxu3  ;;  %v1504_v2 = vmax.f32 %v7208_v56, 0.0  ;;  %v4677_v56 = vsel %vm3404_vm10, 1.0, %v8311_v30 }
 0x1cd   : > { %5168 = vlog2.f32 %v2154_v17 }
 0x1ce   : > { %5170 = vpow2.f32 %v1743_v50  ;;  %v7386_v50 = vpop.permute.xlu1 %4852 }
 0x1cf   : > { %v4854_v14 = vunpack.i.l.bf16 %v7386_v50 }
 0x1d0   : > { %4739 = vmatmul.msk.f32.gmra.mxu3 %vm3553_vm2, %v4675_v53  ;;  %v2142_v53 = vand.u32 2147483647, %v7286_v35  ;;  %v1573_v35 = vand.u32 2147483647, %v7344_v42 }
 0x1d1   : > { %2636 = vmatmul.f32.gmra.mxu2 %v4606_v46  ;;  %v7341_v43 = vpop.f32.mrf.mxu0  ;;  %v7346_v3 = vpop.f32.mrf.mxu2  ;;  %v2148_v46 = vmul.f32 -0.5, %v7311_v6 }
 0x1d2   : > { %8343 = vst [vmem:[#allocation38_spill] sm:$0xff] %v7346_v3  ;;  %vm2143_vm9 = vcmp.lt.f32.partialorder %v2142_v53, 0.0004427343  ;;  %4566 = vmatmul.msk.f32.gmra.mxu1 %vm1063_vm0, %v1054_v0  ;;  %v2151_v53 = vand.u32 2147483647, %v7311_v6  ;;  %v1637_v0 = vsub.f32 0.0, %v1573_v35 }
 0x1d3   : > { %v2144_v60 = vsel %vm2143_vm9, %v2141_v28, %v2138_v11  ;;  %v2149_v36 = vadd.f32 1.0, %v2148_v46  ;;  %v7363_v28 = vpop.eup %5166  ;;  %v2147_v11 = vmul.f32 0.6931472, %v5165_v48  ;;  %v2157_v46 = vmul.f32 -0.5, %v7335_v52  ;;  %v1055_v48 = vld [vmem:[%s8228_s3 + $0x1f0] sm:$0xff]  ;;  %v8360_v3 = vld [vmem:[#allocation18_spill] sm:$0xff] }
 0x1d4   : > { %v2400_v32 = vadd.f32 %v2144_v60, %v1504_v2  ;;  %vm2152_vm11 = vcmp.lt.f32.partialorder %v2151_v53, 0.0004427343  ;;  %v2163_v17 = vadd.f32 1.0, %v7363_v28  ;;  %v7380_v2 = vpop.f32.mrf.mxu3  ;;  %v5169_v35 = vpop.eup %5168  ;;  %v1745_v45 = vmul.f32 1.442695, %v1637_v0 }
 0x1d5   : > { %v2150_v44 = vmul.f32 %v7311_v6, %v2149_v36  ;;  %8345 = vst [vmem:[#allocation40_spill] sm:$0xff] %v7380_v2  ;;  %v1505_v6 = vmax.f32 %v7239_v47, 0.0  ;;  %v1574_v36 = vand.u32 2147483647, %v7372_v40  ;;  %v4849_v47 = vunpack.i.l.bf16 %v7366_v8 }
 0x1d6   : > { %5172 = vlog2.f32 %v2163_v17  ;;  %vm3411_vm9 = vcmp.eq.s32.totalorder %v5795_v61, %v6732_v10 }
 0x1d7   : > { %v2153_v60 = vsel %vm2152_vm11, %v2150_v44, %v2147_v11  ;;  %v2160_v11 = vand.u32 2147483647, %v7335_v52  ;;  %v7390_v44 = vpop.eup %5170  ;;  %5174 = vpow2.f32 %v1745_v45  ;;  %v1638_v27 = vsub.f32 0.0, %v1574_v36  ;;  %v7413_v45 = vpop.permute.xlu0 %4862 }
 0x1d8   : > { %4740 = vmatmul.msk.f32.gmra.mxu3 %vm3553_vm2, %v4676_v16  ;;  %v1411_v16 = vpop.f32.mrf.mxu1  ;;  %v2172_v36 = vadd.f32 1.0, %v7390_v44 }
 0x1d9   : > { %2639 = vmatmul.f32.gmra.mxu2 %v4607_v22  ;;  %v2556_v31 = vpop.f32.mrf.mxu0  ;;  %v4608_v22 = vadd.f32 -0.6931472, %v2400_v32  ;;  %v2158_v32 = vadd.f32 1.0, %v2157_v46  ;;  %v2554_v46 = vadd.f32 %v7062_v18, %v7341_v43  ;;  %v7401_v17 = vadd.f32 %v7002_v19, %v1411_v16 }
 0x1da   : > { %4567 = vmatmul.msk.f32.gmra.mxu1 %vm1063_vm0, %v1055_v48  ;;  %v2557_v0 = vadd.f32 %v7062_v18, %v2556_v31  ;;  %v2156_v48 = vmul.f32 0.6931472, %v5169_v35  ;;  %v2166_v31 = vmul.f32 -0.5, %v7363_v28  ;;  %v1056_v35 = vld [vmem:[%s8228_s3 + $0x1f8] sm:$0xff]  ;;  %v4859_v43 = vunpack.i.l.bf16 %v7393_v62 }
 0x1db   : > { %v7368_v49 = vpop.f32.mrf.mxu2  ;;  %v2159_v7 = vmul.f32 %v7335_v52, %v2158_v32  ;;  %vm7415_vm13 = vcmp.lt.f32.partialorder %v2160_v11, 0.0004427343  ;;  %v2551_v52 = vadd.f32 %v7062_v18, %v7314_v21  ;;  %v1575_v37 = vand.u32 2147483647, %v7401_v17 }
 0x1dc   : > { %8344 = vst [vmem:[#allocation39_spill] sm:$0xff] %v7368_v49  ;;  %v3048_v32 = vmul.f32 %v4854_v14, %v2557_v0  ;;  %v5173_v59 = vpop.eup %5172  ;;  %v3047_v11 = vmul.f32 %v4859_v43, %v2554_v46  ;;  %v1747_v21 = vmul.f32 1.442695, %v1638_v27  ;;  %5176 = vlog2.f32 %v2172_v36 }
 0x1dd   : > { %v2162_v24 = vsel %vm7415_vm13, %v2159_v7, %v2156_v48  ;;  %v7433_v0 = vpop.eup %5174  ;;  %v2165_v43 = vmul.f32 0.6931472, %v5173_v59  ;;  %vm3413_vm13 = vcmp.eq.s32.totalorder %v5795_v61, %v8360_v3 }
 0x1de   : > { %v3965_v46 = vmul.f32 %v6867_v41, %v3048_v32  ;;  %5178 = vpow2.f32 %v1747_v21  ;;  %v2175_v41 = vmul.f32 -0.5, %v7390_v44  ;;  %v2181_v59 = vadd.f32 1.0, %v7433_v0 }
 0x1df   : > { %v4680_v21 = vsel %vm3407_vm15, 1.0, %v8311_v30 }
 0x1e0   : > { %4741 = vmatmul.msk.f32.gmra.mxu3 %vm3553_vm2, %v4677_v56  ;;  %v1414_v53 = vpop.f32.mrf.mxu1  ;;  %v2401_v56 = vadd.f32 %v2153_v60, %v1505_v6  ;;  %v2176_v32 = vadd.f32 1.0, %v2175_v41  ;;  %5180 = vlog2.f32 %v2181_v59 }
 0x1e1   : > { %2642 = vmatmul.f32.gmra.mxu2 %v4608_v22  ;;  %v2559_v22 = vpop.f32.mrf.mxu0 }
 0x1e2   : > { %v2560_v60 = vadd.f32 %v7062_v18, %v2559_v22  ;;  %v4609_v16 = vadd.f32 -0.6931472, %v2401_v56  ;;  %v1506_v56 = vmax.f32 %v7269_v20, 0.0  ;;  %4568 = vmatmul.msk.f32.gmra.mxu1 %vm1063_vm0, %v1056_v35  ;;  %v4864_v18 = vunpack.i.l.bf16 %v7413_v45  ;;  %v5177_v36 = vpop.eup %5176 }
 0x1e3   : > { %v7404_v6 = vpop.f32.mrf.mxu2 }
 0x1e4   : > { %8346 = vst [vmem:[#allocation41_spill] sm:$0xff] %v7404_v6  ;;  %v3049_v39 = vmul.f32 %v4849_v47, %v2560_v60  ;;  %v2167_v47 = vadd.f32 1.0, %v2166_v31  ;;  %v2402_v48 = vadd.f32 %v2162_v24, %v1506_v56  ;;  %v2169_v60 = vand.u32 2147483647, %v7363_v28 }
 0x1e5   : > { %v3046_v20 = vmul.f32 %v4864_v18, %v2551_v52  ;;  %v1639_v31 = vsub.f32 0.0, %v1575_v37  ;;  %v2178_v18 = vand.u32 2147483647, %v7390_v44 }
 0x1e6   : > { %v3966_v14 = vmul.f32 %v6899_v13, %v3049_v39  ;;  %v4679_v13 = vsel %vm3406_vm14, 1.0, %v8311_v30  ;;  %v3964_v39 = vmul.f32 %v6827_v1, %v3047_v11  ;;  %v2168_v35 = vmul.f32 %v7363_v28, %v2167_v47 }
 0x1e7   : > { %v4610_v5 = vadd.f32 -0.6931472, %v2402_v48  ;;  %vm2170_vm0 = vcmp.lt.f32.partialorder %v2169_v60, 0.0004427343  ;;  %v3963_v1 = vmul.f32 %v6776_v33, %v3046_v20  ;;  %v1507_v28 = vmax.f32 %v7295_v15, 0.0  ;;  %v7461_v33 = vpop.eup %5178 }
 0x1e8   : > { %4742 = vmatmul.msk.f32.gmra.mxu3 %vm3553_vm2, %v4678_v58  ;;  %v7424_v58 = vpop.f32.mrf.mxu3  ;;  %v1417_v7 = vpop.f32.mrf.mxu1  ;;  %4043 = vmatpush.msra.mxu0 %v3966_v14  ;;  %v2171_v37 = vsel %vm2170_vm0, %v2168_v35, %v2165_v43  ;;  %v1749_v52 = vmul.f32 1.442695, %v1639_v31  ;;  %v2174_v14 = vmul.f32 0.6931472, %v5177_v36  ;;  %v2177_v48 = vmul.f32 %v7390_v44, %v2176_v32 }
 0x1e9   : > { %8349 = vst [vmem:[#allocation42_spill] sm:$0xff] %v7424_v58  ;;  %2645 = vmatmul.f32.gmra.mxu2 %v4609_v16  ;;  %v7441_v27 = vpop.f32.mrf.mxu0  ;;  %v7448_v16 = vadd.f32 %v7002_v19, %v1414_v53  ;;  %v2403_v11 = vadd.f32 %v2171_v37, %v1507_v28  ;;  %v7470_v60 = vadd.f32 %v7002_v19, %v1417_v7  ;;  %v2184_v20 = vmul.f32 -0.5, %v7433_v0  ;;  %v5181_v31 = vpop.eup %5180 }
 0x1ea   : > { %4044 = vmatpush.msra.mxu0 %v3965_v46  ;;  %5182 = vpow2.f32 %v1749_v52  ;;  %vm2179_vm1 = vcmp.lt.f32.partialorder %v2178_v18, 0.0004427343  ;;  %v2190_v43 = vadd.f32 1.0, %v7461_v33  ;;  %v1508_v35 = vmax.f32 %v7320_v55, 0.0  ;;  %v7488_v55 = vld [vmem:[%s5426_s21] ss:$0 sm:$0xff] }
 0x1eb   : > { %v7444_v24 = vpop.f32.mrf.mxu2  ;;  %v1576_v53 = vand.u32 2147483647, %v7448_v16  ;;  %v4611_v46 = vadd.f32 -0.6931472, %v2403_v11  ;;  %v1577_v44 = vand.u32 2147483647, %v7470_v60 }
 0x1ec   : > { %8350 = vst [vmem:[#allocation43_spill] sm:$0xff] %v7444_v24  ;;  %4045 = vmatpush.msra.mxu0 %v3964_v39  ;;  %v2185_v7 = vadd.f32 1.0, %v2184_v20  ;;  %5184 = vlog2.f32 %v2190_v43  ;;  %v2183_v37 = vmul.f32 0.6931472, %v5181_v31  ;;  %v4681_v36 = vsel %vm3408_vm3, 1.0, %v8311_v30 }
 0x1ed   : > { %v1640_v9 = vsub.f32 0.0, %v1576_v53  ;;  %v1641_v53 = vsub.f32 0.0, %v1577_v44  ;;  %v2193_v11 = vmul.f32 -0.5, %v7461_v33  ;;  %v2196_v31 = vand.u32 2147483647, %v7461_v33 }
 0x1ee   : > { %4046 = vmatpush.msra.mxu0 %v3963_v1  ;;  %v2187_v1 = vand.u32 2147483647, %v7433_v0  ;;  %v2186_v32 = vmul.f32 %v7433_v0, %v2185_v7  ;;  %v4682_v44 = vsel %vm3409_vm5, 1.0, %v8311_v30  ;;  %v1512_v23 = vmax.f32 %v7448_v16, 0.0 }
 0x1ef   : > { %v1751_v19 = vmul.f32 1.442695, %v1640_v9  ;;  %v1753_v0 = vmul.f32 1.442695, %v1641_v53  ;;  %vm2197_vm6 = vcmp.lt.f32.partialorder %v2196_v31, 0.0004427343 }
 0x1f0   : > { %4743 = vmatmul.msk.f32.gmra.mxu3 %vm3553_vm2, %v4679_v13  ;;  %v7454_v22 = vpop.f32.mrf.mxu3  ;;  %v1420_v56 = vpop.f32.mrf.mxu1  ;;  %v2180_v13 = vsel %vm2179_vm1, %v2177_v48, %v2174_v14  ;;  %vm2188_vm4 = vcmp.lt.f32.partialorder %v2187_v1, 0.0004427343  ;;  %v4683_v31 = vsel %vm3410_vm7, 1.0, %v8311_v30 }
 0x1f1   : > { %8351 = vst [vmem:[#allocation44_spill] sm:$0xff] %v7454_v22  ;;  %2648 = vmatmul.f32.gmra.mxu2 %v4610_v5  ;;  %v7464_v15 = vpop.f32.mrf.mxu0  ;;  %v7481_v5 = vpop.eup %5182  ;;  %v2404_v59 = vadd.f32 %v2180_v13, %v1508_v35  ;;  %v7491_v54 = vadd.f32 %v7488_v55, %v1420_v56  ;;  %5186 = vpow2.f32 %v1751_v19  ;;  %v1509_v56 = vmax.f32 %v7344_v42, 0.0 }
 0x1f2   : > { %v2199_v14 = vadd.f32 1.0, %v7481_v5  ;;  %v5185_v48 = vpop.eup %5184 }
 0x1f3   : > { %v7466_v47 = vpop.f32.mrf.mxu2  ;;  %v4612_v18 = vadd.f32 -0.6931472, %v2404_v59  ;;  %v1578_v20 = vand.u32 2147483647, %v7491_v54  ;;  %v2192_v19 = vmul.f32 0.6931472, %v5185_v48 }
 0x1f4   : > { %5188 = vlog2.f32 %v2199_v14  ;;  %v7522_v14 = vpop.permute.xlu2 %4872 }
 0x1f5   : > { %v1642_v42 = vsub.f32 0.0, %v1578_v20  ;;  %5190 = vpow2.f32 %v1753_v0  ;;  %8353 = vst [vmem:[#allocation46_spill] sm:$0xff] %v7522_v14  ;;  %v2205_v20 = vand.u32 2147483647, %v7481_v5  ;;  %v4874_v6 = vunpack.i.l.bf16 %v7522_v14 }
 0x1f7   : > { %v7506_v35 = vpop.eup %5186  ;;  %vm2206_vm8 = vcmp.lt.f32.partialorder %v2205_v20, 0.0004427343 }
 0x1f8   : > { %4744 = vmatmul.msk.f32.gmra.mxu3 %vm3553_vm2, %v4680_v21  ;;  %v7475_v39 = vpop.f32.mrf.mxu3  ;;  %v1423_v41 = vpop.f32.mrf.mxu1  ;;  %v2189_v21 = vsel %vm2188_vm4, %v2186_v32, %v2183_v37  ;;  %v2202_v37 = vmul.f32 -0.5, %v7481_v5  ;;  %v2208_v53 = vadd.f32 1.0, %v7506_v35 }
 0x1f9   : > { %8352 = vst [vmem:[#allocation45_spill] sm:$0xff] %v7475_v39  ;;  %2651 = vmatmul.f32.gmra.mxu2 %v4611_v46  ;;  %v7485_v28 = vpop.f32.mrf.mxu0  ;;  %v2194_v46 = vadd.f32 1.0, %v2193_v11  ;;  %v2405_v13 = vadd.f32 %v2189_v21, %v1509_v56  ;;  %v7515_v1 = vadd.f32 %v7488_v55, %v1423_v41  ;;  %v1510_v21 = vmax.f32 %v7372_v40, 0.0 }
 0x1fa   : > { %v2203_v48 = vadd.f32 1.0, %v2202_v37  ;;  %5192 = vlog2.f32 %v2208_v53 }
 0x1fb   : > { %v7493_v52 = vpop.f32.mrf.mxu2  ;;  %v2195_v25 = vmul.f32 %v7461_v33, %v2194_v46  ;;  %v1755_v33 = vmul.f32 1.442695, %v1642_v42  ;;  %v1579_v41 = vand.u32 2147483647, %v7515_v1 }
 0x1fd   : > { %v2198_v32 = vsel %vm2197_vm6, %v2195_v25, %v2192_v19  ;;  %5194 = vpow2.f32 %v1755_v33  ;;  %v1643_v34 = vsub.f32 0.0, %v1579_v41  ;;  %v2211_v25 = vmul.f32 -0.5, %v7506_v35 }
 0x1fe   : > { %v2406_v56 = vadd.f32 %v2198_v32, %v1510_v21  ;;  %v1511_v21 = vmax.f32 %v7401_v17, 0.0  ;;  %v8356_v17 = vld [vmem:[#allocation14_spill] sm:$0xff] }
 0x1ff   : > { %v2212_v41 = vadd.f32 1.0, %v2211_v25  ;;  %vm3412_vm10 = vcmp.eq.s32.totalorder %v5795_v61, %v8356_v17  ;;  %v4684_v25 = vsel %vm3411_vm9, 1.0, %v8311_v30  ;;  %v7605_v17 = vpop.permute.xlu0 %4877 }
 0x200   : > { %4745 = vmatmul.msk.f32.gmra.mxu3 %vm3553_vm2, %v4681_v36  ;;  %v7499_v9 = vpop.f32.mrf.mxu3  ;;  %v1426_v43 = vpop.f32.mrf.mxu1  ;;  %v4613_v36 = vadd.f32 -0.6931472, %v2405_v13  ;;  %v4614_v37 = vadd.f32 -0.6931472, %v2406_v56  ;;  %v4880_v49 = vunpack.i.h.bf16 %v7605_v17 }
 0x201   : > { %2654 = vmatmul.f32.gmra.mxu2 %v4612_v18  ;;  %v7509_v7 = vpop.f32.mrf.mxu0  ;;  %v5189_v18 = vpop.eup %5188  ;;  %v7538_v42 = vadd.f32 %v7488_v55, %v1426_v43  ;;  %v1757_v43 = vmul.f32 1.442695, %v1643_v34  ;;  %v8358_v34 = vld [vmem:[#allocation17_spill] sm:$0xff] }
 0x202   : > { %v7529_v46 = vpop.eup %5190  ;;  %v2201_v13 = vmul.f32 0.6931472, %v5189_v18  ;;  %v7553_v56 = vpop.permute.xlu2 %4887  ;;  %vm3417_vm12 = vcmp.eq.s32.totalorder %v5795_v61, %v8358_v34 }
 0x203   : > { %v7511_v59 = vpop.f32.mrf.mxu2  ;;  %8354 = vst [vmem:[#allocation47_spill] sm:$0xff] %v7538_v42  ;;  %v5193_v18 = vpop.eup %5192  ;;  %v1580_v33 = vand.u32 2147483647, %v7538_v42  ;;  %v2220_v26 = vmul.f32 -0.5, %v7529_v46  ;;  %v2223_v2 = vand.u32 2147483647, %v7529_v46 }
 0x205   : > { %vm7641_vm15 = vcmp.lt.f32.partialorder %v2223_v2, 0.0004427343 }
 0x208   : > { %4746 = vmatmul.msk.f32.gmra.mxu3 %vm3553_vm2, %v4682_v44  ;;  %v7520_v11 = vpop.f32.mrf.mxu3  ;;  %v1429_v0 = vpop.f32.mrf.mxu1  ;;  %v2204_v44 = vmul.f32 %v7481_v5, %v2203_v48 }
 0x209   : > { %2657 = vmatmul.f32.gmra.mxu2 %v4613_v36  ;;  %v7532_v19 = vpop.f32.mrf.mxu0  ;;  %v2217_v36 = vadd.f32 1.0, %v7529_v46  ;;  %v7548_v5 = vpop.permute.xlu1 %4867 }
 0x20a   : > { %v2207_v53 = vsel %vm2206_vm8, %v2204_v44, %v2201_v13  ;;  %v7551_v48 = vpop.eup %5194  ;;  %v2214_v13 = vand.u32 2147483647, %v7506_v35  ;;  %v2210_v44 = vmul.f32 0.6931472, %v5193_v18  ;;  %v1644_v18 = vsub.f32 0.0, %v1580_v33 }
 0x20b   : > { %v7534_v40 = vpop.f32.mrf.mxu2  ;;  %v2407_v20 = vadd.f32 %v2207_v53, %v1511_v21  ;;  %5196 = vlog2.f32 %v2217_v36  ;;  %v7569_v36 = vadd.f32 %v7488_v55, %v1429_v0  ;;  %v2213_v21 = vmul.f32 %v7506_v35, %v2212_v41 }
 0x20c   : > { %5198 = vpow2.f32 %v1757_v43  ;;  %vm7578_vm14 = vcmp.lt.f32.partialorder %v2214_v13, 0.0004427343  ;;  %v2226_v0 = vadd.f32 1.0, %v7551_v48  ;;  %v4685_v35 = vsel %vm3412_vm10, 1.0, %v8311_v30  ;;  %v8363_v43 = vld [vmem:[#allocation16_spill] sm:$0xff] }
 0x20d   : > { %8359 = vst [vmem:[#allocation14_spill] sm:$0xff] %v7569_v36  ;;  %v4615_v10 = vadd.f32 -0.6931472, %v2407_v20  ;;  %vm3415_vm0 = vcmp.eq.s32.totalorder %v5795_v61, %v8363_v43  ;;  %v2216_v33 = vsel %vm7578_vm14, %v2213_v21, %v2210_v44  ;;  %v7603_v13 = vsel %vm3417_vm12, 1.0, %v8311_v30  ;;  %v7613_v21 = vld [vmem:[%s5441_s30] ss:$0 sm:$0xff] }
 0x20e   : > { %8365 = vst [vmem:[#allocation17_spill] sm:$0xff] %v7603_v13  ;;  %v1581_v44 = vand.u32 2147483647, %v7569_v36  ;;  %v1759_v43 = vmul.f32 1.442695, %v1644_v18  ;;  %v7618_v34 = vsel %vm3415_vm0, 1.0, %v8311_v30  ;;  %v2408_v13 = vadd.f32 %v2216_v33, %v1512_v23  ;;  %v7630_v33 = vpop.permute.xlu2 %4902 }
 0x20f   : > { %5200 = vlog2.f32 %v2226_v0  ;;  %v2229_v22 = vmul.f32 -0.5, %v7551_v48  ;;  %v2545_v2 = vadd.f32 %v7613_v21, %v7264_v29  ;;  %v2232_v18 = vand.u32 2147483647, %v7551_v48 }
 0x210   : > { %4747 = vmatmul.msk.f32.gmra.mxu3 %vm3553_vm2, %v4683_v31  ;;  %v7543_v32 = vpop.f32.mrf.mxu3  ;;  %v1432_v31 = vpop.f32.mrf.mxu1  ;;  %v1645_v0 = vsub.f32 0.0, %v1581_v44  ;;  %5202 = vpow2.f32 %v1759_v43 }
 0x211   : > { %8355 = vst [vmem:[#allocation48_spill] sm:$0xff] %v7543_v32  ;;  %2660 = vmatmul.f32.gmra.mxu2 %v4614_v37  ;;  %v8357_v32 = vld [vmem:[#allocation15_spill] sm:$0xff]  ;;  %v5197_v3 = vpop.eup %5196  ;;  %v7637_v24 = vadd.f32 %v7488_v55, %v1432_v31  ;;  %vm7685_vm1 = vcmp.lt.f32.partialorder %v2232_v18, 0.0004427343  ;;  %v1514_v18 = vmax.f32 %v7491_v54, 0.0 }
 0x212   : > { %vm3414_vm11 = vcmp.eq.s32.totalorder %v5795_v61, %v8357_v32  ;;  %v7566_v37 = vpop.f32.mrf.mxu0  ;;  %v2602_v32 = vadd.f32 %v7613_v21, %v7466_v47  ;;  %v7621_v36 = vpop.eup %5198  ;;  %v1761_v43 = vmul.f32 1.442695, %v1645_v0 }
 0x213   : > { %v7571_v53 = vpop.f32.mrf.mxu2  ;;  %v7597_v20 = vsel %vm3414_vm11, 1.0, %v8311_v30  ;;  %v7626_v47 = vpop.permute.xlu1 %4882  ;;  %8366 = vst [vmem:[#allocation18_spill] sm:$0xff] %v7637_v24  ;;  %v2235_v44 = vadd.f32 1.0, %v7621_v36  ;;  %v1582_v14 = vand.u32 2147483647, %v7637_v24 }
 0x214   : > { %v3063_v39 = vmul.f32 %v4880_v49, %v2602_v32  ;;  %v4869_v32 = vunpack.i.l.bf16 %v7548_v5  ;;  %v7670_v24 = vpop.permute.xlu0 %4892 }
 0x215   : > { %5204 = vlog2.f32 %v2235_v44 }
 0x216   : > { %5206 = vpow2.f32 %v1761_v43  ;;  %v2533_v43 = vadd.f32 %v7613_v21, %v7102_v63  ;;  %v8374_v63 = vld [vmem:[#allocation23_spill] sm:$0xff] }
 0x217   : > { %v2527_v54 = vadd.f32 %v7613_v21, %v8374_v63 }
 0x218   : > { %4748 = vmatmul.msk.f32.gmra.mxu3 %vm3553_vm2, %v4684_v25  ;;  %v7591_v41 = vpop.f32.mrf.mxu3  ;;  %v7610_v25 = vsel %vm3413_vm13, 1.0, %v8311_v30  ;;  %v1435_v16 = vpop.f32.mrf.mxu1 }
 0x219   : > { %8364 = vst [vmem:[#allocation15_spill] sm:$0xff] %v7591_v41  ;;  %v2221_v41 = vadd.f32 1.0, %v2220_v26  ;;  %2663 = vmatmul.f32.gmra.mxu2 %v4615_v10  ;;  %v2219_v26 = vmul.f32 0.6931472, %v5197_v3  ;;  %v4616_v10 = vadd.f32 -0.6931472, %v2408_v13 }
 0x21a   : > { %v3781_v23 = vpop.f32.mrf.mxu0  ;;  %v1513_v13 = vmax.f32 %v7470_v60, 0.0  ;;  %v2230_v3 = vadd.f32 1.0, %v2229_v22  ;;  %v4884_v22 = vunpack.i.l.bf16 %v7626_v47  ;;  %v2542_v60 = vadd.f32 %v7613_v21, %v7227_v12 }
 0x21b   : > { %v2222_v58 = vmul.f32 %v7529_v46, %v2221_v41  ;;  %v2548_v46 = vadd.f32 %v7613_v21, %v7291_v4  ;;  %v5201_v41 = vpop.eup %5200  ;;  %v7661_v4 = vmul.f32 %v7355_v57, %v3063_v39  ;;  %v2539_v57 = vadd.f32 %v7613_v21, %v7193_v38  ;;  %v7675_v44 = vpop.permute.xlu1 %4897 }
 0x21c   : > { %v7633_v42 = vpop.f32.mrf.mxu2  ;;  %v7665_v29 = vpop.eup %5202  ;;  %v2228_v49 = vmul.f32 0.6931472, %v5201_v41  ;;  %v3044_v39 = vmul.f32 %v4874_v6, %v2545_v2  ;;  %v7678_v12 = vadd.f32 %v7488_v55, %v1435_v16  ;;  %v2536_v38 = vadd.f32 %v7613_v21, %v7158_v51 }
 0x21d   : > { %v2225_v31 = vsel %vm7641_vm15, %v2222_v58, %v2219_v26  ;;  %8370 = vst [vmem:[#allocation49_spill] sm:$0xff] %v7661_v4  ;;  %v4879_v58 = vunpack.i.l.bf16 %v7605_v17  ;;  %v3045_v0 = vmul.f32 %v4869_v32, %v2548_v46  ;;  %v1646_v4 = vsub.f32 0.0, %v1582_v14 }
 0x21e   : > { %v2409_v26 = vadd.f32 %v2225_v31, %v1513_v13  ;;  %v2238_v32 = vmul.f32 -0.5, %v7621_v36  ;;  %v4894_v14 = vunpack.i.l.bf16 %v7670_v24  ;;  %v3961_v16 = vmul.f32 %v3781_v23, %v3044_v39 }
 0x21f   : > { %v4899_v51 = vunpack.i.l.bf16 %v7675_v44  ;;  %v1583_v23 = vand.u32 2147483647, %v7678_v12 }
 0x220   : > { %4749 = vmatmul.msk.f32.gmra.mxu3 %vm3553_vm2, %v4685_v35  ;;  %v7652_v35 = vpop.f32.mrf.mxu3  ;;  %v4617_v6 = vadd.f32 -0.6931472, %v2409_v26  ;;  %v3042_v26 = vmul.f32 %v4884_v22, %v2539_v57  ;;  %v8375_v22 = vld [vmem:[#allocation25_spill] sm:$0xff]  ;;  %v3040_v46 = vmul.f32 %v4894_v14, %v2533_v43 }
 0x221   : > { %8369 = vst [vmem:[#allocation16_spill] sm:$0xff] %v7652_v35  ;;  %2666 = vmatmul.f32.gmra.mxu2 %v4616_v10  ;;  %v1438_v35 = vpop.f32.mrf.mxu1  ;;  %v2231_v10 = vmul.f32 %v7551_v48, %v2230_v3  ;;  %v2244_v48 = vadd.f32 1.0, %v7665_v29  ;;  %v3043_v3 = vmul.f32 %v4879_v58, %v2542_v60  ;;  %v1763_v58 = vmul.f32 1.442695, %v1646_v4 }
 0x222   : > { %v3784_v17 = vpop.f32.mrf.mxu0  ;;  %v2239_v60 = vadd.f32 1.0, %v2238_v32  ;;  %v3959_v4 = vmul.f32 %v7532_v19, %v3042_v26  ;;  %v8376_v32 = vld [vmem:[#allocation21_spill] sm:$0xff]  ;;  %v3957_v26 = vmul.f32 %v7485_v28, %v3040_v46 }
 0x223   : > { %v3962_v31 = vmul.f32 %v3784_v17, %v3045_v0  ;;  %v2234_v41 = vsel %vm7685_vm1, %v2231_v10, %v2228_v49  ;;  %v3960_v0 = vmul.f32 %v7566_v37, %v3043_v3  ;;  %v8373_v49 = vunpack.i.l.bf16 %v7553_v56 }
 0x224   : > { %v2619_v13 = vpop.f32.mrf.mxu2  ;;  %v2410_v10 = vadd.f32 %v2234_v41, %v1514_v18  ;;  %5208 = vlog2.f32 %v2244_v48  ;;  %v2530_v37 = vadd.f32 %v7613_v21, %v8375_v22  ;;  %vm3416_vm3 = vcmp.eq.s32.totalorder %v5795_v61, %v8376_v32 }
 0x225   : > { %4047 = vmatpush.msra.mxu0 %v3962_v31  ;;  %v3041_v17 = vmul.f32 %v8373_v49, %v2536_v38  ;;  %v2241_v31 = vand.u32 2147483647, %v7621_v36  ;;  %v7716_v48 = vadd.f32 %v7488_v55, %v1438_v35  ;;  %5210 = vpow2.f32 %v1763_v58 }
 0x226   : > { %v2240_v19 = vmul.f32 %v7621_v36, %v2239_v60  ;;  %v2247_v41 = vmul.f32 -0.5, %v7665_v29  ;;  %v3039_v43 = vmul.f32 %v4899_v51, %v2530_v37  ;;  %v1515_v36 = vmax.f32 %v7515_v1, 0.0 }
 0x227   : > { %4048 = vmatpush.msra.mxu0 %v3961_v16  ;;  %v3958_v38 = vmul.f32 %v7509_v7, %v3041_v17  ;;  %v1647_v16 = vsub.f32 0.0, %v1583_v23  ;;  %v2617_v7 = vadd.f32 %v7613_v21, %v7633_v42  ;;  %vm7726_vm4 = vcmp.lt.f32.partialorder %v2241_v31, 0.0004427343 }
 0x228   : > { %4750 = vmatmul.msk.f32.gmra.mxu3 %vm3553_vm2, %v7610_v25  ;;  %v7693_v2 = vpop.f32.mrf.mxu3  ;;  %v5205_v25 = vpop.eup %5204  ;;  %v2611_v42 = vadd.f32 %v7613_v21, %v7534_v40  ;;  %v2614_v58 = vadd.f32 %v7613_v21, %v7571_v53  ;;  %v8379_v23 = vunpack.i.h.bf16 %v7366_v8  ;;  %v1584_v28 = vand.u32 2147483647, %v7716_v48 }
 0x229   : > { %v7701_v39 = vpop.eup %5206  ;;  %2669 = vmatmul.f32.gmra.mxu2 %v4617_v6  ;;  %4049 = vmatpush.msra.mxu0 %v3960_v0  ;;  %v2237_v57 = vmul.f32 0.6931472, %v5205_v25  ;;  %v2620_v6 = vadd.f32 %v7613_v21, %v2619_v13  ;;  %v1441_v25 = vpop.f32.mrf.mxu1  ;;  %v4618_v13 = vadd.f32 -0.6931472, %v2410_v10  ;;  %v8380_v1 = vunpack.i.l.bf16 %v7630_v33 }
 0x22a   : > { %v2253_v14 = vadd.f32 1.0, %v7701_v39  ;;  %v5209_v0 = vpop.eup %5208  ;;  %v3956_v49 = vmul.f32 %v7464_v15, %v3039_v43  ;;  %v1765_v17 = vmul.f32 1.442695, %v1647_v16  ;;  %v2248_v10 = vadd.f32 1.0, %v2247_v41 }
 0x22b   : > { %4050 = vmatpush.msra.mxu0 %v3959_v4  ;;  %v2243_v18 = vsel %vm7726_vm4, %v2240_v19, %v2237_v57  ;;  %v3069_v51 = vmul.f32 %v8379_v23, %v2620_v6  ;;  %v3038_v60 = vmul.f32 %v8380_v1, %v2527_v54  ;;  %v8381_v31 = vunpack.i.h.bf16 %v7386_v50  ;;  %v7750_v8 = vpop.eup %5210  ;;  %v8391_v1 = vld [vmem:[#allocation44_spill] sm:$0xff] }
 0x22c   : > { %v7718_v3 = vpop.f32.mrf.mxu2  ;;  %v2411_v40 = vadd.f32 %v2243_v18, %v1515_v36  ;;  %v2250_v53 = vand.u32 2147483647, %v7665_v29  ;;  %5212 = vlog2.f32 %v2253_v14  ;;  %v2605_v54 = vadd.f32 %v7613_v21, %v7493_v52  ;;  %v8389_v36 = vld [vmem:[#allocation47_spill] sm:$0xff] }
 0x22d   : > { %4051 = vmatpush.msra.mxu0 %v3958_v38  ;;  %v3068_v63 = vmul.f32 %v8381_v31, %v2617_v7  ;;  %v3955_v22 = vmul.f32 %v7441_v27, %v3038_v60  ;;  %v2608_v15 = vadd.f32 %v7613_v21, %v7511_v59  ;;  %v2246_v37 = vmul.f32 0.6931472, %v5209_v0  ;;  %v8390_v0 = vld [vmem:[#allocation45_spill] sm:$0xff] }
 0x22e   : > { %v8382_v50 = vunpack.i.h.bf16 %v7413_v45  ;;  %v8383_v57 = vunpack.i.h.bf16 %v7393_v62  ;;  %v3986_v38 = vmul.f32 %v7520_v11, %v3069_v51  ;;  %v1648_v6 = vsub.f32 0.0, %v1584_v28 }
 0x22f   : > { %4052 = vmatpush.msra.mxu0 %v3957_v26  ;;  %5214 = vpow2.f32 %v1765_v17  ;;  %v2249_v27 = vmul.f32 %v7665_v29, %v2248_v10  ;;  %v7766_v52 = vadd.f32 %v7488_v55, %v1441_v25  ;;  %v2256_v59 = vmul.f32 -0.5, %v7701_v39  ;;  %v8386_v25 = vld [vmem:[#allocation46_spill] sm:$0xff] }
 0x230   : > { %4751 = vmatmul.msk.f32.gmra.mxu3 %vm3553_vm2, %v7597_v20  ;;  %v7735_v20 = vpop.f32.mrf.mxu3  ;;  %v3066_v4 = vmul.f32 %v8382_v50, %v2611_v42  ;;  %v3067_v46 = vmul.f32 %v8383_v57, %v2614_v58  ;;  %v3985_v62 = vmul.f32 %v7499_v9, %v3068_v63  ;;  %v4619_v45 = vadd.f32 -0.6931472, %v2411_v40  ;;  %v8392_v63 = vld [vmem:[#allocation39_spill] sm:$0xff]  ;;  %v8394_v50 = vld [vmem:[#allocation42_spill] sm:$0xff] }
 0x231   : > { %2672 = vmatmul.f32.gmra.mxu2 %v4618_v13  ;;  %4053 = vmatpush.msra.mxu0 %v3956_v49  ;;  %v1444_v19 = vpop.f32.mrf.mxu1  ;;  %vm7772_vm5 = vcmp.lt.f32.partialorder %v2250_v53, 0.0004427343  ;;  %v2262_v41 = vadd.f32 1.0, %v7750_v8  ;;  %v4689_v29 = vsel %vm3416_vm3, 1.0, %v8311_v30  ;;  %v4875_v7 = vunpack.i.h.bf16 %v8386_v25  ;;  %v8387_v13 = vld [vmem:[#allocation43_spill] sm:$0xff]  ;;  %v7802_v53 = vpop.permute.xlu2 %4917 }
 0x232   : > { %v2252_v9 = vsel %vm7772_vm5, %v2249_v27, %v2246_v37  ;;  %v5213_v14 = vpop.eup %5212  ;;  %v8388_v43 = vunpack.i.h.bf16 %v7548_v5  ;;  %v1516_v18 = vmax.f32 %v8389_v36, 0.0  ;;  %v3984_v32 = vmul.f32 %v8390_v0, %v3067_v46  ;;  %v8395_v27 = vld [vmem:[#allocation40_spill] sm:$0xff]  ;;  %v8401_v36 = vld [vmem:[#allocation14_spill] sm:$0xff] }
 0x233   : > { %4054 = vmatpush.msra.mxu0 %v3955_v22  ;;  %v1767_v42 = vmul.f32 1.442695, %v1648_v6  ;;  %v4885_v58 = vunpack.i.h.bf16 %v7626_v47  ;;  %v3064_v23 = vmul.f32 %v4875_v7, %v2605_v54  ;;  %v1585_v51 = vand.u32 2147483647, %v7766_v52  ;;  %v7804_v22 = vpop.permute.xlu0 %4907  ;;  %v8393_v54 = vld [vmem:[#allocation41_spill] sm:$0xff] }
 0x234   : > { %v7762_v16 = vpop.f32.mrf.mxu2  ;;  %v3065_v26 = vmul.f32 %v8388_v43, %v2608_v15  ;;  %v2257_v28 = vadd.f32 1.0, %v2256_v59  ;;  %v3983_v60 = vmul.f32 %v8391_v1, %v3066_v4  ;;  %v2412_v49 = vadd.f32 %v2252_v9, %v1516_v18 }
 0x235   : > { %4059 = vmatpush.msrb.mxu0 %v3986_v38  ;;  %v2259_v5 = vand.u32 2147483647, %v7701_v39  ;;  %5216 = vlog2.f32 %v2262_v41  ;;  %v7796_v17 = vpop.eup %5214  ;;  %v4890_v10 = vunpack.i.h.bf16 %v7553_v56  ;;  %v4905_v31 = vunpack.i.h.bf16 %v7630_v33 }
 0x236   : > { %v2593_v47 = vadd.f32 %v7613_v21, %v8392_v63  ;;  %v2255_v40 = vmul.f32 0.6931472, %v5213_v14  ;;  %v2596_v15 = vadd.f32 %v7613_v21, %v8393_v54  ;;  %v3982_v4 = vmul.f32 %v8394_v50, %v3065_v26  ;;  %v8400_v14 = vld [vmem:[#allocation38_spill] sm:$0xff]  ;;  %v8406_v50 = vld [vmem:[#allocation36_spill] sm:$0xff] }
 0x237   : > { %4060 = vmatpush.msrb.mxu0 %v3985_v62  ;;  %5218 = vpow2.f32 %v1767_v42  ;;  %v1649_v56 = vsub.f32 0.0, %v1585_v51  ;;  %v2258_v33 = vmul.f32 %v7701_v39, %v2257_v28  ;;  %v7813_v46 = vadd.f32 %v7488_v55, %v1444_v19 }
 0x238   : > { %4752 = vmatmul.msk.f32.gmra.mxu3 %vm3553_vm2, %v7618_v34  ;;  %v2599_v34 = vadd.f32 %v7613_v21, %v8387_v13  ;;  %v7786_v35 = vpop.f32.mrf.mxu3  ;;  %v2265_v38 = vmul.f32 -0.5, %v7750_v8  ;;  %v3981_v59 = vmul.f32 %v8395_v27, %v3064_v23  ;;  %v4620_v62 = vadd.f32 -0.6931472, %v2412_v49  ;;  %v8398_v13 = vld [vmem:[#allocation19_spill] sm:$0xff]  ;;  %v8403_v23 = vld [vmem:[#allocation37_spill] sm:$0xff] }
 0x239   : > { %4061 = vmatpush.msrb.mxu0 %v3984_v32  ;;  %2675 = vmatmul.f32.gmra.mxu2 %v4619_v45  ;;  %v1447_v6 = vpop.f32.mrf.mxu1  ;;  %vm7818_vm6 = vcmp.lt.f32.partialorder %v2259_v5, 0.0004427343  ;;  %v2271_v11 = vadd.f32 1.0, %v7796_v17  ;;  %v4919_v39 = vunpack.i.l.bf16 %v7802_v53  ;;  %v4895_v19 = vunpack.i.h.bf16 %v7670_v24  ;;  %v8404_v49 = vld [vmem:[#allocation11_spill] sm:$0xff]  ;;  %v8408_v45 = vld [vmem:[#allocation34_spill] sm:$0xff] }
 0x23a   : > { %v3062_v37 = vmul.f32 %v4885_v58, %v2599_v34  ;;  %v4900_v41 = vunpack.i.h.bf16 %v7675_v44  ;;  %v2261_v25 = vsel %vm7818_vm6, %v2258_v33, %v2255_v40  ;;  %vm3418_vm7 = vcmp.eq.s32.totalorder %v5795_v61, %v8398_v13  ;;  %v8399_v34 = vld [vmem:[#allocation12_spill] sm:$0xff]  ;;  %v8402_v58 = vld [vmem:[#allocation49_spill] sm:$0xff]  ;;  %v7848_v40 = vpop.permute.xlu1 %4912 }
 0x23b   : > { %4062 = vmatpush.msrb.mxu0 %v3983_v60  ;;  %v5217_v7 = vpop.eup %5216  ;;  %v2587_v9 = vadd.f32 %v7613_v21, %v8399_v34  ;;  %v2590_v43 = vadd.f32 %v7613_v21, %v8400_v14  ;;  %v3061_v26 = vmul.f32 %v4890_v10, %v2596_v15  ;;  %v1517_v24 = vmax.f32 %v8401_v36, 0.0  ;;  %v8405_v10 = vld [vmem:[#allocation35_spill] sm:$0xff]  ;;  %v8412_v34 = vld [vmem:[#allocation32_spill] sm:$0xff] }
 0x23c   : > { %v7809_v57 = vpop.f32.mrf.mxu2  ;;  %v3060_v44 = vmul.f32 %v4895_v19, %v2593_v47  ;;  %v1769_v18 = vmul.f32 1.442695, %v1649_v56  ;;  %v1586_v0 = vand.u32 2147483647, %v7813_v46  ;;  %v2266_v32 = vadd.f32 1.0, %v2265_v38 }
 0x23d   : > { %4063 = vmatpush.msrb.mxu0 %v3982_v4  ;;  %v7838_v42 = vpop.eup %5218  ;;  %v3979_v51 = vmul.f32 %v8403_v23, %v3062_v37  ;;  %v2413_v28 = vadd.f32 %v2261_v25, %v1517_v24  ;;  %v2268_v1 = vand.u32 2147483647, %v7750_v8  ;;  %5220 = vlog2.f32 %v2271_v11  ;;  %v8413_v24 = vld [vmem:[#allocation18_spill] sm:$0xff] }
 0x23e   : > { %v4909_v60 = vunpack.i.l.bf16 %v7804_v22  ;;  %v2581_v5 = vadd.f32 %v7613_v21, %v8404_v49  ;;  %v2584_v63 = vadd.f32 %v7613_v21, %v8405_v10  ;;  %v2264_v47 = vmul.f32 0.6931472, %v5217_v7 }
 0x23f   : > { %4064 = vmatpush.msrb.mxu0 %v3981_v59  ;;  %v3058_v54 = vmul.f32 %v4905_v31, %v2587_v9  ;;  %v3059_v15 = vmul.f32 %v4900_v41, %v2590_v43  ;;  %v3978_v37 = vmul.f32 %v8406_v50, %v3061_v26  ;;  %v2274_v4 = vmul.f32 -0.5, %v7796_v17  ;;  %v7860_v31 = vpop.permute.xlu0 %4922 }
 0x240   : > { %4753 = vmatmul.msk.f32.gmra.mxu3 %vm3553_vm2, %v4689_v29  ;;  %v7828_v29 = vpop.f32.mrf.mxu3  ;;  %5222 = vpow2.f32 %v1769_v18  ;;  %v1650_v33 = vsub.f32 0.0, %v1586_v0  ;;  %v2267_v38 = vmul.f32 %v7750_v8, %v2266_v32  ;;  %v7856_v27 = vadd.f32 %v7488_v55, %v1447_v6  ;;  %v8411_v6 = vld [vmem:[#allocation30_spill] sm:$0xff] }
 0x241   : > { %4065 = vmatpush.msrb.mxu0 %v8402_v58  ;;  %2678 = vmatmul.f32.gmra.mxu2 %v4620_v62  ;;  %v1450_v59 = vpop.f32.mrf.mxu1  ;;  %v8407_v62 = vld [vmem:[#allocation17_spill] sm:$0xff]  ;;  %v3977_v11 = vmul.f32 %v8408_v45, %v3060_v44  ;;  %v4621_v19 = vadd.f32 -0.6931472, %v2413_v28  ;;  %vm7863_vm8 = vcmp.lt.f32.partialorder %v2268_v1, 0.0004427343  ;;  %v2280_v25 = vadd.f32 1.0, %v7838_v42 }
 0x242   : > { %v4914_v8 = vunpack.i.l.bf16 %v7848_v40  ;;  %v2575_v7 = vadd.f32 %v7613_v21, %v8411_v6  ;;  %v2578_v9 = vadd.f32 %v7613_v21, %v8412_v34  ;;  %v2270_v14 = vsel %vm7863_vm8, %v2267_v38, %v2264_v47  ;;  %v8414_v18 = vld [vmem:[#allocation10_spill] sm:$0xff]  ;;  %v8415_v1 = vld [vmem:[#allocation33_spill] sm:$0xff]  ;;  %v8419_v34 = vld [vmem:[#allocation28_spill] sm:$0xff] }
 0x243   : > { %4066 = vmatpush.msrb.mxu0 %v3979_v51  ;;  %v5221_v26 = vpop.eup %5220  ;;  %v3057_v36 = vmul.f32 %v4909_v60, %v2584_v63  ;;  %v1518_v44 = vmax.f32 %v8413_v24, 0.0  ;;  %v3976_v0 = vmul.f32 %v8414_v18, %v3059_v15  ;;  %v2275_v32 = vadd.f32 1.0, %v2274_v4 }
 0x244   : > { %v7852_v56 = vpop.f32.mrf.mxu2  ;;  %v4924_v58 = vunpack.i.l.bf16 %v7860_v31  ;;  %v3056_v23 = vmul.f32 %v4914_v8, %v2581_v5  ;;  %v1771_v51 = vmul.f32 1.442695, %v1650_v33  ;;  %v1587_v28 = vand.u32 2147483647, %v7856_v27 }
 0x245   : > { %4067 = vmatpush.msrb.mxu0 %v3978_v37  ;;  %v3975_v49 = vmul.f32 %v8415_v1, %v3058_v54  ;;  %v2414_v10 = vadd.f32 %v2270_v14, %v1518_v44  ;;  %v2277_v47 = vand.u32 2147483647, %v7796_v17  ;;  %5224 = vlog2.f32 %v2280_v25  ;;  %v8416_v37 = vld [vmem:[#allocation31_spill] sm:$0xff] }
 0x246   : > { %v7883_v60 = vpop.eup %5222  ;;  %v4691_v63 = vsel %vm3418_vm7, 1.0, %v8311_v30  ;;  %v2273_v15 = vmul.f32 0.6931472, %v5221_v26  ;;  %v3054_v5 = vmul.f32 %v4924_v58, %v2575_v7  ;;  %v3055_v50 = vmul.f32 %v4919_v39, %v2578_v9 }
 0x247   : > { %4068 = vmatpush.msrb.mxu0 %v3977_v11  ;;  %v3974_v4 = vmul.f32 %v8416_v37, %v3057_v36  ;;  %v2276_v54 = vmul.f32 %v7796_v17, %v2275_v32  ;;  %5226 = vpow2.f32 %v1771_v51  ;;  %v1651_v38 = vsub.f32 0.0, %v1587_v28  ;;  %v8417_v11 = vld [vmem:[#allocation29_spill] sm:$0xff]  ;;  %v8420_v36 = vld [vmem:[#allocation26_spill] sm:$0xff] }
 0x248   : > { %4754 = vmatmul.msk.f32.gmra.mxu3 %vm3553_vm2, %v8407_v62  ;;  %v7875_v43 = vpop.f32.mrf.mxu3  ;;  %v7896_v62 = vadd.f32 %v7488_v55, %v1450_v59  ;;  %v2283_v13 = vmul.f32 -0.5, %v7838_v42  ;;  %v3973_v39 = vmul.f32 %v8417_v11, %v3056_v23  ;;  %vm2278_vm9 = vcmp.lt.f32.partialorder %v2277_v47, 0.0004427343  ;;  %v8418_v59 = vld [vmem:[#allocation27_spill] sm:$0xff] }
 0x249   : > { %4069 = vmatpush.msrb.mxu0 %v3976_v0  ;;  %2681 = vmatmul.f32.gmra.mxu2 %v4621_v19  ;;  %v1453_v45 = vpop.f32.mrf.mxu1  ;;  %v4622_v19 = vadd.f32 -0.6931472, %v2414_v10  ;;  %v2289_v41 = vadd.f32 1.0, %v7883_v60  ;;  %v2279_v17 = vsel %vm2278_vm9, %v2276_v54, %v2273_v15  ;;  %v1519_v6 = vmax.f32 %v7678_v12, 0.0 }
 0x24a   : > { %v3972_v7 = vmul.f32 %v8418_v59, %v3055_v50  ;;  %vm3419_vm10 = vcmp.eq.s32.totalorder %v5795_v61, %v8419_v34  ;;  %v1773_v9 = vmul.f32 1.442695, %v1651_v38  ;;  %v1588_v14 = vand.u32 2147483647, %v7896_v62 }
 0x24b   : > { %4070 = vmatpush.msrb.mxu0 %v3975_v49  ;;  %v5225_v8 = vpop.eup %5224  ;;  %v2284_v26 = vadd.f32 1.0, %v2283_v13  ;;  %v3971_v24 = vmul.f32 %v8420_v36, %v3054_v5  ;;  %v2415_v44 = vadd.f32 %v2279_v17, %v1519_v6  ;;  %v2286_v18 = vand.u32 2147483647, %v7838_v42 }
 0x24c   : > { %v7893_v33 = vpop.f32.mrf.mxu2  ;;  %5228 = vlog2.f32 %v2289_v41  ;;  %v2282_v12 = vmul.f32 0.6931472, %v5225_v8  ;;  %v4692_v32 = vsel %vm3419_vm10, 1.0, %v8311_v30  ;;  %v2292_v58 = vmul.f32 -0.5, %v7883_v60 }
 0x24d   : > { %4071 = vmatpush.msrb.mxu0 %v3974_v4  ;;  %v7911_v0 = vpop.eup %5226  ;;  %5230 = vpow2.f32 %v1773_v9  ;;  %v1652_v51 = vsub.f32 0.0, %v1588_v14  ;;  %v2285_v28 = vmul.f32 %v7838_v42, %v2284_v26  ;;  %v7919_v1 = vadd.f32 %v7488_v55, %v1453_v45  ;;  %v8421_v4 = vld [vmem:[#allocation20_spill] sm:$0xff]  ;;  %v8422_v26 = vld [vmem:[#allocation22_spill] sm:$0xff] }
 0x24e   : > { %v4623_v49 = vadd.f32 -0.6931472, %v2415_v44  ;;  %vm2287_vm11 = vcmp.lt.f32.partialorder %v2286_v18, 0.0004427343  ;;  %v2298_v47 = vadd.f32 1.0, %v7911_v0  ;;  %v1520_v50 = vmax.f32 %v7716_v48, 0.0 }
 0x24f   : > { %4072 = vmatpush.msrb.mxu0 %v3973_v39  ;;  %v2293_v37 = vadd.f32 1.0, %v2292_v58  ;;  %vm3420_vm12 = vcmp.eq.s32.totalorder %v5795_v61, %v8421_v4  ;;  %v1775_v42 = vmul.f32 1.442695, %v1652_v51  ;;  %v1589_v54 = vand.u32 2147483647, %v7919_v1 }
 0x250   : > { %4755 = vmatmul.msk.f32.gmra.mxu3 %vm3553_vm2, %v4691_v63  ;;  %v7902_v25 = vpop.f32.mrf.mxu3  ;;  %v2288_v63 = vsel %vm2287_vm11, %v2285_v28, %v2282_v12  ;;  %v2295_v13 = vand.u32 2147483647, %v7883_v60  ;;  %5232 = vlog2.f32 %v2298_v47  ;;  %v4693_v39 = vsel %vm3420_vm12, 1.0, %v8311_v30 }
 0x251   : > { %4073 = vmatpush.msrb.mxu0 %v3972_v7  ;;  %2684 = vmatmul.f32.gmra.mxu2 %v4622_v19  ;;  %v1456_v10 = vpop.f32.mrf.mxu1  ;;  %v2416_v38 = vadd.f32 %v2288_v63, %v1520_v50  ;;  %v2294_v19 = vmul.f32 %v7883_v60, %v2293_v37  ;;  %5234 = vpow2.f32 %v1775_v42  ;;  %v1653_v41 = vsub.f32 0.0, %v1589_v54 }
 0x252   : > { %v5229_v5 = vpop.eup %5228  ;;  %v7937_v17 = vadd.f32 %v7488_v55, %v1456_v10  ;;  %v2301_v8 = vmul.f32 -0.5, %v7911_v0  ;;  %vm2296_vm13 = vcmp.lt.f32.partialorder %v2295_v13, 0.0004427343  ;;  %v1521_v60 = vmax.f32 %v7766_v52, 0.0 }
 0x253   : > { %4074 = vmatpush.msrb.mxu0 %v3971_v24  ;;  %v7930_v45 = vpop.eup %5230  ;;  %v2291_v11 = vmul.f32 0.6931472, %v5229_v5  ;;  %v4624_v6 = vadd.f32 -0.6931472, %v2416_v38  ;;  %vm3421_vm14 = vcmp.eq.s32.totalorder %v5795_v61, %v8422_v26  ;;  %v1777_v36 = vmul.f32 1.442695, %v1653_v41 }
 0x254   : > { %v7915_v23 = vpop.f32.mrf.mxu2  ;;  %v2307_v59 = vadd.f32 1.0, %v7930_v45  ;;  %v1590_v24 = vand.u32 2147483647, %v7937_v17  ;;  %v2302_v44 = vadd.f32 1.0, %v2301_v8  ;;  %v2304_v12 = vand.u32 2147483647, %v7911_v0 }
 0x255   : > { %v2297_v7 = vsel %vm2296_vm13, %v2294_v19, %v2291_v11  ;;  %v4694_v51 = vsel %vm3421_vm14, 1.0, %v8311_v30  ;;  %v2310_v28 = vmul.f32 -0.5, %v7930_v45  ;;  %v1522_v42 = vmax.f32 %v7813_v46, 0.0  ;;  %v8423_v38 = vld [vmem:[#allocation24_spill] sm:$0xff] }
 0x256   : > { %v5233_v9 = vpop.eup %5232  ;;  %v2417_v18 = vadd.f32 %v2297_v7, %v1521_v60  ;;  %5236 = vlog2.f32 %v2307_v59  ;;  %v2303_v10 = vmul.f32 %v7911_v0, %v2302_v44  ;;  %vm2305_vm0 = vcmp.lt.f32.partialorder %v2304_v12, 0.0004427343 }
 0x257   : > { %v2300_v58 = vmul.f32 0.6931472, %v5233_v9  ;;  %5238 = vpow2.f32 %v1777_v36  ;;  %v2311_v54 = vadd.f32 1.0, %v2310_v28  ;;  %vm3422_vm15 = vcmp.eq.s32.totalorder %v5795_v61, %v8423_v38 }
 0x258   : > { %4756 = vmatmul.msk.f32.gmra.mxu3 %vm3553_vm2, %v4692_v32  ;;  %v7923_v15 = vpop.f32.mrf.mxu3  ;;  %v5235_v32 = vpop.eup %5234  ;;  %v4625_v63 = vadd.f32 -0.6931472, %v2417_v18  ;;  %v1523_v18 = vmax.f32 %v7856_v27, 0.0 }
 0x259   : > { %2687 = vmatmul.f32.gmra.mxu2 %v4623_v49  ;;  %v1459_v14 = vpop.f32.mrf.mxu1  ;;  %v1654_v49 = vsub.f32 0.0, %v1590_v24  ;;  %v2316_v5 = vadd.f32 1.0, %v5235_v32  ;;  %v2306_v50 = vsel %vm2305_vm0, %v2303_v10, %v2300_v58  ;;  %v2312_v59 = vmul.f32 %v7930_v45, %v2311_v54 }
 0x25a   : > { %v7955_v47 = vadd.f32 %v7488_v55, %v1459_v14  ;;  %v2418_v11 = vadd.f32 %v2306_v50, %v1522_v42  ;;  %v2319_v60 = vmul.f32 -0.5, %v5235_v32  ;;  %v2322_v28 = vand.u32 2147483647, %v5235_v32 }
 0x25b   : > { %v1779_v13 = vmul.f32 1.442695, %v1654_v49  ;;  %5240 = vlog2.f32 %v2316_v5 }
 0x25c   : > { %v7934_v48 = vpop.f32.mrf.mxu2  ;;  %v5237_v4 = vpop.eup %5236  ;;  %v1591_v0 = vand.u32 2147483647, %v7955_v47  ;;  %v4626_v14 = vadd.f32 -0.6931472, %v2418_v11  ;;  %vm2323_vm4 = vcmp.lt.f32.partialorder %v2322_v28, 0.0004427343 }
 0x25d   : > { %v5239_v41 = vpop.eup %5238  ;;  %v2309_v8 = vmul.f32 0.6931472, %v5237_v4  ;;  %5242 = vpow2.f32 %v1779_v13 }
 0x25e   : > { %v1655_v7 = vsub.f32 0.0, %v1591_v0  ;;  %v2325_v26 = vadd.f32 1.0, %v5239_v41  ;;  %v2328_v4 = vmul.f32 -0.5, %v5239_v41  ;;  %v1524_v0 = vmax.f32 %v7896_v62, 0.0 }
 0x260   : > { %4757 = vmatmul.msk.f32.gmra.mxu3 %vm3553_vm2, %v4693_v39  ;;  %v7942_v34 = vpop.f32.mrf.mxu3  ;;  %v2313_v39 = vand.u32 2147483647, %v7930_v45  ;;  %v8424_v45 = vld [vmem:[#allocation13_spill] sm:$0xff]  ;;  %v1781_v12 = vmul.f32 1.442695, %v1655_v7  ;;  %5244 = vlog2.f32 %v2325_v26 }
 0x261   : > { %2690 = vmatmul.f32.gmra.mxu2 %v4624_v6  ;;  %v1462_v19 = vpop.f32.mrf.mxu1  ;;  %v4695_v6 = vsel %vm3422_vm15, 1.0, %v8311_v30  ;;  %v5241_v44 = vpop.eup %5240  ;;  %vm3423_vm3 = vcmp.eq.s32.totalorder %v5795_v61, %v8424_v45 }
 0x262   : > { %v7970_v9 = vadd.f32 %v7488_v55, %v1462_v19  ;;  %vm2314_vm1 = vcmp.lt.f32.partialorder %v2313_v39, 0.0004427343  ;;  %v2320_v55 = vadd.f32 1.0, %v2319_v60  ;;  %v2318_v10 = vmul.f32 0.6931472, %v5241_v44 }
 0x263   : > { %v2315_v36 = vsel %vm2314_vm1, %v2312_v59, %v2309_v8  ;;  %v5243_v49 = vpop.eup %5242  ;;  %5246 = vpow2.f32 %v1781_v12  ;;  %v2329_v39 = vadd.f32 1.0, %v2328_v4  ;;  %v2331_v19 = vand.u32 2147483647, %v5239_v41 }
 0x264   : > { %v7951_v52 = vpop.f32.mrf.mxu2  ;;  %v1592_v58 = vand.u32 2147483647, %v7970_v9  ;;  %v2321_v27 = vmul.f32 %v5235_v32, %v2320_v55  ;;  %v2334_v42 = vadd.f32 1.0, %v5243_v49  ;;  %v2337_v7 = vmul.f32 -0.5, %v5243_v49 }
 0x265   : > { %v2330_v59 = vmul.f32 %v5239_v41, %v2329_v39  ;;  %v1525_v44 = vmax.f32 %v7919_v1, 0.0  ;;  %v2340_v12 = vand.u32 2147483647, %v5243_v49  ;;  %v1526_v1 = vmax.f32 %v7937_v17, 0.0 }
 0x266   : > { %v1656_v50 = vsub.f32 0.0, %v1592_v58  ;;  %v2324_v54 = vsel %vm2323_vm4, %v2321_v27, %v2318_v10  ;;  %v5245_v13 = vpop.eup %5244  ;;  %5248 = vlog2.f32 %v2334_v42 }
 0x267   : > { %v2327_v32 = vmul.f32 0.6931472, %v5245_v13  ;;  %vm2341_vm5 = vcmp.lt.f32.partialorder %v2340_v12, 0.0004427343 }
 0x268   : > { %4758 = vmatmul.msk.f32.gmra.mxu3 %vm3553_vm2, %v4694_v51  ;;  %v7958_v37 = vpop.f32.mrf.mxu3  ;;  %v2419_v51 = vadd.f32 %v2315_v36, %v1523_v18  ;;  %v1783_v11 = vmul.f32 1.442695, %v1656_v50  ;;  %v2338_v18 = vadd.f32 1.0, %v2337_v7  ;;  %v5323_v7 = vmov 1.0  }
 0x269   : > { %2693 = vmatmul.f32.gmra.mxu2 %v4625_v63  ;;  %v4696_v63 = vsel %vm3423_vm3, 1.0, %v8311_v30  ;;  %v2420_v30 = vadd.f32 %v2324_v54, %v1524_v0  ;;  %v5247_v8 = vpop.eup %5246  ;;  %v8425_v0 = vlaneseq }
 0x26a   : > { %v4627_v61 = vadd.f32 -0.6931472, %v2419_v51  ;;  %5250 = vpow2.f32 %v1783_v11  ;;  %v7991_v51 = vpop.permute.xlu1 %4927  ;;  %v2339_v28 = vmul.f32 %v5243_v49, %v2338_v18  ;;  %v2346_v10 = vmul.f32 -0.5, %v5247_v8  ;;  %v8002_v49 = vld [vmem:[%s8227_s2] sm:$0xf] }
 0x26b   : > { %v4628_v60 = vadd.f32 -0.6931472, %v2420_v30  ;;  %v2349_v13 = vand.u32 2147483647, %v5247_v8  ;;  %v7997_v11 = vshrl.u32 %v8425_v0, 7  ;;  %v4022_v30 = vperm.slane %v8002_v49, 0  ;;  %v8021_v0 = vpop.permute.xlu2 %4932 }
 0x26c   : > { %v7967_v46 = vpop.f32.mrf.mxu2  ;;  %v5249_v62 = vpop.eup %5248 }
 0x26d   : > { %v2336_v55 = vmul.f32 0.6931472, %v5249_v62  ;;  %vm4026_vm6 = vcmp.eq.s32.totalorder %v7997_v11, %v4022_v30  ;;  %vm2350_vm7 = vcmp.lt.f32.partialorder %v2349_v13, 0.0004427343  ;;  %v2647_v62 = vadd.f32 %v7613_v21, %v7967_v46 }
 0x26e   : > { %4765 = vmatmul.msk.f32.vlgmr.msra.gmra.mxu0 %vm4026_vm6, %v5323_v7  ;;  %v1528_v46 = vmax.f32 %v7970_v9, 0.0  ;;  %v4915_v9 = vunpack.i.h.bf16 %v7848_v40 }
 0x26f   : > { %v2342_v27 = vsel %vm2341_vm5, %v2339_v28, %v2336_v55 }
 0x270   : > { %4759 = vmatmul.msk.f32.gmra.mxu3 %vm3553_vm2, %v4695_v6  ;;  %v7973_v24 = vpop.f32.mrf.mxu3  ;;  %v5251_v58 = vpop.eup %5250  ;;  %v2422_v54 = vadd.f32 %v2342_v27, %v1526_v1 }
 0x271   : > { %2696 = vmatmul.f32.gmra.mxu2 %v4626_v14  ;;  %v2343_v14 = vadd.f32 1.0, %v5247_v8  ;;  %v2352_v50 = vadd.f32 1.0, %v5251_v58  ;;  %v2355_v17 = vmul.f32 -0.5, %v5251_v58  ;;  %v2358_v12 = vand.u32 2147483647, %v5251_v58 }
 0x273   : > { %5252 = vlog2.f32 %v2343_v14  ;;  %v2356_v18 = vadd.f32 1.0, %v2355_v17  ;;  %vm2359_vm8 = vcmp.lt.f32.partialorder %v2358_v12, 0.0004427343 }
 0x274   : > { %v7980_v5 = vpop.f32.mrf.mxu2  ;;  %5254 = vlog2.f32 %v2352_v50 }
 0x275   : > { %v2357_v50 = vmul.f32 %v5251_v58, %v2356_v18 }
 0x278   : > { %4760 = vmatmul.msk.f32.gmra.mxu3 %vm3553_vm2, %v4696_v63  ;;  %v7983_v38 = vpop.f32.mrf.mxu3  ;;  %vm2332_vm2 = vcmp.lt.f32.partialorder %v2331_v19, 0.0004427343 }
 0x279   : > { %2699 = vmatmul.f32.gmra.mxu2 %v4627_v61  ;;  %v2333_v26 = vsel %vm2332_vm2, %v2330_v59, %v2327_v32  ;;  %v5253_v4 = vpop.eup %5252  ;;  %v2347_v61 = vadd.f32 1.0, %v2346_v10  ;;  %v4630_v59 = vadd.f32 -0.6931472, %v2422_v54 }
 0x27a   : > { %v2421_v45 = vadd.f32 %v2333_v26, %v1525_v44  ;;  %v2345_v39 = vmul.f32 0.6931472, %v5253_v4  ;;  %v5255_v26 = vpop.eup %5254  ;;  %v1527_v44 = vmax.f32 %v7955_v47, 0.0 }
 0x27b   : > { %v2348_v32 = vmul.f32 %v5247_v8, %v2347_v61  ;;  %v2354_v55 = vmul.f32 0.6931472, %v5255_v26  ;;  %v4920_v26 = vunpack.i.h.bf16 %v7802_v53 }
 0x27c   : > { %v7986_v6 = vpop.f32.mrf.mxu2  ;;  %v4629_v63 = vadd.f32 -0.6931472, %v2421_v45 }
 0x27d   : > { %v2351_v14 = vsel %vm2350_vm7, %v2348_v32, %v2345_v39  ;;  %v2360_v4 = vsel %vm2359_vm8, %v2357_v50, %v2354_v55  ;;  %v8023_v39 = vpop.permute.xlu0 %4937  ;;  %v4910_v32 = vunpack.i.h.bf16 %v7804_v22  ;;  %v4925_v22 = vunpack.i.h.bf16 %v7860_v31 }
 0x27e   : > { %v2423_v45 = vadd.f32 %v2351_v14, %v1527_v44  ;;  %v2424_v1 = vadd.f32 %v2360_v4, %v1528_v46  ;;  %v4929_v55 = vunpack.i.l.bf16 %v7991_v51  ;;  %v4934_v31 = vunpack.i.l.bf16 %v8021_v0 }
 0x280   : > { %v7988_v36 = vpop.f32.mrf.mxu3  ;;  %v4631_v27 = vadd.f32 -0.6931472, %v2423_v45  ;;  %v4632_v13 = vadd.f32 -0.6931472, %v2424_v1 }
 0x281   : > { %2702 = vmatmul.f32.gmra.mxu2 %v4628_v60  ;;  %v8007_v60 = vpop.permute.xlu1 %4942 }
 0x282   : > { %v4944_v8 = vunpack.i.l.bf16 %v8007_v60 }
 0x284   : > { %v7993_v41 = vpop.f32.mrf.mxu2  ;;  %v3078_v10 = vmul.f32 %v4944_v8, %v2647_v62 }
 0x285   : > { %v8042_v12 = vpop.permute.xlu0 %4952 }
 0x286   : > { %v8017_v47 = vmul.f32 %v7902_v25, %v3078_v10  ;;  %v8029_v25 = vld [vmem:[%s5441_s30] ss:$0 sm:$0xff] }
 0x287   : > { %v2656_v40 = vadd.f32 %v8029_v25, %v7993_v41  ;;  %v2653_v53 = vadd.f32 %v8029_v25, %v7986_v6  ;;  %v2650_v41 = vadd.f32 %v8029_v25, %v7980_v5  ;;  %v2644_v1 = vadd.f32 %v8029_v25, %v7951_v52 }
 0x288   : > { %v3904_v42 = vpop.f32.mrf.mxu3  ;;  %v4954_v52 = vunpack.i.l.bf16 %v8042_v12 }
 0x289   : > { %2705 = vmatmul.f32.gmra.mxu2 %v4629_v63  ;;  %v3081_v50 = vmul.f32 %v4929_v55, %v2656_v40  ;;  %v3080_v4 = vmul.f32 %v4934_v31, %v2653_v53  ;;  %v8056_v46 = vpop.permute.xlu1 %4957 }
 0x28b   : > { %v3998_v5 = vmul.f32 %v7958_v37, %v3081_v50 }
 0x28c   : > { %v2658_v19 = vpop.f32.mrf.mxu2 }
 0x28d   : > { %v2659_v62 = vadd.f32 %v8029_v25, %v2658_v19 }
 0x28f   : > { %v3082_v10 = vmul.f32 %v4925_v22, %v2659_v62  ;;  %v2632_v62 = vadd.f32 %v8029_v25, %v7852_v56 }
 0x290   : > { %v8013_v28 = vpop.f32.mrf.mxu3 }
 0x291   : > { %2708 = vmatmul.f32.gmra.mxu2 %v4630_v59  ;;  %v3999_v6 = vmul.f32 %v7973_v24, %v3082_v10  ;;  %v3997_v24 = vmul.f32 %v7942_v34, %v3080_v4 }
 0x294   : > { %v2661_v63 = vpop.f32.mrf.mxu2 }
 0x295   : > { %v2662_v17 = vadd.f32 %v8029_v25, %v2661_v63 }
 0x297   : > { %v3083_v8 = vmul.f32 %v4920_v26, %v2662_v17 }
 0x298   : > { %v8019_v54 = vpop.f32.mrf.mxu3 }
 0x299   : > { %2711 = vmatmul.f32.gmra.mxu2 %v4631_v27  ;;  %v4939_v27 = vunpack.i.l.bf16 %v8023_v39 }
 0x29c   : > { %v2664_v61 = vpop.f32.mrf.mxu2 }
 0x29d   : > { %v2665_v58 = vadd.f32 %v7613_v21, %v2664_v61  ;;  %v8037_v21 = vpop.permute.xlu2 %4947  ;;  %v3079_v61 = vmul.f32 %v4939_v27, %v2650_v41 }
 0x29f   : > { %v3084_v44 = vmul.f32 %v4915_v9, %v2665_v58  ;;  %v2641_v58 = vadd.f32 %v8029_v25, %v7934_v48  ;;  %v2638_v9 = vadd.f32 %v8029_v25, %v7915_v23  ;;  %v3996_v17 = vmul.f32 %v7923_v15, %v3079_v61  ;;  %v8428_v61 = vld [vmem:[#allocation48_spill] sm:$0xff] }
 0x2a0   : > { %v8033_v14 = vpop.f32.mrf.mxu3  ;;  %v2635_v48 = vadd.f32 %v8029_v25, %v7893_v33  ;;  %v2629_v33 = vadd.f32 %v8029_v25, %v7809_v57  ;;  %v2623_v57 = vadd.f32 %v8029_v25, %v7718_v3 }
 0x2a1   : > { %2714 = vmatmul.f32.gmra.mxu2 %v4632_v13  ;;  %v4001_v19 = vmul.f32 %v7988_v36, %v3084_v44  ;;  %v3076_v26 = vmul.f32 %v4954_v52, %v2641_v58 }
 0x2a4   : > { %v2667_v30 = vpop.f32.mrf.mxu2 }
 0x2a5   : > { %v2668_v59 = vadd.f32 %v8029_v25, %v2667_v30  ;;  %v8063_v13 = vpop.permute.xlu2 %4962  ;;  %v8069_v30 = vpop.permute.xlu0 %4967 }
 0x2a6   : > { %v4964_v34 = vunpack.i.l.bf16 %v8063_v13  ;;  %v4969_v15 = vunpack.i.l.bf16 %v8069_v30 }
 0x2a7   : > { %v3085_v18 = vmul.f32 %v4910_v32, %v2668_v59  ;;  %v4959_v59 = vunpack.i.l.bf16 %v8056_v46 }
 0x2a8   : > { %v8058_v36 = vpop.f32.mrf.mxu3  ;;  %v3074_v40 = vmul.f32 %v4964_v34, %v2635_v48 }
 0x2a9   : > { %v4002_v45 = vmul.f32 %v3904_v42, %v3085_v18  ;;  %v4000_v42 = vmul.f32 %v7983_v38, %v3083_v8  ;;  %v4949_v38 = vunpack.i.l.bf16 %v8037_v21  ;;  %v3075_v44 = vmul.f32 %v4959_v59, %v2638_v9  ;;  %v4973_v18 = vpop.permute.xlu1 %4972 }
 0x2aa   : > { %v3993_v8 = vmul.f32 %v7828_v29, %v3076_v26  ;;  %v4974_v56 = vunpack.i.l.bf16 %v4973_v18  ;;  %v3991_v29 = vmul.f32 %v7735_v20, %v3074_v40  ;;  %v4975_v26 = vunpack.i.h.bf16 %v4973_v18 }
 0x2ab   : > { %4079 = vmatpush.msra.mxu0 %v4002_v45  ;;  %v3077_v37 = vmul.f32 %v4949_v38, %v2644_v1  ;;  %v3992_v53 = vmul.f32 %v7786_v35, %v3075_v44  ;;  %v8427_v1 = vld [vmem:[#allocation15_spill] sm:$0xff] }
 0x2ac   : > { %v8048_v63 = vpop.f32.mrf.mxu2  ;;  %v3072_v31 = vmul.f32 %v4974_v56, %v2629_v33  ;;  %v4965_v56 = vunpack.i.h.bf16 %v8063_v13 }
 0x2ad   : > { %4080 = vmatpush.msra.mxu0 %v4001_v19  ;;  %v3994_v23 = vmul.f32 %v7875_v43, %v3077_v37  ;;  %v4978_v45 = vpop.permute.xlu2 %4977  ;;  %v3073_v43 = vmul.f32 %v4969_v15, %v2632_v62  ;;  %v4983_v10 = vpop.permute.xlu0 %4982  ;;  %v4970_v15 = vunpack.i.h.bf16 %v8069_v30 }
 0x2ae   : > { %v4979_v19 = vunpack.i.l.bf16 %v4978_v45  ;;  %v4984_v41 = vunpack.i.l.bf16 %v4983_v10  ;;  %v4985_v38 = vunpack.i.h.bf16 %v4983_v10  ;;  %v4980_v9 = vunpack.i.h.bf16 %v4978_v45 }
 0x2af   : > { %4081 = vmatpush.msra.mxu0 %v4000_v42  ;;  %v3990_v42 = vmul.f32 %v7693_v2, %v3073_v43 }
 0x2b0   : > { %v8085_v22 = vpop.f32.mrf.mxu3  ;;  %v3070_v27 = vmul.f32 %v4984_v41, %v2623_v57 }
 0x2b1   : > { %4082 = vmatpush.msra.mxu0 %v3999_v6 }
 0x2b3   : > { %4083 = vmatpush.msra.mxu0 %v3998_v5  ;;  %v3987_v5 = vmul.f32 %v8428_v61, %v3070_v27  ;;  %v4930_v61 = vunpack.i.h.bf16 %v7991_v51 }
 0x2b4   : > { %v8071_v32 = vpop.f32.mrf.mxu2 }
 0x2b5   : > { %4084 = vmatpush.msra.mxu0 %v3997_v24 }
 0x2b7   : > { %4085 = vmatpush.msra.mxu0 %v3996_v17 }
 0x2b8   : > { %v8103_v35 = vpop.f32.mrf.mxu3 }
 0x2b9   : > { %4086 = vmatpush.msra.mxu0 %v8017_v47  ;;  %v2626_v47 = vadd.f32 %v8029_v25, %v7762_v16  ;;  %v8426_v16 = vld [vmem:[#allocation16_spill] sm:$0xff] }
 0x2ba   : > { %v3989_v4 = vmul.f32 %v8426_v16, %v3072_v31 }
 0x2bb   : > { %4087 = vmatpush.msra.mxu0 %v3994_v23  ;;  %v3071_v50 = vmul.f32 %v4979_v19, %v2626_v47 }
 0x2bc   : > { %v8091_v55 = vpop.f32.mrf.mxu2 }
 0x2bd   : > { %4088 = vmatpush.msra.mxu0 %v3993_v8  ;;  %v3988_v3 = vmul.f32 %v8427_v1, %v3071_v50  ;;  %v4023_v8 = vperm.slane %v8002_v49, 1 }
 0x2bf   : > { %4089 = vmatpush.msra.mxu0 %v3992_v53  ;;  %vm4027_vm9 = vcmp.eq.s32.totalorder %v7997_v11, %v4023_v8  ;;  %v4024_v53 = vperm.slane %v8002_v49, 2 }
 0x2c0   : > { %v8108_v2 = vpop.f32.mrf.mxu3  ;;  %4766 = vmatmul.msk.f32.vlgmr.msrb.gmra.mxu0 %vm4027_vm9, %v5323_v7 }
 0x2c1   : > { %4090 = vmatpush.msra.mxu0 %v3991_v29  ;;  %vm4028_vm10 = vcmp.eq.s32.totalorder %v7997_v11, %v4024_v53 }
 0x2c3   : > { %4091 = vmatpush.msra.mxu0 %v3990_v42 }
 0x2c4   : > { %v8101_v6 = vpop.f32.mrf.mxu2 }
 0x2c5   : > { %4092 = vmatpush.msra.mxu0 %v3989_v4 }
 0x2c7   : > { %4093 = vmatpush.msra.mxu0 %v3988_v3  ;;  %v4935_v3 = vunpack.i.h.bf16 %v8021_v0  ;;  %v4950_v0 = vunpack.i.h.bf16 %v8037_v21 }
 0x2c8   : > { %v8115_v59 = vpop.f32.mrf.mxu3 }
 0x2c9   : > { %4094 = vmatpush.msra.mxu0 %v3987_v5 }
 0x2ca   : > { %4767 = vmatmul.msk.f32.vlgmr.msra.gmra.mxu0 %vm4028_vm10, %v5323_v7 }
 0x2cc   : > { %v2682_v20 = vpop.f32.mrf.mxu2 }
 0x2cd   : > { %v2683_v58 = vadd.f32 %v8029_v25, %v2682_v20 }
 0x2cf   : > { %v8110_v24 = vmul.f32 %v4985_v38, %v2683_v58  ;;  %v4940_v38 = vunpack.i.h.bf16 %v8023_v39  ;;  %v4955_v39 = vunpack.i.h.bf16 %v8042_v12  ;;  %v2680_v12 = vadd.f32 %v8029_v25, %v8101_v6 }
 0x2d0   : > { %v3931_v44 = vpop.f32.mrf.mxu3 }
 0x2d4   : > { %v2685_v52 = vpop.f32.mrf.mxu2 }
 0x2d5   : > { %v2686_v37 = vadd.f32 %v8029_v25, %v2685_v52 }
 0x2d7   : > { %v8113_v17 = vmul.f32 %v4980_v9, %v2686_v37 }
 0x2d8   : > { %v3934_v18 = vpop.f32.mrf.mxu3 }
 0x2d9   : > { %v4008_v6 = vmul.f32 %v8103_v35, %v8113_v17  ;;  %v4132_v17 = vld [vmem:[%s5451_s18 + $0x38] sm:$0xff] }
 0x2dc   : > { %v2688_v48 = vpop.f32.mrf.mxu2 }
 0x2dd   : > { %v2689_v34 = vadd.f32 %v8029_v25, %v2688_v48  ;;  %v4945_v48 = vunpack.i.h.bf16 %v8007_v60  ;;  %v4960_v60 = vunpack.i.h.bf16 %v8056_v46 }
 0x2df   : > { %v8118_v62 = vmul.f32 %v4975_v26, %v2689_v34 }
 0x2e0   : > { %v3937_v10 = vpop.f32.mrf.mxu3 }
 0x2e4   : > { %v2691_v23 = vpop.f32.mrf.mxu2 }
 0x2e5   : > { %v2692_v33 = vadd.f32 %v8029_v25, %v2691_v23 }
 0x2e7   : > { %v8122_v40 = vmul.f32 %v4970_v15, %v2692_v33 }
 0x2e8   : > { %v3940_v57 = vpop.f32.mrf.mxu3 }
 0x2ec   : > { %v2694_v45 = vpop.f32.mrf.mxu2 }
 0x2ed   : > { %v2695_v47 = vadd.f32 %v8029_v25, %v2694_v45 }
 0x2ef   : > { %v3094_v43 = vmul.f32 %v4965_v56, %v2695_v47 }
 0x2f0   : > { %v3943_v29 = vpop.f32.mrf.mxu3 }
 0x2f1   : > { %v4011_v27 = vmul.f32 %v3931_v44, %v3094_v43 }
 0x2f4   : > { %v2697_v30 = vpop.f32.mrf.mxu2 }
 0x2f5   : > { %v2698_v33 = vadd.f32 %v8029_v25, %v2697_v30  ;;  %v4010_v30 = vmul.f32 %v8115_v59, %v8122_v40  ;;  %v2671_v59 = vadd.f32 %v8029_v25, %v8048_v63 }
 0x2f7   : > { %v3095_v43 = vmul.f32 %v4960_v60, %v2698_v33  ;;  %v4192_v33 = vld [vmem:[%s5460_s16 + $0x58] sm:$0xff] }
 0x2f8   : > { %v3946_v50 = vpop.f32.mrf.mxu3 }
 0x2fc   : > { %v2700_v19 = vpop.f32.mrf.mxu2 }
 0x2fd   : > { %v2701_v51 = vadd.f32 %v8029_v25, %v2700_v19  ;;  %v4012_v19 = vmul.f32 %v3934_v18, %v3095_v43  ;;  %v2674_v18 = vadd.f32 %v8029_v25, %v8071_v32  ;;  %v4188_v43 = vld [vmem:[%s5460_s16 + $0x38] sm:$0xff] }
 0x2ff   : > { %v3096_v56 = vmul.f32 %v4955_v39, %v2701_v51  ;;  %v4194_v51 = vld [vmem:[%s5460_s16 + $0x68] sm:$0xff] }
 0x300   : > { %v3949_v16 = vpop.f32.mrf.mxu3 }
 0x301   : > { %v4013_v53 = vmul.f32 %v3937_v10, %v3096_v56  ;;  %v4993_v10 = vpop.permute.xlu2 %4992  ;;  %v4190_v56 = vld [vmem:[%s5460_s16 + $0x48] sm:$0xff] }
 0x304   : > { %v2703_v31 = vpop.f32.mrf.mxu2 }
 0x305   : > { %v2704_v26 = vadd.f32 %v8029_v25, %v2703_v31  ;;  %v4988_v31 = vpop.permute.xlu1 %4987 }
 0x306   : > { %v4989_v46 = vunpack.i.l.bf16 %v4988_v31 }
 0x307   : > { %v3097_v8 = vmul.f32 %v4950_v0, %v2704_v26  ;;  %v4998_v26 = vld [vmem:[%s678_s26] ss:$0 sm:$0xff] }
 0x308   : > { %v3952_v37 = vpop.f32.mrf.mxu3 }
 0x309   : > { %v4014_v21 = vmul.f32 %v3940_v57, %v3097_v8  ;;  %v4009_v57 = vmul.f32 %v8108_v2, %v8118_v62  ;;  %v4995_v2 = vunpack.i.h.bf16 %v4993_v10 }
 0x30c   : > { %v2706_v41 = vpop.f32.mrf.mxu2 }
 0x30d   : > { %v2707_v58 = vadd.f32 %v8029_v25, %v2706_v41  ;;  %v4990_v41 = vunpack.i.h.bf16 %v4988_v31  ;;  %v4186_v31 = vld [vmem:[%s5460_s16 + $0x28] sm:$0xff] }
 0x30f   : > { %v3098_v23 = vmul.f32 %v4945_v48, %v2707_v58 }
 0x311   : > { %v4015_v47 = vmul.f32 %v3943_v29, %v3098_v23  ;;  %v2677_v29 = vadd.f32 %v8029_v25, %v8091_v55  ;;  %v4007_v55 = vmul.f32 %v8085_v22, %v8110_v24  ;;  %v4137_v24 = vld [vmem:[%s5451_s18 + $0x60] sm:$0xff] }
 0x313   : > { %v3088_v40 = vmul.f32 %v4990_v41, %v2677_v29 }
 0x314   : > { %v2709_v42 = vpop.f32.mrf.mxu2 }
 0x315   : > { %v2710_v5 = vadd.f32 %v8029_v25, %v2709_v42  ;;  %v4994_v42 = vunpack.i.l.bf16 %v4993_v10  ;;  %v4005_v35 = vmul.f32 %v8033_v14, %v3088_v40  ;;  %v4139_v14 = vld [vmem:[%s5451_s18 + $0x70] sm:$0xff] }
 0x316   : > { %v4183_v10 = vld [vmem:[%s5460_s16 + $0x10] sm:$0xff] }
 0x317   : > { %v3099_v34 = vmul.f32 %v4940_v38, %v2710_v5  ;;  %v3087_v62 = vmul.f32 %v4994_v42, %v2674_v18  ;;  %v4125_v5 = vld [vmem:[%s5451_s18] sm:$0xff]  ;;  %v4182_v18 = vld [vmem:[%s5460_s16 + $0x8] sm:$0xff] }
 0x319   : > { %v4016_v45 = vmul.f32 %v3946_v50, %v3099_v34  ;;  %v3089_v50 = vmul.f32 %v4989_v46, %v2680_v12  ;;  %v4004_v63 = vmul.f32 %v8019_v54, %v3087_v62  ;;  %v4136_v54 = vld [vmem:[%s5451_s18 + $0x58] sm:$0xff]  ;;  %v4999_v62 = vld [vmem:[%s686_s14] ss:$0 sm:$0xff] }
 0x31a   : > { %v4196_v34 = vld [vmem:[%s5460_s16 + $0x78] sm:$0xff] }
 0x31b   : > { %v4006_v32 = vmul.f32 %v8058_v36, %v3089_v50  ;;  %v4140_v36 = vld [vmem:[%s5451_s18 + $0x78] sm:$0xff] }
 0x31c   : > { %v2712_v13 = vpop.f32.mrf.mxu2  ;;  %v4184_v46 = vld [vmem:[%s5460_s16 + $0x18] sm:$0xff] }
 0x31d   : > { %v2713_v4 = vadd.f32 %v8029_v25, %v2712_v13  ;;  %v4131_v13 = vld [vmem:[%s5451_s18 + $0x30] sm:$0xff] }
 0x31f   : > { %v3100_v52 = vmul.f32 %v4935_v3, %v2713_v4  ;;  %v4129_v4 = vld [vmem:[%s5451_s18 + $0x20] sm:$0xff]  ;;  %v4127_v3 = vld [vmem:[%s5451_s18 + $0x10] sm:$0xff] }
 0x321   : > { %v4017_v15 = vmul.f32 %v3949_v16, %v3100_v52  ;;  %v4130_v16 = vld [vmem:[%s5451_s18 + $0x28] sm:$0xff] }
 0x324   : > { %v2715_v1 = vpop.f32.mrf.mxu2 }
 0x325   : > { %v2716_v20 = vadd.f32 %v8029_v25, %v2715_v1  ;;  %v4025_v25 = vperm.slane %v8002_v49, 3  ;;  %v4138_v49 = vld [vmem:[%s5451_s18 + $0x68] sm:$0xff]  ;;  %v4128_v1 = vld [vmem:[%s5451_s18 + $0x18] sm:$0xff] }
 0x327   : > { %v3101_v9 = vmul.f32 %v4930_v61, %v2716_v20  ;;  %vm4029_vm11 = vcmp.eq.s32.totalorder %v7997_v11, %v4025_v25  ;;  %v4134_v11 = vld [vmem:[%s5451_s18 + $0x48] sm:$0xff]  ;;  %v4056_v20 = vpop.f32.mrf.mxu0 }
 0x328   : > { %v4126_v61 = vld [vmem:[%s5451_s18 + $0x8] sm:$0xff] }
 0x329   : > { %v4018_v44 = vmul.f32 %v3952_v37, %v3101_v9 }
 0x32b   : > { %4099 = vmatpush.msrb.mxu0 %v4018_v44  ;;  %v4195_v44 = vld [vmem:[%s5460_s16 + $0x70] sm:$0xff] }
 0x32d   : > { %4100 = vmatpush.msrb.mxu0 %v4017_v15  ;;  %v4193_v15 = vld [vmem:[%s5460_s16 + $0x60] sm:$0xff] }
 0x32f   : > { %4101 = vmatpush.msrb.mxu0 %v4016_v45  ;;  %v4191_v45 = vld [vmem:[%s5460_s16 + $0x50] sm:$0xff] }
 0x331   : > { %4102 = vmatpush.msrb.mxu0 %v4015_v47  ;;  %v4189_v47 = vld [vmem:[%s5460_s16 + $0x40] sm:$0xff] }
 0x333   : > { %4103 = vmatpush.msrb.mxu0 %v4014_v21  ;;  %v4187_v21 = vld [vmem:[%s5460_s16 + $0x30] sm:$0xff] }
 0x335   : > { %4104 = vmatpush.msrb.mxu0 %v4013_v53 }
 0x337   : > { %4105 = vmatpush.msrb.mxu0 %v4012_v19 }
 0x339   : > { %4106 = vmatpush.msrb.mxu0 %v4011_v27  ;;  %v3086_v27 = vmul.f32 %v4995_v2, %v2671_v59  ;;  %v4181_v59 = vld [vmem:[%s5460_s16] sm:$0xff] }
 0x33b   : > { %4107 = vmatpush.msrb.mxu0 %v4010_v30  ;;  %v4003_v22 = vmul.f32 %v8013_v28, %v3086_v27  ;;  %v4135_v28 = vld [vmem:[%s5451_s18 + $0x50] sm:$0xff]  ;;  %v4185_v30 = vld [vmem:[%s5460_s16 + $0x20] sm:$0xff] }
 0x33c   : > { %v4221_v27 = vld [vmem:[#allocation4] sm:$0xff] }
 0x33d   : > { %4108 = vmatpush.msrb.mxu0 %v4009_v57  ;;  %v4076_v38 = vpop.f32.mrf.mxu0 }
 0x33e   : > { %v4077_v52 = vadd.f32 %v4076_v38, %v4056_v20 }
 0x33f   : > { %4109 = vmatpush.msrb.mxu0 %v4008_v6 }
 0x341   : > { %4110 = vmatpush.msrb.mxu0 %v4007_v55 }
 0x343   : > { %4111 = vmatpush.msrb.mxu0 %v4006_v32 }
 0x345   : > { %4112 = vmatpush.msrb.mxu0 %v4005_v35 }
 0x347   : > { %4113 = vmatpush.msrb.mxu0 %v4004_v63  ;;  %v4096_v58 = vpop.f32.mrf.mxu0 }
 0x348   : > { %v4097_v9 = vadd.f32 %v4096_v58, %v4077_v52 }
 0x349   : > { %4114 = vmatpush.msrb.mxu0 %v4003_v22 }
 0x34a   : > { %4768 = vmatmul.msk.f32.vlgmr.msrb.gmra.mxu0 %vm4029_vm11, %v5323_v7  ;;  %v4133_v7 = vld [vmem:[%s5451_s18 + $0x40] sm:$0xff]  ;;  %s8429_s18 = sld [smem:[#allocation8_spill]] }
 0x34b   : > { %4145 = vmatpush.msra.mxu0 %v4140_v36 }
 0x34d   : > { %4146 = vmatpush.msra.mxu0 %v4139_v14 }
 0x34f   : > { %4147 = vmatpush.msra.mxu0 %v4138_v49 }
 0x350   : > { %s8431_s16 = sadd.s32 4294967295, %s8429_s18  }
 0x351   : > { %4148 = vmatpush.msra.mxu0 %v4137_v24  ;;  %p4803_p6 = scmp.eq.s32.totalorder %s8431_s16, 1 }
 0x353   : > { %4149 = vmatpush.msra.mxu0 %v4136_v54 }
 0x355   : > { %4150 = vmatpush.msra.mxu0 %v4135_v28 }
 0x357   : > { %4151 = vmatpush.msra.mxu0 %v4134_v11 }
 0x359   : > { %4152 = vmatpush.msra.mxu0 %v4133_v7 }
 0x35b   : > { %4153 = vmatpush.msra.mxu0 %v4132_v17 }
 0x35d   : > { %4154 = vmatpush.msra.mxu0 %v4131_v13 }
 0x35f   : > { %4155 = vmatpush.msra.mxu0 %v4130_v16 }
 0x361   : > { %4156 = vmatpush.msra.mxu0 %v4129_v4 }
 0x363   : > { %4157 = vmatpush.msra.mxu0 %v4128_v1 }
 0x365   : > { %4158 = vmatpush.msra.mxu0 %v4127_v3 }
 0x367   : > { %4159 = vmatpush.msra.mxu0 %v4126_v61 }
 0x369   : > { %4160 = vmatpush.msra.mxu0 %v4125_v5 }
 0x36b   : > { %4201 = vmatpush.msrb.mxu0 %v4196_v34 }
 0x36d   : > { %4202 = vmatpush.msrb.mxu0 %v4195_v44 }
 0x36f   : > { %4203 = vmatpush.msrb.mxu0 %v4194_v51 }
 0x371   : > { %4204 = vmatpush.msrb.mxu0 %v4193_v15 }
 0x373   : > { %4205 = vmatpush.msrb.mxu0 %v4192_v33 }
 0x375   : > { %4206 = vmatpush.msrb.mxu0 %v4191_v45 }
 0x377   : > { %4207 = vmatpush.msrb.mxu0 %v4190_v56 }
 0x379   : > { %4208 = vmatpush.msrb.mxu0 %v4189_v47 }
 0x37b   : > { %4209 = vmatpush.msrb.mxu0 %v4188_v43 }
 0x37d   : > { %4210 = vmatpush.msrb.mxu0 %v4187_v21 }
 0x37f   : > { %4211 = vmatpush.msrb.mxu0 %v4186_v31 }
 0x381   : > { %4212 = vmatpush.msrb.mxu0 %v4185_v30 }
 0x383   : > { %4213 = vmatpush.msrb.mxu0 %v4184_v46 }
 0x385   : > { %4214 = vmatpush.msrb.mxu0 %v4183_v10 }
 0x387   : > { %4215 = vmatpush.msrb.mxu0 %v4182_v18 }
 0x389   : > { %4216 = vmatpush.msrb.mxu0 %v4181_v59 }
 0x3c7   : > { %v4116_v37 = vpop.f32.mrf.mxu0 }
 0x3c8   : > { %v4117_v48 = vadd.f32 %v4116_v37, %v4097_v9 }
 0x3ca   : > { %4161 = vmatmul.f32.vlgmr.msra.gmra.mxu0 %v4117_v48 }
 0x447   : > { %v4162_v0 = vpop.f32.mrf.mxu0 }
 0x448   : > { %v4163_v23 = vadd.f32 %v4998_v26, %v4162_v0 }
 0x44a   : > { %v4166_v39 = vand.u32 2147483647, %v4163_v23  ;;  %v4165_v42 = vmax.f32 %v4163_v23, 0.0 }
 0x44c   : > { %v4167_v8 = vsub.f32 0.0, %v4166_v39 }
 0x44e   : > { %v4168_v60 = vmul.f32 1.442695, %v4167_v8 }
 0x450   : > { %5256 = vpow2.f32 %v4168_v60 }
 0x456   : > { %v5257_v53 = vpop.eup %5256 }
 0x457   : > { %v4170_v19 = vadd.f32 1.0, %v5257_v53  ;;  %v4173_v12 = vmul.f32 -0.5, %v5257_v53  ;;  %v4176_v57 = vand.u32 2147483647, %v5257_v53 }
 0x459   : > { %5258 = vlog2.f32 %v4170_v19  ;;  %v4174_v29 = vadd.f32 1.0, %v4173_v12  ;;  %vm4177_vm12 = vcmp.lt.f32.partialorder %v4176_v57, 0.0004427343 }
 0x45b   : > { %v4175_v6 = vmul.f32 %v5257_v53, %v4174_v29 }
 0x45f   : > { %v5259_v41 = vpop.eup %5258 }
 0x460   : > { %v4172_v50 = vmul.f32 0.6931472, %v5259_v41 }
 0x462   : > { %v4178_v40 = vsel %vm4177_vm12, %v4175_v6, %v4172_v50 }
 0x463   : > { %v4179_v55 = vadd.f32 %v4178_v40, %v4165_v42 }
 0x465   : > { %v4769_v2 = vadd.f32 -0.6931472, %v4179_v55 }
 0x467   : > { %4217 = vmatmul.f32.vlgmr.msrb.gmra.mxu0 %v4769_v2 }
 0x4e4   : > { %v4218_v32 = vpop.f32.mrf.mxu0 }
 0x4e5   : > { %v4219_v35 = vadd.f32 %v4999_v62, %v4218_v32 }
 0x4e7   : > { %v4222_v25 = vadd.f32 %v4221_v27, %v4219_v35 }
 0x4e9   : > { %4223 = vst [vmem:[#allocation4] sm:$0xff] %v4222_v25 }
 0x4ea   : > { %4800 = dma.vmem_to_hbm [thread:$0]  (%p4803_p6), %s4231_s27, 128, %s4233_s5, [#allocation5]  }
 0x4eb   : > { %5306 = dma.done.wait (%p4803_p6), [#allocation5], 128  }
 0x4ec   : > { %5308 = vsyncadd (%p4803_p6), [#allocation5], 4294967168 }
 0x4ed PF: > { %s8432_s29 = sld [smem:[#allocation8_spill]] }
 0x4ee   : > { %s8434_s30 = sld [smem:[#allocation9_spill]] }
 0x4f3   : > { %s25_s15 = sadd.s32 1, %s8432_s29   ;;  %s8433_s29 = sld [smem:[#allocation7_spill]] }
 0x4f4   : > { %p22_p7 = scmp.ge.s32.totalorder %s25_s15, 4  }
 0x4f6   :  { %24 = sbr.rel (!%p22_p7) target bundleno = 8 (0x8), region = 151 }
 0x4fb   :  { %4246 = vsyncpa [#allocation5], 1 }
 0x4fc   :  { %4248 = vsyncpa [#allocation5 + $0x1], 1 }

</bundles_post_ra>
